<compile_context>
chip_gen: v5e
topology: v5e:2x2
jax: 0.10.0
libtpu: 0.0.40
codegen_flags: <defaults>
</compile_context>

<pallas_src>
import functools

import jax
import jax.numpy as jnp
from jax import lax
from jax.experimental import pallas as pl
from jax.experimental.pallas import tpu as pltpu

_NEG = float(jnp.finfo(jnp.float32).min)


def _silu(v):
    # v * sigmoid(v); exp and the approximate reciprocal both go to the EUP slot,
    # keeping VALU slots free in the two largest elementwise regions.
    return v * pl.reciprocal(1.0 + jnp.exp(-v), approx=True)


def _silu_ref(v):
    return v * jax.nn.sigmoid(v)


def _sppf_kernel(x_ref, w1_ref, b1_ref, w2_ref, b2_ref, o_ref, *, H, W):
    """Fused SPPF for one image.

    x_ref : (1, P, C1)   lane-dense pixels x channels, P = H*W   (input dtype)
    w1_ref: (C1, Ch)     folded cv1 (conv+BN) weight, bf16
    b1_ref: (1, Ch)      folded cv1 bias, f32
    w2_ref: (4, Ch, C2)  folded cv2 weight split per concat-branch, bf16
    b2_ref: (1, C2)      folded cv2 bias, f32
    o_ref : (1, P, C2)
    """
    P = H * W

    # ---- cv1: 1x1 conv (+ folded BN) + SiLU as a lane-dense bf16 MXU matmul ----
    x = x_ref[0].astype(jnp.bfloat16)                             # (P, C1) bf16
    y0 = jnp.dot(x, w1_ref[...], preferred_element_type=jnp.float32)
    y0 = _silu(y0 + b1_ref[...])                                  # (P, Ch) f32

    # ---- boundary masks: built once as (P,1) column vectors, reused by all pools
    row = lax.broadcasted_iota(jnp.int32, (P, 1), 0)              # pixel index
    col = row % W                                                 # x-coordinate
    w_fwd = [col < (W - s) for s in (1, 2)]                       # shift +s along W
    w_bwd = [col >= s for s in (1, 2)]                            # shift -s along W
    h_fwd = [row < (P - s * W) for s in (1, 2)]                   # shift +s along H
    h_bwd = [row >= s * W for s in (1, 2)]                        # shift -s along H

    def _shift(a, k):
        # result[r] = a[(r + k) mod P]; invalid rows are masked by the caller.
        return pltpu.roll(a, shift=(-k) % P, axis=0)

    def _pool5(a):
        # Exact 5x5 stride-1 maxpool (pad=2) on the flattened (P, C) plane.
        # Separable: 5-wide max along W, then 5-tall max along H (exact for max).
        m = a
        for idx, s in enumerate((1, 2)):                          # along W
            fwd = jnp.where(w_fwd[idx], _shift(a, s), _NEG)
            bwd = jnp.where(w_bwd[idx], _shift(a, -s), _NEG)
            m = jnp.maximum(m, jnp.maximum(fwd, bwd))
        out = m
        for idx, s in enumerate((1, 2)):                          # along H
            k = s * W
            fwd = jnp.where(h_fwd[idx], _shift(m, k), _NEG)
            bwd = jnp.where(h_bwd[idx], _shift(m, -k), _NEG)
            out = jnp.maximum(out, jnp.maximum(fwd, bwd))
        return out

    y1 = _pool5(y0)
    y2 = _pool5(y1)
    y3 = _pool5(y2)

    # ---- cv2: concat + 1x1 conv fused as four back-to-back bf16 block matmuls ----
    # (block-matrix identity; no concat materialized; MRB accumulates on v7x).
    z = jnp.dot(y0.astype(jnp.bfloat16), w2_ref[0], preferred_element_type=jnp.float32)
    z = z + jnp.dot(y1.astype(jnp.bfloat16), w2_ref[1], preferred_element_type=jnp.float32)
    z = z + jnp.dot(y2.astype(jnp.bfloat16), w2_ref[2], preferred_element_type=jnp.float32)
    z = z + jnp.dot(y3.astype(jnp.bfloat16), w2_ref[3], preferred_element_type=jnp.float32)
    z = _silu(z + b2_ref[...])
    o_ref[0] = z.astype(o_ref.dtype)


def _round_up(v, m):
    return ((v + m - 1) // m) * m


def _vmem_limit_bytes():
    # Generation-aware VMEM budget: ~3/4 of physical, capped at 100 MiB
    # (~96 MiB on v5e/v6e's 128 MiB, ~48 MiB on v7x's 64 MiB per TC).
    try:
        cap = pltpu.get_tpu_info().vmem_capacity_bytes
        return int(min(cap * 3 // 4, 100 * 1024 * 1024))
    except Exception:
        return 64 * 1024 * 1024


def sppf_pallas_nhwc(x_pc, w1, b1, w2, b2, h, w, *, lane=128):
    """SPPF on channels-last input x_pc:(N, H*W, C1). Returns (N, H*W, C2)."""
    n, p, c1 = x_pc.shape
    ch = w1.shape[1]
    c2 = w2.shape[1]
    assert p == h * w

    # Pad hidden/output channel dims to lane multiples so the output store is
    # unmasked and the MXU N-dim is dense.  No-op for real SPPF sizes (256/512).
    chp = _round_up(ch, lane)
    c2p = _round_up(c2, lane)

    w1p = jnp.zeros((c1, chp), jnp.float32).at[:, :ch].set(w1.astype(jnp.float32))
    b1p = jnp.zeros((1, chp), jnp.float32).at[0, :ch].set(b1.astype(jnp.float32))
    w2p = jnp.zeros((4, chp, c2p), jnp.float32)
    w2p = w2p.at[:, :ch, :c2].set(w2.reshape(4, ch, c2).astype(jnp.float32))
    b2p = jnp.zeros((1, c2p), jnp.float32).at[0, :c2].set(b2.astype(jnp.float32))

    # Cast weights to bf16 once on the host (halves weight DMA, full-rate MXU).
    w1p = w1p.astype(jnp.bfloat16)
    w2p = w2p.astype(jnp.bfloat16)

    const = lambda i: (0, 0)
    const3 = lambda i: (0, 0, 0)

    out = pl.pallas_call(
        functools.partial(_sppf_kernel, H=h, W=w),
        out_shape=jax.ShapeDtypeStruct((n, p, c2p), x_pc.dtype),
        grid=(n,),
        in_specs=[
            pl.BlockSpec((1, p, c1), lambda i: (i, 0, 0)),
            # Weights/biases never change across the grid -> single-buffered.
            pl.BlockSpec((c1, chp), const, pipeline_mode=pl.Buffered(1)),
            pl.BlockSpec((1, chp), const, pipeline_mode=pl.Buffered(1)),
            pl.BlockSpec((4, chp, c2p), const3, pipeline_mode=pl.Buffered(1)),
            pl.BlockSpec((1, c2p), const, pipeline_mode=pl.Buffered(1)),
        ],
        out_specs=pl.BlockSpec((1, p, c2p), lambda i: (i, 0, 0)),
        compiler_params=pltpu.CompilerParams(
            dimension_semantics=("parallel",),       # images independent -> megacore
            vmem_limit_bytes=_vmem_limit_bytes(),
        ),
    )(x_pc, w1p, b1p, w2p, b2p)

    return out[..., :c2]


def sppf_pallas(x_nchw, w1, b1, w2, b2):
    """SPPF forward, NCHW in/out. w1:(C1,Ch) b1:(Ch,) w2:(4*Ch,C2) b2:(C2,).

    Note: if the surrounding graph is channels-last, call sppf_pallas_nhwc
    directly to avoid the two full HBM transpose passes below.
    """
    n, c1, h, w = x_nchw.shape
    c2 = w2.shape[1]
    p = h * w
    x_pc = jnp.transpose(x_nchw, (0, 2, 3, 1)).reshape(n, p, c1)
    out = sppf_pallas_nhwc(x_pc, w1, b1, w2, b2, h, w)
    return jnp.transpose(out.reshape(n, h, w, c2), (0, 3, 1, 2))


def _fold_bn(conv_w, gamma, beta, mean, var, eps=1e-3):
    """Fold BatchNorm into a 1x1 conv given as an (C_in, C_out) matrix."""
    scale = gamma / jnp.sqrt(var + eps)
    return conv_w * scale[None, :], beta - mean * scale


def sppf_reference(x_nchw, w1, b1, w2, b2):
    """Pure-JAX reference (matches the PyTorch SPPF forward with folded BN)."""
    hp = lax.Precision.HIGHEST
    y = jnp.einsum("nchw,cd->ndhw", x_nchw, w1, precision=hp) + b1[None, :, None, None]
    y = _silu_ref(y)

    def mp(t):
        return lax.reduce_window(
            t, -jnp.inf, lax.max,
            window_dimensions=(1, 1, 5, 5), window_strides=(1, 1, 1, 1),
            padding=((0, 0), (0, 0), (2, 2), (2, 2)))

    y1 = mp(y)
    y2 = mp(y1)
    y3 = mp(y2)
    cat = jnp.concatenate([y, y1, y2, y3], axis=1)
    z = jnp.einsum("nchw,cd->ndhw", cat, w2, precision=hp) + b2[None, :, None, None]
    return _silu_ref(z)


if __name__ == "__main__":
    key = jax.random.PRNGKey(0)
    N, C1, H, W = 2, 4, 16, 16
    C2 = 8
    CH = C1 // 2                      # hidden channels c_ = c1 // 2

    ks = jax.random.split(key, 10)
    x = jax.random.normal(ks[0], (N, C1, H, W), dtype=jnp.float32)

    # cv1 / cv2 = 1x1 conv (no bias) + BatchNorm + SiLU; generate params and fold
    # the BN into an affine (weight, bias) pair on the host.
    w1_raw = jax.random.normal(ks[1], (C1, CH), dtype=jnp.float32) * 0.5
    g1 = 1.0 + 0.1 * jax.random.normal(ks[2], (CH,), dtype=jnp.float32)
    be1 = 0.1 * jax.random.normal(ks[3], (CH,), dtype=jnp.float32)
    mu1 = 0.1 * jax.random.normal(ks[4], (CH,), dtype=jnp.float32)
    var1 = jnp.abs(jax.random.normal(ks[5], (CH,), dtype=jnp.float32)) + 0.5

    w2_raw = jax.random.normal(ks[6], (4 * CH, C2), dtype=jnp.float32) * 0.35
    g2 = 1.0 + 0.1 * jax.random.normal(ks[7], (C2,), dtype=jnp.float32)
    be2 = 0.1 * jax.random.normal(ks[8], (C2,), dtype=jnp.float32)
    mu2 = 0.1 * jax.random.normal(ks[9], (C2,), dtype=jnp.float32)
    var2 = jnp.ones((C2,), dtype=jnp.float32)

    w1, b1 = _fold_bn(w1_raw, g1, be1, mu1, var1)
    w2, b2 = _fold_bn(w2_raw, g2, be2, mu2, var2)

    y = jax.jit(sppf_pallas)(x, w1, b1, w2, b2)
    jax.block_until_ready(y)

    y_ref = sppf_reference(x, w1, b1, w2, b2)
    assert y.shape == (N, C2, H, W)
    assert y.dtype == x.dtype
    # Tolerance covers bf16 MXU operands + approximate EUP reciprocal in SiLU;
    # the pooling and boundary handling are exact.
    err = float(jnp.max(jnp.abs(y - y_ref)))
    assert jnp.allclose(y, y_ref, rtol=3e-2, atol=3e-2), f"max abs err {err}"
    print("KERNEL_OK")
</pallas_src>

<mosaic_0001>
module attributes {stable_mosaic.version = 11 : i64} {
  func.func @_sppf_kernel(%arg0: i32, %arg1: memref<1x256x4xf32, #tpu.memory_space<vmem>>, %arg2: memref<4x128xbf16, #tpu.memory_space<vmem>>, %arg3: memref<1x128xf32, #tpu.memory_space<vmem>>, %arg4: memref<4x128x128xbf16, #tpu.memory_space<vmem>>, %arg5: memref<1x128xf32, #tpu.memory_space<vmem>>, %arg6: memref<1x256x128xf32, #tpu.memory_space<vmem>>) attributes {dimension_semantics = [#tpu.dimension_semantics<parallel>], iteration_bounds = array<i64: 2>, scalar_prefetch = 0 : i64, scratch_operands = 0 : i64, tpu.core_type = #tpu.core_type<tc>, window_params = [{transform_indices = @transform_0, window_bounds = array<i64: 1, 256, 4>}, {pipeline_mode = #tpu.pipeline_mode<synchronous>, transform_indices = @transform_1, window_bounds = array<i64: 4, 128>}, {pipeline_mode = #tpu.pipeline_mode<synchronous>, transform_indices = @transform_2, window_bounds = array<i64: 1, 128>}, {pipeline_mode = #tpu.pipeline_mode<synchronous>, transform_indices = @transform_3, window_bounds = array<i64: 4, 128, 128>}, {pipeline_mode = #tpu.pipeline_mode<synchronous>, transform_indices = @transform_4, window_bounds = array<i64: 1, 128>}, {transform_indices = @transform_5, window_bounds = array<i64: 1, 256, 128>}]} {
    %c0 = arith.constant 0 : index
    %c0_0 = arith.constant 0 : index
    %c0_1 = arith.constant 0 : index
    %0 = vector.load %arg1[%c0, %c0_0, %c0_1] : memref<1x256x4xf32, #tpu.memory_space<vmem>>, vector<1x256x4xf32>
    %1 = vector.shape_cast %0 : vector<1x256x4xf32> to vector<256x4xf32>
    %2 = arith.truncf %1 : vector<256x4xf32> to vector<256x4xbf16>
    %c0_2 = arith.constant 0 : index
    %c0_3 = arith.constant 0 : index
    %3 = vector.load %arg2[%c0_2, %c0_3] : memref<4x128xbf16, #tpu.memory_space<vmem>>, vector<4x128xbf16>
    %cst = arith.constant dense<0.000000e+00> : vector<256x128xf32>
    %4 = tpu.matmul %2, %3, %cst {dimension_numbers = #tpu.dot_dimension_numbers<[1], [0], [0], [1], [0, 0, 1, 1], [], []>} : vector<256x4xbf16>, vector<4x128xbf16>, vector<256x128xf32> -> vector<256x128xf32>
    %c0_4 = arith.constant 0 : index
    %c0_5 = arith.constant 0 : index
    %5 = vector.load %arg3[%c0_4, %c0_5] : memref<1x128xf32, #tpu.memory_space<vmem>>, vector<1x128xf32>
    %6 = vector.broadcast %5 : vector<1x128xf32> to vector<256x128xf32>
    %7 = arith.addf %4, %6 : vector<256x128xf32>
    %cst_6 = arith.constant 0.000000e+00 : f32
    %8 = vector.broadcast %cst_6 : f32 to vector<256x128xf32>
    %9 = arith.subf %8, %7 : vector<256x128xf32>
    %10 = math.exp %9 : vector<256x128xf32>
    %cst_7 = arith.constant 1.000000e+00 : f32
    %11 = vector.broadcast %cst_7 : f32 to vector<256x128xf32>
    %12 = arith.addf %11, %10 : vector<256x128xf32>
    %13 = tpu.reciprocal %12 {approx = true} : vector<256x128xf32> -> vector<256x128xf32>
    %14 = arith.mulf %7, %13 : vector<256x128xf32>
    %15 = tpu.iota {dimensions = array<i32: 0>} : vector<256x1xi32>
    %c16_i32 = arith.constant 16 : i32
    %c0_i32 = arith.constant 0 : i32
    %16 = arith.cmpi eq, %c16_i32, %c0_i32 : i32
    %c1_i32 = arith.constant 1 : i32
    %17 = arith.select %16, %c1_i32, %c16_i32 : i32
    %18 = vector.broadcast %17 : i32 to vector<256x1xi32>
    %19 = arith.remsi %15, %18 : vector<256x1xi32>
    %c0_i32_8 = arith.constant 0 : i32
    %20 = vector.broadcast %c0_i32_8 : i32 to vector<256x1xi32>
    %21 = arith.cmpi ne, %19, %20 : vector<256x1xi32>
    %c0_i32_9 = arith.constant 0 : i32
    %22 = vector.broadcast %c0_i32_9 : i32 to vector<256x1xi32>
    %23 = arith.cmpi slt, %19, %22 : vector<256x1xi32>
    %c0_i32_10 = arith.constant 0 : i32
    %24 = arith.cmpi slt, %17, %c0_i32_10 : i32
    %25 = vector.broadcast %24 : i1 to vector<256x1xi1>
    %26 = vector.broadcast %25 : vector<256x1xi1> to vector<256x1xi1>
    %27 = arith.xori %23, %26 : vector<256x1xi1>
    %28 = arith.andi %27, %21 : vector<256x1xi1>
    %29 = vector.broadcast %17 : i32 to vector<256x1xi32>
    %30 = arith.addi %19, %29 : vector<256x1xi32>
    %31 = arith.select %28, %30, %19 : vector<256x1xi1>, vector<256x1xi32>
    %c15_i32 = arith.constant 15 : i32
    %32 = vector.broadcast %c15_i32 : i32 to vector<256x1xi32>
    %33 = arith.cmpi slt, %31, %32 : vector<256x1xi32>
    %c14_i32 = arith.constant 14 : i32
    %34 = vector.broadcast %c14_i32 : i32 to vector<256x1xi32>
    %35 = arith.cmpi slt, %31, %34 : vector<256x1xi32>
    %c1_i32_11 = arith.constant 1 : i32
    %36 = vector.broadcast %c1_i32_11 : i32 to vector<256x1xi32>
    %37 = arith.cmpi sge, %31, %36 : vector<256x1xi32>
    %c2_i32 = arith.constant 2 : i32
    %38 = vector.broadcast %c2_i32 : i32 to vector<256x1xi32>
    %39 = arith.cmpi sge, %31, %38 : vector<256x1xi32>
    %c240_i32 = arith.constant 240 : i32
    %40 = vector.broadcast %c240_i32 : i32 to vector<256x1xi32>
    %41 = arith.cmpi slt, %15, %40 : vector<256x1xi32>
    %c224_i32 = arith.constant 224 : i32
    %42 = vector.broadcast %c224_i32 : i32 to vector<256x1xi32>
    %43 = arith.cmpi slt, %15, %42 : vector<256x1xi32>
    %c16_i32_12 = arith.constant 16 : i32
    %44 = vector.broadcast %c16_i32_12 : i32 to vector<256x1xi32>
    %45 = arith.cmpi sge, %15, %44 : vector<256x1xi32>
    %c32_i32 = arith.constant 32 : i32
    %46 = vector.broadcast %c32_i32 : i32 to vector<256x1xi32>
    %47 = arith.cmpi sge, %15, %46 : vector<256x1xi32>
    %c255_i32 = arith.constant 255 : i32
    %48 = tpu.dynamic_rotate %14 by %c255_i32 dim 0 : vector<256x128xf32>, i32 -> vector<256x128xf32>
    %cst_13 = arith.constant -3.40282347E+38 : f32
    %49 = vector.shape_cast %33 : vector<256x1xi1> to vector<256x1xi1>
    %50 = vector.broadcast %49 : vector<256x1xi1> to vector<256x128xi1>
    %51 = vector.broadcast %cst_13 : f32 to vector<256x128xf32>
    %52 = arith.select %50, %48, %51 : vector<256x128xi1>, vector<256x128xf32>
    %c1_i32_14 = arith.constant 1 : i32
    %53 = tpu.dynamic_rotate %14 by %c1_i32_14 dim 0 : vector<256x128xf32>, i32 -> vector<256x128xf32>
    %cst_15 = arith.constant -3.40282347E+38 : f32
    %54 = vector.shape_cast %37 : vector<256x1xi1> to vector<256x1xi1>
    %55 = vector.broadcast %54 : vector<256x1xi1> to vector<256x128xi1>
    %56 = vector.broadcast %cst_15 : f32 to vector<256x128xf32>
    %57 = arith.select %55, %53, %56 : vector<256x128xi1>, vector<256x128xf32>
    %58 = arith.maximumf %52, %57 : vector<256x128xf32>
    %59 = arith.maximumf %14, %58 : vector<256x128xf32>
    %c254_i32 = arith.constant 254 : i32
    %60 = tpu.dynamic_rotate %14 by %c254_i32 dim 0 : vector<256x128xf32>, i32 -> vector<256x128xf32>
    %cst_16 = arith.constant -3.40282347E+38 : f32
    %61 = vector.shape_cast %35 : vector<256x1xi1> to vector<256x1xi1>
    %62 = vector.broadcast %61 : vector<256x1xi1> to vector<256x128xi1>
    %63 = vector.broadcast %cst_16 : f32 to vector<256x128xf32>
    %64 = arith.select %62, %60, %63 : vector<256x128xi1>, vector<256x128xf32>
    %c2_i32_17 = arith.constant 2 : i32
    %65 = tpu.dynamic_rotate %14 by %c2_i32_17 dim 0 : vector<256x128xf32>, i32 -> vector<256x128xf32>
    %cst_18 = arith.constant -3.40282347E+38 : f32
    %66 = vector.shape_cast %39 : vector<256x1xi1> to vector<256x1xi1>
    %67 = vector.broadcast %66 : vector<256x1xi1> to vector<256x128xi1>
    %68 = vector.broadcast %cst_18 : f32 to vector<256x128xf32>
    %69 = arith.select %67, %65, %68 : vector<256x128xi1>, vector<256x128xf32>
    %70 = arith.maximumf %64, %69 : vector<256x128xf32>
    %71 = arith.maximumf %59, %70 : vector<256x128xf32>
    %c240_i32_19 = arith.constant 240 : i32
    %72 = tpu.dynamic_rotate %71 by %c240_i32_19 dim 0 : vector<256x128xf32>, i32 -> vector<256x128xf32>
    %cst_20 = arith.constant -3.40282347E+38 : f32
    %73 = vector.shape_cast %41 : vector<256x1xi1> to vector<256x1xi1>
    %74 = vector.broadcast %73 : vector<256x1xi1> to vector<256x128xi1>
    %75 = vector.broadcast %cst_20 : f32 to vector<256x128xf32>
    %76 = arith.select %74, %72, %75 : vector<256x128xi1>, vector<256x128xf32>
    %c16_i32_21 = arith.constant 16 : i32
    %77 = tpu.dynamic_rotate %71 by %c16_i32_21 dim 0 : vector<256x128xf32>, i32 -> vector<256x128xf32>
    %cst_22 = arith.constant -3.40282347E+38 : f32
    %78 = vector.shape_cast %45 : vector<256x1xi1> to vector<256x1xi1>
    %79 = vector.broadcast %78 : vector<256x1xi1> to vector<256x128xi1>
    %80 = vector.broadcast %cst_22 : f32 to vector<256x128xf32>
    %81 = arith.select %79, %77, %80 : vector<256x128xi1>, vector<256x128xf32>
    %82 = arith.maximumf %76, %81 : vector<256x128xf32>
    %83 = arith.maximumf %71, %82 : vector<256x128xf32>
    %c224_i32_23 = arith.constant 224 : i32
    %84 = tpu.dynamic_rotate %71 by %c224_i32_23 dim 0 : vector<256x128xf32>, i32 -> vector<256x128xf32>
    %cst_24 = arith.constant -3.40282347E+38 : f32
    %85 = vector.shape_cast %43 : vector<256x1xi1> to vector<256x1xi1>
    %86 = vector.broadcast %85 : vector<256x1xi1> to vector<256x128xi1>
    %87 = vector.broadcast %cst_24 : f32 to vector<256x128xf32>
    %88 = arith.select %86, %84, %87 : vector<256x128xi1>, vector<256x128xf32>
    %c32_i32_25 = arith.constant 32 : i32
    %89 = tpu.dynamic_rotate %71 by %c32_i32_25 dim 0 : vector<256x128xf32>, i32 -> vector<256x128xf32>
    %cst_26 = arith.constant -3.40282347E+38 : f32
    %90 = vector.shape_cast %47 : vector<256x1xi1> to vector<256x1xi1>
    %91 = vector.broadcast %90 : vector<256x1xi1> to vector<256x128xi1>
    %92 = vector.broadcast %cst_26 : f32 to vector<256x128xf32>
    %93 = arith.select %91, %89, %92 : vector<256x128xi1>, vector<256x128xf32>
    %94 = arith.maximumf %88, %93 : vector<256x128xf32>
    %95 = arith.maximumf %83, %94 : vector<256x128xf32>
    %c255_i32_27 = arith.constant 255 : i32
    %96 = tpu.dynamic_rotate %95 by %c255_i32_27 dim 0 : vector<256x128xf32>, i32 -> vector<256x128xf32>
    %cst_28 = arith.constant -3.40282347E+38 : f32
    %97 = vector.shape_cast %33 : vector<256x1xi1> to vector<256x1xi1>
    %98 = vector.broadcast %97 : vector<256x1xi1> to vector<256x128xi1>
    %99 = vector.broadcast %cst_28 : f32 to vector<256x128xf32>
    %100 = arith.select %98, %96, %99 : vector<256x128xi1>, vector<256x128xf32>
    %c1_i32_29 = arith.constant 1 : i32
    %101 = tpu.dynamic_rotate %95 by %c1_i32_29 dim 0 : vector<256x128xf32>, i32 -> vector<256x128xf32>
    %cst_30 = arith.constant -3.40282347E+38 : f32
    %102 = vector.shape_cast %37 : vector<256x1xi1> to vector<256x1xi1>
    %103 = vector.broadcast %102 : vector<256x1xi1> to vector<256x128xi1>
    %104 = vector.broadcast %cst_30 : f32 to vector<256x128xf32>
    %105 = arith.select %103, %101, %104 : vector<256x128xi1>, vector<256x128xf32>
    %106 = arith.maximumf %100, %105 : vector<256x128xf32>
    %107 = arith.maximumf %95, %106 : vector<256x128xf32>
    %c254_i32_31 = arith.constant 254 : i32
    %108 = tpu.dynamic_rotate %95 by %c254_i32_31 dim 0 : vector<256x128xf32>, i32 -> vector<256x128xf32>
    %cst_32 = arith.constant -3.40282347E+38 : f32
    %109 = vector.shape_cast %35 : vector<256x1xi1> to vector<256x1xi1>
    %110 = vector.broadcast %109 : vector<256x1xi1> to vector<256x128xi1>
    %111 = vector.broadcast %cst_32 : f32 to vector<256x128xf32>
    %112 = arith.select %110, %108, %111 : vector<256x128xi1>, vector<256x128xf32>
    %c2_i32_33 = arith.constant 2 : i32
    %113 = tpu.dynamic_rotate %95 by %c2_i32_33 dim 0 : vector<256x128xf32>, i32 -> vector<256x128xf32>
    %cst_34 = arith.constant -3.40282347E+38 : f32
    %114 = vector.shape_cast %39 : vector<256x1xi1> to vector<256x1xi1>
    %115 = vector.broadcast %114 : vector<256x1xi1> to vector<256x128xi1>
    %116 = vector.broadcast %cst_34 : f32 to vector<256x128xf32>
    %117 = arith.select %115, %113, %116 : vector<256x128xi1>, vector<256x128xf32>
    %118 = arith.maximumf %112, %117 : vector<256x128xf32>
    %119 = arith.maximumf %107, %118 : vector<256x128xf32>
    %c240_i32_35 = arith.constant 240 : i32
    %120 = tpu.dynamic_rotate %119 by %c240_i32_35 dim 0 : vector<256x128xf32>, i32 -> vector<256x128xf32>
    %cst_36 = arith.constant -3.40282347E+38 : f32
    %121 = vector.shape_cast %41 : vector<256x1xi1> to vector<256x1xi1>
    %122 = vector.broadcast %121 : vector<256x1xi1> to vector<256x128xi1>
    %123 = vector.broadcast %cst_36 : f32 to vector<256x128xf32>
    %124 = arith.select %122, %120, %123 : vector<256x128xi1>, vector<256x128xf32>
    %c16_i32_37 = arith.constant 16 : i32
    %125 = tpu.dynamic_rotate %119 by %c16_i32_37 dim 0 : vector<256x128xf32>, i32 -> vector<256x128xf32>
    %cst_38 = arith.constant -3.40282347E+38 : f32
    %126 = vector.shape_cast %45 : vector<256x1xi1> to vector<256x1xi1>
    %127 = vector.broadcast %126 : vector<256x1xi1> to vector<256x128xi1>
    %128 = vector.broadcast %cst_38 : f32 to vector<256x128xf32>
    %129 = arith.select %127, %125, %128 : vector<256x128xi1>, vector<256x128xf32>
    %130 = arith.maximumf %124, %129 : vector<256x128xf32>
    %131 = arith.maximumf %119, %130 : vector<256x128xf32>
    %c224_i32_39 = arith.constant 224 : i32
    %132 = tpu.dynamic_rotate %119 by %c224_i32_39 dim 0 : vector<256x128xf32>, i32 -> vector<256x128xf32>
    %cst_40 = arith.constant -3.40282347E+38 : f32
    %133 = vector.shape_cast %43 : vector<256x1xi1> to vector<256x1xi1>
    %134 = vector.broadcast %133 : vector<256x1xi1> to vector<256x128xi1>
    %135 = vector.broadcast %cst_40 : f32 to vector<256x128xf32>
    %136 = arith.select %134, %132, %135 : vector<256x128xi1>, vector<256x128xf32>
    %c32_i32_41 = arith.constant 32 : i32
    %137 = tpu.dynamic_rotate %119 by %c32_i32_41 dim 0 : vector<256x128xf32>, i32 -> vector<256x128xf32>
    %cst_42 = arith.constant -3.40282347E+38 : f32
    %138 = vector.shape_cast %47 : vector<256x1xi1> to vector<256x1xi1>
    %139 = vector.broadcast %138 : vector<256x1xi1> to vector<256x128xi1>
    %140 = vector.broadcast %cst_42 : f32 to vector<256x128xf32>
    %141 = arith.select %139, %137, %140 : vector<256x128xi1>, vector<256x128xf32>
    %142 = arith.maximumf %136, %141 : vector<256x128xf32>
    %143 = arith.maximumf %131, %142 : vector<256x128xf32>
    %c255_i32_43 = arith.constant 255 : i32
    %144 = tpu.dynamic_rotate %143 by %c255_i32_43 dim 0 : vector<256x128xf32>, i32 -> vector<256x128xf32>
    %cst_44 = arith.constant -3.40282347E+38 : f32
    %145 = vector.shape_cast %33 : vector<256x1xi1> to vector<256x1xi1>
    %146 = vector.broadcast %145 : vector<256x1xi1> to vector<256x128xi1>
    %147 = vector.broadcast %cst_44 : f32 to vector<256x128xf32>
    %148 = arith.select %146, %144, %147 : vector<256x128xi1>, vector<256x128xf32>
    %c1_i32_45 = arith.constant 1 : i32
    %149 = tpu.dynamic_rotate %143 by %c1_i32_45 dim 0 : vector<256x128xf32>, i32 -> vector<256x128xf32>
    %cst_46 = arith.constant -3.40282347E+38 : f32
    %150 = vector.shape_cast %37 : vector<256x1xi1> to vector<256x1xi1>
    %151 = vector.broadcast %150 : vector<256x1xi1> to vector<256x128xi1>
    %152 = vector.broadcast %cst_46 : f32 to vector<256x128xf32>
    %153 = arith.select %151, %149, %152 : vector<256x128xi1>, vector<256x128xf32>
    %154 = arith.maximumf %148, %153 : vector<256x128xf32>
    %155 = arith.maximumf %143, %154 : vector<256x128xf32>
    %c254_i32_47 = arith.constant 254 : i32
    %156 = tpu.dynamic_rotate %143 by %c254_i32_47 dim 0 : vector<256x128xf32>, i32 -> vector<256x128xf32>
    %cst_48 = arith.constant -3.40282347E+38 : f32
    %157 = vector.shape_cast %35 : vector<256x1xi1> to vector<256x1xi1>
    %158 = vector.broadcast %157 : vector<256x1xi1> to vector<256x128xi1>
    %159 = vector.broadcast %cst_48 : f32 to vector<256x128xf32>
    %160 = arith.select %158, %156, %159 : vector<256x128xi1>, vector<256x128xf32>
    %c2_i32_49 = arith.constant 2 : i32
    %161 = tpu.dynamic_rotate %143 by %c2_i32_49 dim 0 : vector<256x128xf32>, i32 -> vector<256x128xf32>
    %cst_50 = arith.constant -3.40282347E+38 : f32
    %162 = vector.shape_cast %39 : vector<256x1xi1> to vector<256x1xi1>
    %163 = vector.broadcast %162 : vector<256x1xi1> to vector<256x128xi1>
    %164 = vector.broadcast %cst_50 : f32 to vector<256x128xf32>
    %165 = arith.select %163, %161, %164 : vector<256x128xi1>, vector<256x128xf32>
    %166 = arith.maximumf %160, %165 : vector<256x128xf32>
    %167 = arith.maximumf %155, %166 : vector<256x128xf32>
    %c240_i32_51 = arith.constant 240 : i32
    %168 = tpu.dynamic_rotate %167 by %c240_i32_51 dim 0 : vector<256x128xf32>, i32 -> vector<256x128xf32>
    %cst_52 = arith.constant -3.40282347E+38 : f32
    %169 = vector.shape_cast %41 : vector<256x1xi1> to vector<256x1xi1>
    %170 = vector.broadcast %169 : vector<256x1xi1> to vector<256x128xi1>
    %171 = vector.broadcast %cst_52 : f32 to vector<256x128xf32>
    %172 = arith.select %170, %168, %171 : vector<256x128xi1>, vector<256x128xf32>
    %c16_i32_53 = arith.constant 16 : i32
    %173 = tpu.dynamic_rotate %167 by %c16_i32_53 dim 0 : vector<256x128xf32>, i32 -> vector<256x128xf32>
    %cst_54 = arith.constant -3.40282347E+38 : f32
    %174 = vector.shape_cast %45 : vector<256x1xi1> to vector<256x1xi1>
    %175 = vector.broadcast %174 : vector<256x1xi1> to vector<256x128xi1>
    %176 = vector.broadcast %cst_54 : f32 to vector<256x128xf32>
    %177 = arith.select %175, %173, %176 : vector<256x128xi1>, vector<256x128xf32>
    %178 = arith.maximumf %172, %177 : vector<256x128xf32>
    %179 = arith.maximumf %167, %178 : vector<256x128xf32>
    %c224_i32_55 = arith.constant 224 : i32
    %180 = tpu.dynamic_rotate %167 by %c224_i32_55 dim 0 : vector<256x128xf32>, i32 -> vector<256x128xf32>
    %cst_56 = arith.constant -3.40282347E+38 : f32
    %181 = vector.shape_cast %43 : vector<256x1xi1> to vector<256x1xi1>
    %182 = vector.broadcast %181 : vector<256x1xi1> to vector<256x128xi1>
    %183 = vector.broadcast %cst_56 : f32 to vector<256x128xf32>
    %184 = arith.select %182, %180, %183 : vector<256x128xi1>, vector<256x128xf32>
    %c32_i32_57 = arith.constant 32 : i32
    %185 = tpu.dynamic_rotate %167 by %c32_i32_57 dim 0 : vector<256x128xf32>, i32 -> vector<256x128xf32>
    %cst_58 = arith.constant -3.40282347E+38 : f32
    %186 = vector.shape_cast %47 : vector<256x1xi1> to vector<256x1xi1>
    %187 = vector.broadcast %186 : vector<256x1xi1> to vector<256x128xi1>
    %188 = vector.broadcast %cst_58 : f32 to vector<256x128xf32>
    %189 = arith.select %187, %185, %188 : vector<256x128xi1>, vector<256x128xf32>
    %190 = arith.maximumf %184, %189 : vector<256x128xf32>
    %191 = arith.maximumf %179, %190 : vector<256x128xf32>
    %192 = arith.truncf %14 : vector<256x128xf32> to vector<256x128xbf16>
    %c0_59 = arith.constant 0 : index
    %c0_60 = arith.constant 0 : index
    %c0_61 = arith.constant 0 : index
    %193 = vector.load %arg4[%c0_59, %c0_60, %c0_61] : memref<4x128x128xbf16, #tpu.memory_space<vmem>>, vector<1x128x128xbf16>
    %194 = vector.shape_cast %193 : vector<1x128x128xbf16> to vector<128x128xbf16>
    %cst_62 = arith.constant dense<0.000000e+00> : vector<256x128xf32>
    %195 = tpu.matmul %192, %194, %cst_62 {dimension_numbers = #tpu.dot_dimension_numbers<[1], [0], [0], [1], [0, 0, 1, 1], [], []>} : vector<256x128xbf16>, vector<128x128xbf16>, vector<256x128xf32> -> vector<256x128xf32>
    %196 = arith.truncf %95 : vector<256x128xf32> to vector<256x128xbf16>
    %c1 = arith.constant 1 : index
    %c0_63 = arith.constant 0 : index
    %c0_64 = arith.constant 0 : index
    %197 = vector.load %arg4[%c1, %c0_63, %c0_64] : memref<4x128x128xbf16, #tpu.memory_space<vmem>>, vector<1x128x128xbf16>
    %198 = vector.shape_cast %197 : vector<1x128x128xbf16> to vector<128x128xbf16>
    %cst_65 = arith.constant dense<0.000000e+00> : vector<256x128xf32>
    %199 = tpu.matmul %196, %198, %cst_65 {dimension_numbers = #tpu.dot_dimension_numbers<[1], [0], [0], [1], [0, 0, 1, 1], [], []>} : vector<256x128xbf16>, vector<128x128xbf16>, vector<256x128xf32> -> vector<256x128xf32>
    %200 = arith.addf %195, %199 : vector<256x128xf32>
    %201 = arith.truncf %143 : vector<256x128xf32> to vector<256x128xbf16>
    %c2 = arith.constant 2 : index
    %c0_66 = arith.constant 0 : index
    %c0_67 = arith.constant 0 : index
    %202 = vector.load %arg4[%c2, %c0_66, %c0_67] : memref<4x128x128xbf16, #tpu.memory_space<vmem>>, vector<1x128x128xbf16>
    %203 = vector.shape_cast %202 : vector<1x128x128xbf16> to vector<128x128xbf16>
    %cst_68 = arith.constant dense<0.000000e+00> : vector<256x128xf32>
    %204 = tpu.matmul %201, %203, %cst_68 {dimension_numbers = #tpu.dot_dimension_numbers<[1], [0], [0], [1], [0, 0, 1, 1], [], []>} : vector<256x128xbf16>, vector<128x128xbf16>, vector<256x128xf32> -> vector<256x128xf32>
    %205 = arith.addf %200, %204 : vector<256x128xf32>
    %206 = arith.truncf %191 : vector<256x128xf32> to vector<256x128xbf16>
    %c3 = arith.constant 3 : index
    %c0_69 = arith.constant 0 : index
    %c0_70 = arith.constant 0 : index
    %207 = vector.load %arg4[%c3, %c0_69, %c0_70] : memref<4x128x128xbf16, #tpu.memory_space<vmem>>, vector<1x128x128xbf16>
    %208 = vector.shape_cast %207 : vector<1x128x128xbf16> to vector<128x128xbf16>
    %cst_71 = arith.constant dense<0.000000e+00> : vector<256x128xf32>
    %209 = tpu.matmul %206, %208, %cst_71 {dimension_numbers = #tpu.dot_dimension_numbers<[1], [0], [0], [1], [0, 0, 1, 1], [], []>} : vector<256x128xbf16>, vector<128x128xbf16>, vector<256x128xf32> -> vector<256x128xf32>
    %210 = arith.addf %205, %209 : vector<256x128xf32>
    %c0_72 = arith.constant 0 : index
    %c0_73 = arith.constant 0 : index
    %211 = vector.load %arg5[%c0_72, %c0_73] : memref<1x128xf32, #tpu.memory_space<vmem>>, vector<1x128xf32>
    %212 = vector.broadcast %211 : vector<1x128xf32> to vector<256x128xf32>
    %213 = arith.addf %210, %212 : vector<256x128xf32>
    %cst_74 = arith.constant 0.000000e+00 : f32
    %214 = vector.broadcast %cst_74 : f32 to vector<256x128xf32>
    %215 = arith.subf %214, %213 : vector<256x128xf32>
    %216 = math.exp %215 : vector<256x128xf32>
    %cst_75 = arith.constant 1.000000e+00 : f32
    %217 = vector.broadcast %cst_75 : f32 to vector<256x128xf32>
    %218 = arith.addf %217, %216 : vector<256x128xf32>
    %219 = tpu.reciprocal %218 {approx = true} : vector<256x128xf32> -> vector<256x128xf32>
    %220 = arith.mulf %213, %219 : vector<256x128xf32>
    %c0_76 = arith.constant 0 : index
    %c0_77 = arith.constant 0 : index
    %c0_78 = arith.constant 0 : index
    %221 = vector.load %arg6[%c0_76, %c0_77, %c0_78] : memref<1x256x128xf32, #tpu.memory_space<vmem>>, vector<1x256x128xf32>
    %222 = vector.shape_cast %221 : vector<1x256x128xf32> to vector<256x128xf32>
    %223 = vector.shape_cast %220 : vector<256x128xf32> to vector<1x256x128xf32>
    tpu.vector_store %arg6[%c0_76, %c0_77, %c0_78], %223 {strides = array<i32>} : memref<1x256x128xf32, #tpu.memory_space<vmem>>, vector<1x256x128xf32>,
    return
  }
  func.func @transform_0(%arg0: i32) -> (i32, i32, i32) {
    %c0_i32 = arith.constant 0 : i32
    %c0_i32_0 = arith.constant 0 : i32
    %c0_i32_1 = arith.constant 0 : i32
    return %arg0, %c0_i32, %c0_i32_0 : i32, i32, i32
  }
  func.func @transform_1(%arg0: i32) -> (i32, i32) {
    %c0_i32 = arith.constant 0 : i32
    %c0_i32_0 = arith.constant 0 : i32
    %c0_i32_1 = arith.constant 0 : i32
    return %c0_i32, %c0_i32_0 : i32, i32
  }
  func.func @transform_2(%arg0: i32) -> (i32, i32) {
    %c0_i32 = arith.constant 0 : i32
    %c0_i32_0 = arith.constant 0 : i32
    %c0_i32_1 = arith.constant 0 : i32
    return %c0_i32, %c0_i32_0 : i32, i32
  }
  func.func @transform_3(%arg0: i32) -> (i32, i32, i32) {
    %c0_i32 = arith.constant 0 : i32
    %c0_i32_0 = arith.constant 0 : i32
    %c0_i32_1 = arith.constant 0 : i32
    %c0_i32_2 = arith.constant 0 : i32
    return %c0_i32, %c0_i32_0, %c0_i32_1 : i32, i32, i32
  }
  func.func @transform_4(%arg0: i32) -> (i32, i32) {
    %c0_i32 = arith.constant 0 : i32
    %c0_i32_0 = arith.constant 0 : i32
    %c0_i32_1 = arith.constant 0 : i32
    return %c0_i32, %c0_i32_0 : i32, i32
  }
  func.func @transform_5(%arg0: i32) -> (i32, i32, i32) {
    %c0_i32 = arith.constant 0 : i32
    %c0_i32_0 = arith.constant 0 : i32
    %c0_i32_1 = arith.constant 0 : i32
    return %arg0, %c0_i32, %c0_i32_0 : i32, i32, i32
  }
}

</mosaic_0001>

<bundles_post_ra>
// kernel: sppf_pallas.1
= control target key start
LH: loop header
LB: loop body
LE: loop exit
PB: predicated region body
PF: predicated region fallthrough
CT: control target
= control target key end

     0   :  { %s5718_s18 = smov 0   ;;  %s10547_s0 = inlined_call_operand.vmem [shape: f32[2,256,4], index: 0, kind: input, shape index: {}]   ;;  %s10548_s1 = inlined_call_operand.vmem [shape: bf16[4,128], index: 1, kind: input, shape index: {}]   ;;  %s10549_s2 = inlined_call_operand.vmem [shape: f32[1,128], index: 2, kind: input, shape index: {}]   ;;  %s10550_s3 = inlined_call_operand.vmem [shape: bf16[4,128,128], index: 3, kind: input, shape index: {}]   ;;  %s10551_s4 = inlined_call_operand.vmem [shape: f32[1,128], index: 4, kind: input, shape index: {}]   ;;  %s10552_s5 = inlined_call_operand.vmem [shape: f32[2,256,128], index: 5, kind: output, shape index: {}]  }
   0x1 LB: > { %s5164_s19 = sadd.s32 4294967295, %s5686_s18   ;;  %p5168_p0 = scmp.ge.s32.totalorder %s5686_s18, 1  ;;  %s5686_s18 = sphi %s5718_s18, %s15_s18  }
   0x2   : > { %p187_p1 = scmp.lt.s32.totalorder %s5686_s18, 3 }
   0x4   : > { %p188_p2 = pnand %p5168_p0, %p187_p1 }
   0x6   : > { %191 = sbr.rel (%p188_p2) target bundleno = 1062 (0x426), region = 40 }
   0xb   : > { %v274_v0 = vld [vmem:[%s10548_s1] sm:$0x3]  ;;  %vm328_vm0 = vcmask 1041408   ;;  %p215_p3 = scmp.lt.s32.totalorder %s5164_s19, 1  ;;  %vm279_vm1 = vcmask 31744   ;;  %v5376_v50 = vld [vmem:[%s10550_s3 + $0x38] sm:$0xff] }
   0xc   : > { %v330_v1 = vsel %vm328_vm0, %v274_v0, 0  ;;  %v5375_v51 = vld [vmem:[%s10550_s3 + $0x30] sm:$0xff]  ;;  %v5374_v52 = vld [vmem:[%s10550_s3 + $0x28] sm:$0xff]  ;;  %v5373_v53 = vld [vmem:[%s10550_s3 + $0x20] sm:$0xff] }
   0xd   : > { %339 = vmatpush.bf16.msra.mxu0 %v330_v1  ;;  %5401 = vmatpush.bf16.msra.mxu1 %v330_v1  ;;  %s12234_s19 = smov (!%p215_p3, %s5164_s19), 1  ;;  %v5372_v54 = vld [vmem:[%s10550_s3 + $0x18] sm:$0xff]  ;;  %v5805_v56 = vld [vmem:[%s10549_s2] ss:$0 sm:$0xff] }
   0xe   : > { %5402 = vmatpush.bf16.msra.mxu2 %v330_v1  ;;  %5403 = vmatpush.bf16.msra.mxu3 %v330_v1  ;;  %s5367_s22 = sshll.u32 %s12234_s19, 8 }
   0xf   : > { %s5737_s25 = scalar_lea.vmem %s10547_s0, %s5367_s22  ;;  %s10110_s7 = scalar_lea.vmem %s10552_s5, %s5367_s22 }
  0x10   : > { %v226_v2 = vld [vmem:[%s5737_s25] sm:$0xff]  ;;  %v227_v3 = vld [vmem:[%s5737_s25 + $0x8] sm:$0xff]  ;;  %v236_v4 = vld [vmem:[%s5737_s25 + $0x50] sm:$0xff] }
  0x11   : > { %v258_v5 = vpack.c.bf16 %v227_v3, %v226_v2  ;;  %v237_v6 = vld [vmem:[%s5737_s25 + $0x58] sm:$0xff]  ;;  %v246_v7 = vld [vmem:[%s5737_s25 + $0xa0] sm:$0xff]  ;;  %v247_v8 = vld [vmem:[%s5737_s25 + $0xa8] sm:$0xff] }
  0x12   : > { %v263_v9 = vpack.c.bf16 %v237_v6, %v236_v4  ;;  %v268_v10 = vpack.c.bf16 %v247_v8, %v246_v7  ;;  %v250_v11 = vld [vmem:[%s5737_s25 + $0xc0] sm:$0xff]  ;;  %v251_v12 = vld [vmem:[%s5737_s25 + $0xc8] sm:$0xff]  ;;  %v228_v14 = vld [vmem:[%s5737_s25 + $0x10] sm:$0xff]  ;;  %4356 = vmatpush.bf16.msrb.mxu2 %v5376_v50 }
  0x13   : > { %5173 = vmatmul.msk.bf16.vlgmr.msra.gmra.mxu0 %vm279_vm1, %v258_v5  ;;  %v270_v13 = vpack.c.bf16 %v251_v12, %v250_v11  ;;  %v229_v15 = vld [vmem:[%s5737_s25 + $0x18] sm:$0xff]  ;;  %v238_v16 = vld [vmem:[%s5737_s25 + $0x60] sm:$0xff]  ;;  %v239_v17 = vld [vmem:[%s5737_s25 + $0x68] sm:$0xff] }
  0x14   : > { %5178 = vmatmul.msk.bf16.vlgmr.msra.gmra.mxu1 %vm279_vm1, %v263_v9  ;;  %5183 = vmatmul.msk.bf16.vlgmr.msra.gmra.mxu2 %vm279_vm1, %v268_v10  ;;  %v248_v18 = vld [vmem:[%s5737_s25 + $0xb0] sm:$0xff]  ;;  %v249_v19 = vld [vmem:[%s5737_s25 + $0xb8] sm:$0xff]  ;;  %v259_v22 = vpack.c.bf16 %v229_v15, %v228_v14  ;;  %v264_v23 = vpack.c.bf16 %v239_v17, %v238_v16  ;;  %v230_v26 = vld [vmem:[%s5737_s25 + $0x20] sm:$0xff] }
  0x15   : > { %5185 = vmatmul.msk.bf16.vlgmr.msra.gmra.mxu3 %vm279_vm1, %v270_v13  ;;  %v252_v20 = vld [vmem:[%s5737_s25 + $0xd0] sm:$0xff]  ;;  %v253_v21 = vld [vmem:[%s5737_s25 + $0xd8] sm:$0xff]  ;;  %v269_v24 = vpack.c.bf16 %v249_v19, %v248_v18  ;;  %v231_v27 = vld [vmem:[%s5737_s25 + $0x28] sm:$0xff] }
  0x16   : > { %v271_v25 = vpack.c.bf16 %v253_v21, %v252_v20  ;;  %v240_v28 = vld [vmem:[%s5737_s25 + $0x70] sm:$0xff]  ;;  %v241_v29 = vld [vmem:[%s5737_s25 + $0x78] sm:$0xff]  ;;  %v254_v30 = vld [vmem:[%s5737_s25 + $0xe0] sm:$0xff]  ;;  %v260_v32 = vpack.c.bf16 %v231_v27, %v230_v26  ;;  %4357 = vmatpush.bf16.msrb.mxu2 %v5375_v51 }
  0x17   : > { %v255_v31 = vld [vmem:[%s5737_s25 + $0xe8] sm:$0xff]  ;;  %v265_v33 = vpack.c.bf16 %v241_v29, %v240_v28  ;;  %v232_v35 = vld [vmem:[%s5737_s25 + $0x30] sm:$0xff]  ;;  %v233_v36 = vld [vmem:[%s5737_s25 + $0x38] sm:$0xff] }
  0x18   : > { %v272_v34 = vpack.c.bf16 %v255_v31, %v254_v30  ;;  %v242_v37 = vld [vmem:[%s5737_s25 + $0x80] sm:$0xff]  ;;  %v243_v38 = vld [vmem:[%s5737_s25 + $0x88] sm:$0xff]  ;;  %v256_v39 = vld [vmem:[%s5737_s25 + $0xf0] sm:$0xff]  ;;  %v261_v41 = vpack.c.bf16 %v233_v36, %v232_v35 }
  0x19   : > { %v257_v40 = vld [vmem:[%s5737_s25 + $0xf8] sm:$0xff]  ;;  %v266_v42 = vpack.c.bf16 %v243_v38, %v242_v37  ;;  %v234_v44 = vld [vmem:[%s5737_s25 + $0x40] sm:$0xff]  ;;  %v235_v45 = vld [vmem:[%s5737_s25 + $0x48] sm:$0xff] }
  0x1a   : > { %v273_v43 = vpack.c.bf16 %v257_v40, %v256_v39  ;;  %v244_v46 = vld [vmem:[%s5737_s25 + $0x90] sm:$0xff]  ;;  %v245_v47 = vld [vmem:[%s5737_s25 + $0x98] sm:$0xff]  ;;  %v262_v48 = vpack.c.bf16 %v235_v45, %v234_v44  ;;  %4358 = vmatpush.bf16.msrb.mxu2 %v5374_v52  ;;  %v5370_v28 = vld [vmem:[%s10550_s3 + $0x8] sm:$0xff]  ;;  %v613_v40 = vlaneseq }
  0x1b   : > { %v267_v49 = vpack.c.bf16 %v245_v47, %v244_v46  ;;  %v5371_v20 = vld [vmem:[%s10550_s3 + $0x10] sm:$0xff] }
  0x1e   : > { %4359 = vmatpush.bf16.msrb.mxu2 %v5373_v53 }
  0x22   : > { %4360 = vmatpush.bf16.msrb.mxu2 %v5372_v54 }
  0x23   : > { %5174 = vmatmul.msk.bf16.gmra.mxu0 %vm279_vm1, %v259_v22 }
  0x24   : > { %5179 = vmatmul.msk.bf16.gmra.mxu1 %vm279_vm1, %v264_v23  ;;  %5184 = vmatmul.msk.bf16.gmra.mxu2 %vm279_vm1, %v269_v24 }
  0x25   : > { %5186 = vmatmul.msk.bf16.gmra.mxu3 %vm279_vm1, %v271_v25 }
  0x26   : > { %4361 = vmatpush.bf16.msrb.mxu2 %v5371_v20 }
  0x2a   : > { %4362 = vmatpush.bf16.msrb.mxu2 %v5370_v28 }
  0x33   : > { %5175 = vmatmul.msk.bf16.gmra.mxu0 %vm279_vm1, %v260_v32 }
  0x34   : > { %5180 = vmatmul.msk.bf16.gmra.mxu1 %vm279_vm1, %v265_v33 }
  0x35   : > { %5187 = vmatmul.msk.bf16.gmra.mxu3 %vm279_vm1, %v272_v34 }
  0x43   : > { %5176 = vmatmul.msk.bf16.gmra.mxu0 %vm279_vm1, %v261_v41 }
  0x44   : > { %5181 = vmatmul.msk.bf16.gmra.mxu1 %vm279_vm1, %v266_v42 }
  0x45   : > { %5188 = vmatmul.msk.bf16.gmra.mxu3 %vm279_vm1, %v273_v43 }
  0x53   : > { %5177 = vmatmul.msk.bf16.gmra.mxu0 %vm279_vm1, %v262_v48  ;;  %v5856_v48 = vshrl.u32 %v613_v40, 7 }
  0x54   : > { %5182 = vmatmul.msk.bf16.gmra.mxu1 %vm279_vm1, %v267_v49 }
  0x55   : > { %v5860_v54 = vadd.s32 8, %v5856_v48  ;;  %vm10593_vm2 = vcmp.lt.s32.totalorder %v5856_v48, 7  ;;  %vm10598_vm3 = vcmp.lt.s32.totalorder %v5856_v48, 1  ;;  %vm10601_vm4 = vcmp.lt.s32.totalorder %v5856_v48, 6 }
  0x56   : > { %vm10592_vm5 = vcmp.lt.s32.totalorder %v5856_v48, 2 }
  0x90   : > { %v341_v55 = vpop.f32.mrf.mxu0 }
  0x91   : > { %v366_v57 = vpop.f32.mrf.mxu1  ;;  %v5808_v58 = vadd.f32 %v5805_v56, %v341_v55 }
  0x92   : > { %v5811_v59 = vadd.f32 %v5805_v56, %v366_v57 }
  0x93   : > { %v421_v62 = vsub.f32 0.0, %v5808_v58 }
  0x94   : > { %v431_v1 = vsub.f32 0.0, %v5811_v59 }
  0x95   : > { %v453_v3 = vmul.f32 1.442695, %v421_v62 }
  0x96   : > { %v473_v8 = vmul.f32 1.442695, %v431_v1 }
  0x97   : > { %v391_v60 = vpop.f32.mrf.mxu2  ;;  %5422 = vpow2.f32 %v453_v3 }
  0x98   : > { %v401_v61 = vpop.f32.mrf.mxu3  ;;  %v5815_v63 = vadd.f32 %v5805_v56, %v391_v60  ;;  %v343_v0 = vpop.f32.mrf.mxu0  ;;  %5424 = vpow2.f32 %v473_v8  ;;  %v5866_v60 = vadd.s32 16, %v5856_v48  ;;  %v657_v8 = vand.u32 15, %v5860_v54 }
  0x99   : > { %v5819_v2 = vadd.f32 %v5805_v56, %v401_v61  ;;  %v5823_v5 = vadd.f32 %v5805_v56, %v343_v0  ;;  %v368_v6 = vpop.f32.mrf.mxu1  ;;  %v11016_v54 = vmov 0 }
  0x9a   : > { %v441_v4 = vsub.f32 0.0, %v5815_v63  ;;  %v5826_v7 = vadd.f32 %v5805_v56, %v368_v6  ;;  %vm6011_vm6 = vcmp.lt.s32.totalorder %v657_v8, 15  ;;  %vm6057_vm7 = vcmp.lt.s32.totalorder %v657_v8, 14 }
  0x9b   : > { %v445_v9 = vsub.f32 0.0, %v5819_v2  ;;  %v422_v11 = vsub.f32 0.0, %v5823_v5 }
  0x9c   : > { %v493_v10 = vmul.f32 1.442695, %v441_v4  ;;  %v432_v12 = vsub.f32 0.0, %v5826_v7 }
  0x9d   : > { %v501_v16 = vmul.f32 1.442695, %v445_v9  ;;  %v455_v18 = vmul.f32 1.442695, %v422_v11  ;;  %v5423_v22 = vpop.eup %5422  ;;  %v664_v11 = vand.u32 15, %v5866_v60 }
  0x9e   : > { %5426 = vpow2.f32 %v493_v10  ;;  %v475_v21 = vmul.f32 1.442695, %v432_v12  ;;  %v5425_v25 = vpop.eup %5424  ;;  %v517_v29 = vadd.f32 1.0, %v5423_v22  ;;  %v5878_v12 = vadd.s32 88, %v5856_v48 }
  0x9f   : > { %v393_v13 = vpop.f32.mrf.mxu2  ;;  %5428 = vpow2.f32 %v501_v16  ;;  %v527_v33 = vadd.f32 1.0, %v5425_v25  ;;  %vm6063_vm8 = vcmp.ge.s32.totalorder %v664_v11, 1  ;;  %vm6130_vm11 = vcmp.ge.s32.totalorder %v664_v11, 2 }
  0xa0   : > { %v403_v14 = vpop.f32.mrf.mxu3  ;;  %v5832_v15 = vadd.f32 %v5805_v56, %v393_v13  ;;  %v346_v17 = vpop.f32.mrf.mxu0  ;;  %5430 = vpow2.f32 %v455_v18  ;;  %v11026_v11 = vmov 0 }
  0xa1   : > { %v5835_v19 = vadd.f32 %v5805_v56, %v403_v14  ;;  %v5842_v24 = vadd.f32 %v5805_v56, %v346_v17  ;;  %v371_v27 = vpop.f32.mrf.mxu1  ;;  %5432 = vpow2.f32 %v475_v21 }
  0xa2   : > { %v442_v23 = vsub.f32 0.0, %v5832_v15  ;;  %v5850_v34 = vadd.f32 %v5805_v56, %v371_v27  ;;  %5434 = vrcp.f32 %v517_v29 }
  0xa3   : > { %v446_v26 = vsub.f32 0.0, %v5835_v19  ;;  %v423_v32 = vsub.f32 0.0, %v5842_v24 }
  0xa4   : > { %v5427_v30 = vpop.eup %5426  ;;  %v495_v31 = vmul.f32 1.442695, %v442_v23  ;;  %v433_v44 = vsub.f32 0.0, %v5850_v34 }
  0xa5   : > { %v503_v36 = vmul.f32 1.442695, %v446_v26  ;;  %v5429_v37 = vpop.eup %5428  ;;  %v537_v38 = vadd.f32 1.0, %v5427_v30  ;;  %v457_v41 = vmul.f32 1.442695, %v423_v32  ;;  %v727_v30 = vand.u32 15, %v5878_v12 }
  0xa6   : > { %v5431_v39 = vpop.eup %5430  ;;  %5436 = vpow2.f32 %v495_v31  ;;  %v541_v45 = vadd.f32 1.0, %v5429_v37  ;;  %v477_v52 = vmul.f32 1.442695, %v433_v44  ;;  %v5369_v37 = vld [vmem:[%s10550_s3] sm:$0xff] }
  0xa7   : > { %v396_v35 = vpop.f32.mrf.mxu2  ;;  %v5433_v43 = vpop.eup %5432  ;;  %5438 = vrcp.f32 %v527_v33  ;;  %v518_v46 = vadd.f32 1.0, %v5431_v39  ;;  %4363 = vmatpush.bf16.msrb.mxu2 %v5369_v37  ;;  %vm6073_vm9 = vcmp.lt.s32.totalorder %v727_v30, 15  ;;  %vm6107_vm10 = vcmp.lt.s32.totalorder %v727_v30, 14 }
  0xa8   : > { %v5853_v42 = vadd.f32 %v5805_v56, %v396_v35  ;;  %5440 = vpow2.f32 %v503_v36  ;;  %v406_v47 = vpop.f32.mrf.mxu3  ;;  %v528_v49 = vadd.f32 1.0, %v5433_v43  ;;  %v5435_v51 = vpop.eup %5434  ;;  %v5908_v36 = vadd.s32 168, %v5856_v48 }
  0xa9   : > { %5442 = vrcp.f32 %v537_v38  ;;  %v5863_v55 = vadd.f32 %v5805_v56, %v406_v47  ;;  %v5869_v62 = vmul.f32 %v5435_v51, %v5808_v58  ;;  %v5881_v58 = vadd.s32 96, %v5856_v48  ;;  %v348_v31 = vpop.f32.mrf.mxu0 }
  0xaa   : > { %5444 = vpow2.f32 %v457_v41  ;;  %v443_v50 = vsub.f32 0.0, %v5853_v42  ;;  %v5920_v43 = vadd.f32 %v5805_v56, %v348_v31  ;;  %v11017_v54 = vsel %vm6073_vm9, 4294967295, %v11016_v54 }
  0xab   : > { %5446 = vrcp.f32 %v541_v45  ;;  %v447_v9 = vsub.f32 0.0, %v5863_v55  ;;  %v10559_v14 = vrot.slane %v5869_v62, 1  ;;  %v10555_v16 = vrot.slane %v5869_v62, 7  ;;  %11018 = vst [vmem:[#allocation18_spill] sm:$0xff] %v11017_v54 }
  0xac   : > { %v5437_v53 = vpop.eup %5436  ;;  %5448 = vrcp.f32 %v518_v46  ;;  %v497_v0 = vmul.f32 1.442695, %v443_v50  ;;  %v10553_v18 = vrot.slane %v5869_v62, 6  ;;  %v734_v35 = vand.u32 15, %v5881_v58 }
  0xad   : > { %v5439_v57 = vpop.eup %5438  ;;  %5450 = vrcp.f32 %v528_v49  ;;  %v538_v3 = vadd.f32 1.0, %v5437_v53  ;;  %v505_v27 = vmul.f32 1.442695, %v447_v9  ;;  %v424_v9 = vsub.f32 0.0, %v5920_v43 }
  0xae   : > { %v5441_v61 = vpop.eup %5440  ;;  %5452 = vpow2.f32 %v477_v52  ;;  %v5872_v6 = vmul.f32 %v5439_v57, %v5811_v59  ;;  %v10558_v59 = vrot.slane %v5869_v62, 2  ;;  %v11023_v30 = vmov 0 }
  0xaf   : > { %v5443_v1 = vpop.eup %5442  ;;  %v542_v10 = vadd.f32 1.0, %v5441_v61  ;;  %5454 = vpow2.f32 %v497_v0  ;;  %v11024_v30 = vsel %vm6130_vm11, 4294967295, %v11023_v30  ;;  %vm6152_vm12 = vcmp.ge.s32.totalorder %v734_v35, 1 }
  0xb0   : > { %v5445_v4 = vpop.eup %5444  ;;  %10994 = vst [vmem:[#allocation2_spill] sm:$0xff] %v5872_v6  ;;  %v5888_v20 = vmul.f32 %v5443_v1, %v5815_v63  ;;  %5456 = vrcp.f32 %v538_v3  ;;  %v10554_v23 = vrot.slane %v5872_v6, 1  ;;  %v10556_v25 = vrot.slane %v5872_v6, 7 }
  0xb1   : > { %v5447_v13 = vpop.eup %5446  ;;  %v519_v21 = vadd.f32 1.0, %v5445_v4  ;;  %v10557_v26 = vrot.slane %v5872_v6, 2  ;;  %v10563_v28 = vrot.slane %v5872_v6, 6  ;;  %5458 = vrcp.f32 %v542_v10  ;;  %11025 = vst [vmem:[#allocation21_spill] sm:$0xff] %v11024_v30 }
  0xb2   : > { %v5449_v17 = vpop.eup %5448  ;;  %10995 = vst [vmem:[#allocation3_spill] sm:$0xff] %v5888_v20  ;;  %v5899_v29 = vmul.f32 %v5447_v13, %v5819_v2  ;;  %v10566_v32 = vrot.slane %v5888_v20, 1  ;;  %v10569_v2 = vrot.slane %v5888_v20, 7  ;;  %v10571_v38 = vrot.slane %v5888_v20, 2 }
  0xb3   : > { %v5451_v22 = vpop.eup %5450  ;;  %v5904_v33 = vmul.f32 %v5449_v17, %v5823_v5  ;;  %5460 = vrcp.f32 %v519_v21  ;;  %v10573_v5 = vrot.slane %v5888_v20, 6  ;;  %v10584_v17 = vand.u32 15, %v5908_v36 }
  0xb4   : > { %v5453_v63 = vpop.eup %5452  ;;  %10996 = vst [vmem:[#allocation4_spill] sm:$0xff] %v5899_v29  ;;  %v5916_v39 = vmul.f32 %v5451_v22, %v5826_v7  ;;  %5462 = vpow2.f32 %v505_v27  ;;  %v10574_v45 = vrot.slane %v5899_v29, 1  ;;  %v10576_v46 = vrot.slane %v5899_v29, 7 }
  0xb5   : > { %10997 = vst [vmem:[#allocation5_spill] sm:$0xff] %v5904_v33  ;;  %v5455_v40 = vpop.eup %5454  ;;  %v529_v41 = vadd.f32 1.0, %v5453_v63  ;;  %v10577_v47 = vrot.slane %v5899_v29, 2  ;;  %v5926_v7 = vadd.s32 176, %v5856_v48  ;;  %v10579_v49 = vrot.slane %v5899_v29, 6 }
  0xb6   : > { %10998 = vst [vmem:[#allocation6_spill] sm:$0xff] %v5916_v39  ;;  %v5457_v44 = vpop.eup %5456  ;;  %v1287_v50 = vrot.slane %v5904_v33, 1  ;;  %v1448_v51 = vrot.slane %v5904_v33, 7  ;;  %v10568_v52 = vrot.slane %v5904_v33, 2  ;;  %v10562_v57 = vrot.slane %v5904_v33, 6 }
  0xb7   : > { %v5459_v53 = vpop.eup %5458  ;;  %v10565_v61 = vrot.slane %v5916_v39, 1  ;;  %v10560_v0 = vrot.slane %v5916_v39, 7  ;;  %v539_v1 = vadd.f32 1.0, %v5455_v40  ;;  %v10561_v3 = vrot.slane %v5916_v39, 2  ;;  %v373_v40 = vpop.f32.mrf.mxu1 }
  0xb8   : > { %v5937_v4 = vmul.f32 %v5457_v44, %v5832_v15  ;;  %5464 = vrcp.f32 %v529_v41  ;;  %v10564_v13 = vrot.slane %v5916_v39, 6  ;;  %v5944_v22 = vadd.s32 200, %v5856_v48 }
  0xb9   : > { %v5461_v10 = vpop.eup %5460  ;;  %v5952_v15 = vsel %vm10593_vm2, %v10559_v14, %v1287_v50  ;;  %v5960_v63 = vsel %vm10598_vm3, %v10555_v16, %v1448_v51  ;;  %v5968_v31 = vsel %vm10601_vm4, %v10558_v59, %v10568_v52  ;;  %v5971_v37 = vmul.f32 %v5459_v53, %v5835_v19  ;;  %v398_v53 = vpop.f32.mrf.mxu2 }
  0xba   : > { %10999 = vst [vmem:[#allocation7_spill] sm:$0xff] %v5937_v4  ;;  %v5463_v27 = vpop.eup %5462  ;;  %v5979_v41 = vsel %vm10592_vm5, %v10553_v18, %v10562_v57  ;;  %v5987_v44 = vsel %vm10593_vm2, %v10554_v23, %v10565_v61  ;;  %v5995_v19 = vsel %vm10598_vm3, %v10556_v25, %v10560_v0  ;;  %5466 = vrcp.f32 %v539_v1  ;;  %v351_v57 = vpop.f32.mrf.mxu0 }
  0xbb   : > { %11000 = vst [vmem:[#allocation8_spill] sm:$0xff] %v5952_v15  ;;  %v6003_v18 = vsel %vm10601_vm4, %v10557_v26, %v10561_v3  ;;  %v10570_v23 = vrot.slane %v5937_v4, 7  ;;  %v6007_v16 = vmul.f32 %v5461_v10, %v5842_v24  ;;  %v11005_v25 = vmov 0 }
  0xbc   : > { %11001 = vst [vmem:[#allocation9_spill] sm:$0xff] %v5968_v31  ;;  %v11006_v25 = vsel %vm6011_vm6, 4294967295, %v11005_v25  ;;  %v459_v1 = vmul.f32 1.442695, %v424_v9  ;;  %v6021_v26 = vsel %vm10592_vm5, %v10563_v28, %v10564_v13  ;;  %v543_v59 = vadd.f32 1.0, %v5463_v27 }
  0xbd   : > { %11002 = vst [vmem:[#allocation10_spill] sm:$0xff] %v5971_v37  ;;  %v6024_v14 = vadd.s32 208, %v5856_v48  ;;  %v6027_v24 = vadd.f32 %v5805_v56, %v373_v40  ;;  %v10567_v21 = vrot.slane %v5937_v4, 1  ;;  %v10575_v9 = vrot.slane %v5937_v4, 6 }
  0xbe   : > { %11003 = vst [vmem:[#allocation11_spill] sm:$0xff] %v5987_v44  ;;  %v5465_v10 = vpop.eup %5464  ;;  %v10583_v0 = vrot.slane %v5971_v37, 1  ;;  %v6033_v3 = vadd.f32 %v5805_v56, %v398_v53  ;;  %v10572_v28 = vrot.slane %v5937_v4, 2  ;;  %v10578_v27 = vrot.slane %v5971_v37, 7 }
  0xbf   : > { %11004 = vst [vmem:[#allocation12_spill] sm:$0xff] %v6003_v18  ;;  %v10581_v13 = vrot.slane %v5971_v37, 2  ;;  %5468 = vpow2.f32 %v459_v1  ;;  %v6044_v40 = vsel %vm10593_vm2, %v10566_v32, %v10567_v21  ;;  %v6052_v53 = vsel %vm10598_vm3, %v10569_v2, %v10570_v23 }
  0xc0   : > { %11007 = vst [vmem:[#allocation13_spill] sm:$0xff] %v11006_v25  ;;  %v10580_v61 = vrot.slane %v5971_v37, 6  ;;  %v11009_v1 = vmov 0  ;;  %v11012_v32 = vmov 0  ;;  %v10582_v21 = vrot.slane %v6007_v16, 1  ;;  %v5467_v52 = vpop.eup %5466 }
  0xc1   : > { %11008 = vst [vmem:[#allocation14_spill] sm:$0xff] %v6044_v40  ;;  %v11010_v1 = vsel %vm6057_vm7, 4294967295, %v11009_v1  ;;  %v11013_v32 = vsel %vm6063_vm8, 4294967295, %v11012_v32  ;;  %v6069_v2 = vmul.f32 %v5465_v10, %v5850_v34  ;;  %5470 = vrcp.f32 %v543_v59 }
  0xc2   : > { %11011 = vst [vmem:[#allocation15_spill] sm:$0xff] %v11010_v1  ;;  %v434_v8 = vsub.f32 0.0, %v6027_v24  ;;  %v6079_v23 = vadd.f32 %v5805_v56, %v351_v57  ;;  %v6087_v34 = vsel %vm10601_vm4, %v10571_v38, %v10572_v28  ;;  %v6095_v59 = vsel %vm10592_vm5, %v10573_v5, %v10575_v9  ;;  %v408_v28 = vpop.f32.mrf.mxu3 }
  0xc3   : > { %11014 = vst [vmem:[#allocation16_spill] sm:$0xff] %v11013_v32  ;;  %v6103_v57 = vsel %vm10593_vm2, %v10574_v45, %v10583_v0  ;;  %v11020_v10 = vmov 0  ;;  %v444_v38 = vsub.f32 0.0, %v6033_v3  ;;  %v6118_v5 = vsel %vm10598_vm3, %v10576_v46, %v10578_v27 }
  0xc4   : > { %11015 = vst [vmem:[#allocation17_spill] sm:$0xff] %v6069_v2  ;;  %v11021_v10 = vsel %vm6107_vm10, 4294967295, %v11020_v10  ;;  %v6126_v12 = vsel %vm10601_vm4, %v10577_v47, %v10581_v13  ;;  %v10587_v45 = vrot.slane %v6007_v16, 7  ;;  %v6142_v46 = vsel %vm10592_vm5, %v10579_v49, %v10580_v61 }
  0xc5   : > { %11019 = vst [vmem:[#allocation19_spill] sm:$0xff] %v6087_v34  ;;  %v1348_v60 = vsel %vm10593_vm2, %v1287_v50, %v10582_v21  ;;  %v11027_v11 = vsel %vm6152_vm12, 4294967295, %v11026_v11  ;;  %v6157_v47 = vmul.f32 %v5467_v52, %v5853_v42  ;;  %v825_v27 = vand.u32 15, %v5944_v22  ;;  %v5469_v49 = vpop.eup %5468 }
  0xc6   : > { %11022 = vst [vmem:[#allocation20_spill] sm:$0xff] %v11021_v10  ;;  %vm6162_vm13 = vcmp.ge.s32.totalorder %v734_v35, 2  ;;  %v11030_v61 = vmov 0  ;;  %vm6169_vm14 = vcmp.lt.s32.totalorder %v10584_v17, 15  ;;  %v11033_v13 = vmov 0 }
  0xc7   : > { %11028 = vst [vmem:[#allocation22_spill] sm:$0xff] %v11027_v11  ;;  %v11031_v61 = vsel %vm6162_vm13, 4294967295, %v11030_v61  ;;  %v11034_v13 = vsel %vm6169_vm14, 4294967295, %v11033_v13  ;;  %v479_v21 = vmul.f32 1.442695, %v434_v8  ;;  %v6174_v42 = vadd.f32 %v5805_v56, %v408_v28  ;;  %v5471_v9 = vpop.eup %5470 }
  0xc8   : > { %11029 = vst [vmem:[#allocation23_spill] sm:$0xff] %v6157_v47  ;;  %v425_v52 = vsub.f32 0.0, %v6079_v23  ;;  %v520_v22 = vadd.f32 1.0, %v5469_v49  ;;  %v499_v0 = vmul.f32 1.442695, %v444_v38  ;;  %v6187_v28 = vsel %vm10598_vm3, %v1448_v51, %v10587_v45 }
  0xc9   : > { %11032 = vst [vmem:[#allocation24_spill] sm:$0xff] %v11031_v61  ;;  %v1416_v50 = vsel %vm6011_vm6, %v1348_v60, -3.4028235e+38  ;;  %v11036_v8 = vrot.slane %v6007_v16, 2  ;;  %v11037_v17 = vrot.slane %v5904_v33, 2  ;;  %v832_v38 = vand.u32 15, %v6024_v14 }
  0xca   : > { %11035 = vst [vmem:[#allocation25_spill] sm:$0xff] %v11034_v13  ;;  %5472 = vrcp.f32 %v520_v22  ;;  %v11038_v25 = vrot.slane %v6069_v2, 1  ;;  %v11039_v51 = vrot.slane %v5916_v39, 1  ;;  %v448_v34 = vsub.f32 0.0, %v6174_v42 }
  0xcb   : > { %v1734_v49 = vsel %vm10601_vm4, %v11037_v17, %v11036_v8  ;;  %5474 = vpow2.f32 %v479_v21  ;;  %v461_v17 = vmul.f32 1.442695, %v425_v52  ;;  %v11040_v14 = vrot.slane %v6007_v16, 6 }
  0xcc   : > { %v1338_v45 = vsel %vm10593_vm2, %v11039_v51, %v11038_v25  ;;  %v11041_v8 = vrot.slane %v5904_v33, 6  ;;  %v11042_v22 = vrot.slane %v6069_v2, 2  ;;  %v11043_v58 = vrot.slane %v5916_v39, 2 }
  0xcd   : > { %v11044_v25 = vand.u32 15, %v5908_v36  ;;  %v11045_v21 = vmov 0  ;;  %v6225_v52 = vmul.f32 %v5471_v9, %v5863_v55  ;;  %vm6227_vm0 = vcmp.lt.s32.totalorder %v825_v27, 15 }
  0xce   : > { %v1895_v60 = vsel %vm10592_vm5, %v11041_v8, %v11040_v14  ;;  %v1724_v35 = vsel %vm10601_vm4, %v11043_v58, %v11042_v22  ;;  %v11049_v51 = vmov 0  ;;  %5476 = vpow2.f32 %v499_v0 }
  0xcf   : > { %vm6220_vm15 = vcmp.lt.s32.totalorder %v11044_v25, 14  ;;  %11048 = vst [vmem:[#allocation27_spill] sm:$0xff] %v6225_v52  ;;  %v11050_v51 = vsel %vm6227_vm0, 4294967295, %v11049_v51  ;;  %v1578_v14 = vsel %vm6063_vm8, %v6187_v28, -3.4028235e+38  ;;  %v6235_v58 = vmax.f32 %v1416_v50, %v5960_v63 }
  0xd0   : > { %v11046_v21 = vsel %vm6220_vm15, 4294967295, %v11045_v21  ;;  %11051 = vst [vmem:[#allocation28_spill] sm:$0xff] %v11050_v51  ;;  %v1802_v36 = vsel %vm6057_vm7, %v1734_v49, -3.4028235e+38  ;;  %v4106_v8 = vpack.c.bf16 %v5904_v33, %v5869_v62  ;;  %v1426_v55 = vsel %vm6073_vm9, %v1338_v45, -3.4028235e+38  ;;  %v5473_v32 = vpop.eup %5472 }
  0xd1   : > { %11047 = vst [vmem:[#allocation26_spill] sm:$0xff] %v11046_v21  ;;  %v11053_v9 = vrot.slane %v6069_v2, 7  ;;  %v11054_v0 = vrot.slane %v5916_v39, 7  ;;  %v11055_v63 = vrot.slane %v6069_v2, 6  ;;  %v11056_v50 = vrot.slane %v5916_v39, 6 }
  0xd2   : > { %11052 = vst [vmem:[#allocation29_spill] sm:$0xff] %v6235_v58  ;;  %v1812_v45 = vsel %vm6107_vm10, %v1724_v35, -3.4028235e+38  ;;  %v11057_v25 = vrot.slane %v6157_v47, 1  ;;  %v11058_v1 = vrot.slane %v5937_v4, 1  ;;  %5478 = vpow2.f32 %v461_v17  ;;  %4364 = vmatmul.bf16.vlgmr.msrb.gmra.mxu2 %v4106_v8 }
  0xd3   : > { %v6249_v22 = vsel %vm10598_vm3, %v11054_v0, %v11053_v9  ;;  %v6257_v28 = vsel %vm10592_vm5, %v11056_v50, %v11055_v63  ;;  %v507_v0 = vmul.f32 1.442695, %v448_v34  ;;  %v1964_v63 = vsel %vm6130_vm11, %v1895_v60, -3.4028235e+38  ;;  %v5475_v34 = vpop.eup %5474 }
  0xd4   : > { %v1328_v9 = vsel %vm10593_vm2, %v11058_v1, %v11057_v25  ;;  %v6271_v50 = vmax.f32 %v1802_v36, %v5979_v41  ;;  %v11060_v49 = vand.u32 15, %v5926_v7  ;;  %v11061_v35 = vmov 0  ;;  %v5477_v8 = vpop.eup %5476 }
  0xd5   : > { %v6288_v36 = vmul.f32 %v5473_v32, %v5920_v43  ;;  %v2005_v1 = vmax.f32 %v1812_v45, %v6021_v26  ;;  %v11064_v17 = vand.u32 15, %v5926_v7  ;;  %v11065_v40 = vmov 0  ;;  %v376_v43 = vpop.f32.mrf.mxu1 }
  0xd6   : > { %11059 = vst [vmem:[#allocation30_spill] sm:$0xff] %v6271_v50  ;;  %vm6275_vm1 = vcmp.ge.s32.totalorder %v11060_v49, 1  ;;  %v1619_v49 = vmax.f32 %v1426_v55, %v5995_v19  ;;  %v1436_v60 = vsel %vm6169_vm14, %v1328_v9, -3.4028235e+38  ;;  %vm6303_vm2 = vcmp.lt.s32.totalorder %v825_v27, 14 }
  0xd7   : > { %v11062_v35 = vsel %vm6275_vm1, 4294967295, %v11061_v35  ;;  %vm6297_vm5 = vcmp.ge.s32.totalorder %v11064_v17, 2  ;;  %v11068_v32 = vmov 0  ;;  %v11071_v19 = vrot.slane %v6157_v47, 7 }
  0xd8   : > { %11063 = vst [vmem:[#allocation31_spill] sm:$0xff] %v11062_v35  ;;  %v11066_v40 = vsel %vm6297_vm5, 4294967295, %v11065_v40  ;;  %v11069_v32 = vsel %vm6303_vm2, 4294967295, %v11068_v32  ;;  %v11072_v55 = vrot.slane %v5937_v4, 7  ;;  %5480 = vpow2.f32 %v507_v0  ;;  %v5479_v30 = vpop.eup %5478 }
  0xd9   : > { %11067 = vst [vmem:[#allocation32_spill] sm:$0xff] %v11066_v40  ;;  %v11073_v9 = vrot.slane %v6157_v47, 2  ;;  %v11074_v27 = vrot.slane %v5937_v4, 2  ;;  %vm6323_vm11 = vcmp.ge.s32.totalorder %v832_v38, 1  ;;  %v11075_v25 = vmov 0 }
  0xda   : > { %11070 = vst [vmem:[#allocation33_spill] sm:$0xff] %v11069_v32  ;;  %v6313_v26 = vsel %vm10598_vm3, %v11072_v55, %v11071_v19  ;;  %v11076_v25 = vsel %vm6323_vm11, 4294967295, %v11075_v25  ;;  %vm6327_vm7 = vcmp.ge.s32.totalorder %v832_v38, 2  ;;  %v11078_v41 = vmov 0 }
  0xdb   : > { %v1714_v17 = vsel %vm10601_vm4, %v11074_v27, %v11073_v9  ;;  %11077 = vst [vmem:[#allocation34_spill] sm:$0xff] %v11076_v25  ;;  %v11079_v41 = vsel %vm6327_vm7, 4294967295, %v11078_v41  ;;  %v11081_v19 = vrot.slane %v6225_v52, 1  ;;  %v11082_v55 = vrot.slane %v5971_v37, 1 }
  0xdc   : > { %11080 = vst [vmem:[#allocation35_spill] sm:$0xff] %v11079_v41  ;;  %vm11083_vm3 = vcmp.lt.s32.totalorder %v5856_v48, 7  ;;  %v530_v7 = vadd.f32 1.0, %v5475_v34  ;;  %v11084_v9 = vrot.slane %v6288_v36, 1  ;;  %v11085_v27 = vrot.slane %v6007_v16, 1 }
  0xdd   : > { %v1324_v0 = vsel %vm11083_vm3, %v11082_v55, %v11081_v19  ;;  %vm11086_vm4 = vmmov %vm11083_vm3  ;;  %v11087_v13 = vrot.slane %v6288_v36, 2  ;;  %v11088_v20 = vrot.slane %v6007_v16, 2  ;;  %vm11089_vm8 = vcmp.lt.s32.totalorder %v5856_v48, 6 }
  0xde   : > { %v1347_v38 = vsel %vm11086_vm4, %v11085_v27, %v11084_v9  ;;  %v540_v54 = vadd.f32 1.0, %v5477_v8  ;;  %v6351_v19 = vadd.f32 %v5805_v56, %v376_v43  ;;  %v1629_v34 = vmax.f32 %v1436_v60, %v6052_v53  ;;  %vm11095_vm4 = vmmov %vm11089_vm8 }
  0xdf   : > { %v1733_v10 = vsel %vm11089_vm8, %v11088_v20, %v11087_v13  ;;  %v11090_v55 = vrot.slane %v6157_v47, 6  ;;  %v11091_v45 = vrot.slane %v5937_v4, 6  ;;  %vm11092_vm3 = vcmp.lt.s32.totalorder %v5856_v48, 2 }
  0xe0   : > { %v1610_v27 = vmax.f32 %v1347_v38, %v1578_v14  ;;  %v1996_v58 = vmax.f32 %v1733_v10, %v1964_v63  ;;  %v1651_v33 = vmax.f32 %v5916_v39, %v1619_v49  ;;  %v1822_v20 = vsel %vm6220_vm15, %v1714_v17, -3.4028235e+38 }
  0xe1   : > { %v6360_v9 = vsel %vm11092_vm3, %v11091_v45, %v11090_v55  ;;  %v1440_v13 = vsel %vm6227_vm0, %v1324_v0, -3.4028235e+38  ;;  %v10614_v53 = vrot.slane %v6225_v52, 7  ;;  %v10617_v60 = vrot.slane %v6225_v52, 6  ;;  %v5481_v45 = vpop.eup %5480  ;;  %v353_v0 = vpop.f32.mrf.mxu0 }
  0xe2   : > { %v1642_v8 = vmax.f32 %v6007_v16, %v1610_v27  ;;  %5482 = vrcp.f32 %v530_v7  ;;  %v521_v43 = vadd.f32 1.0, %v5479_v30  ;;  %v11093_v14 = vrot.slane %v6225_v52, 2 }
  0xe3   : > { %v11094_v10 = vrot.slane %v5971_v37, 2  ;;  %5484 = vrcp.f32 %v540_v54  ;;  %v6377_v49 = vadd.s32 184, %v5856_v48  ;;  %v435_v17 = vsub.f32 0.0, %v6351_v19 }
  0xe4   : > { %v1633_v38 = vmax.f32 %v1440_v13, %v6118_v5  ;;  %v6381_v55 = vmax.f32 %v1642_v8, %v1996_v58  ;;  %5486 = vrcp.f32 %v521_v43  ;;  %v617_v30 = vadd.s32 24, %v5856_v48 }
  0xe5   : > { %v1710_v63 = vsel %vm11095_vm4, %v11094_v10, %v11093_v14  ;;  %v1661_v27 = vmax.f32 %v5937_v4, %v1629_v34  ;;  %v2015_v54 = vmax.f32 %v1822_v20, %v6095_v59  ;;  %v6390_v14 = vadd.s32 192, %v5856_v48 }
  0xe6   : > { %11096 = vst [vmem:[#allocation36_spill] sm:$0xff] %v6381_v55  ;;  %v11097_v5 = vrot.slane %v5971_v37, 7  ;;  %vm11098_vm8 = vcmp.lt.s32.totalorder %v5856_v48, 1  ;;  %v11099_v13 = vrot.slane %v5971_v37, 6  ;;  %v544_v59 = vadd.f32 1.0, %v5481_v45 }
  0xe7   : > { %v6409_v20 = vadd.f32 %v5805_v56, %v353_v0  ;;  %v6411_v8 = vmax.f32 %v1651_v33, %v2005_v1  ;;  %v1826_v10 = vsel %vm6303_vm2, %v1710_v63, -3.4028235e+38  ;;  %v1665_v51 = vmax.f32 %v5971_v37, %v1633_v38 }
  0xe8   : > { %v6398_v58 = vsel %vm11098_vm8, %v11097_v5, %v10614_v53  ;;  %v6406_v34 = vsel %vm11092_vm3, %v11099_v13, %v10617_v60  ;;  %v481_v5 = vmul.f32 1.442695, %v435_v17  ;;  %v411_v53 = vpop.f32.mrf.mxu3  ;;  %v5483_v7 = vpop.eup %5482  ;;  %v811_v13 = vand.u32 15, %v6377_v49 }
  0xe9   : > { %11100 = vst [vmem:[#allocation37_spill] sm:$0xff] %v6411_v8  ;;  %v6421_v45 = vadd.s32 32, %v5856_v48  ;;  %v671_v0 = vand.u32 15, %v617_v30  ;;  %v5485_v33 = vpop.eup %5484  ;;  %v6423_v1 = vmax.f32 %v1661_v27, %v2015_v54  ;;  %v818_v17 = vand.u32 15, %v6390_v14 }
  0xea   : > { %v5487_v38 = vpop.eup %5486  ;;  %v2019_v49 = vmax.f32 %v1826_v10, %v6142_v46  ;;  %5488 = vrcp.f32 %v544_v59  ;;  %v6434_v43 = vadd.f32 %v5805_v56, %v411_v53  ;;  %v426_v30 = vsub.f32 0.0, %v6409_v20 }
  0xeb   : > { %11101 = vst [vmem:[#allocation38_spill] sm:$0xff] %v6423_v1  ;;  %v1450_v27 = vrot.slane %v6288_v36, 7  ;;  %v6439_v54 = vmul.f32 %v5483_v7, %v6027_v24  ;;  %v6442_v60 = vmul.f32 %v5487_v38, %v6079_v23  ;;  %5490 = vpow2.f32 %v481_v5  ;;  %v378_v5 = vpop.f32.mrf.mxu1 }
  0xec   : > { %v6444_v63 = vmax.f32 %v1665_v51, %v2019_v49  ;;  %v6447_v14 = vmul.f32 %v5485_v33, %v6033_v3  ;;  %vm6449_vm4 = vcmp.lt.s32.totalorder %v811_v13, 15  ;;  %v11104_v46 = vmov 0 }
  0xed   : > { %11102 = vst [vmem:[#allocation39_spill] sm:$0xff] %v6439_v54  ;;  %v11105_v46 = vsel %vm6449_vm4, 4294967295, %v11104_v46  ;;  %vm6454_vm8 = vcmp.lt.s32.totalorder %v671_v0, 15  ;;  %v11107_v59 = vmov 0  ;;  %v1836_v24 = vrot.slane %v6288_v36, 6 }
  0xee   : > { %11103 = vst [vmem:[#allocation40_spill] sm:$0xff] %v6447_v14  ;;  %v11108_v59 = vsel %vm6454_vm8, 4294967295, %v11107_v59  ;;  %vm6459_vm3 = vcmp.ge.s32.totalorder %v818_v17, 1  ;;  %v11110_v23 = vmov 0  ;;  %vm6463_vm2 = vcmp.lt.s32.totalorder %v671_v0, 14 }
  0xef   : > { %11106 = vst [vmem:[#allocation41_spill] sm:$0xff] %v11105_v46  ;;  %v11111_v23 = vsel %vm6459_vm3, 4294967295, %v11110_v23  ;;  %v11113_v51 = vmov 0  ;;  %v10632_v3 = vrot.slane %v6442_v60, 1  ;;  %v6469_v7 = vadd.s32 104, %v5856_v48 }
  0xf0   : > { %11109 = vst [vmem:[#allocation42_spill] sm:$0xff] %v11108_v59  ;;  %v11114_v51 = vsel %vm6463_vm2, 4294967295, %v11113_v51  ;;  %v449_v33 = vsub.f32 0.0, %v6434_v43  ;;  %v463_v38 = vmul.f32 1.442695, %v426_v30  ;;  %v11116_v49 = vrot.slane %v6007_v16, 7  ;;  %v5489_v4 = vpop.eup %5488 }
  0xf1   : > { %11112 = vst [vmem:[#allocation43_spill] sm:$0xff] %v11111_v23  ;;  %vm11117_vm0 = vcmp.lt.s32.totalorder %v5856_v48, 1  ;;  %v11118_v32 = vrot.slane %v6288_v36, 1  ;;  %vm11119_vm6 = vcmp.lt.s32.totalorder %v5856_v48, 7  ;;  %v1309_v30 = vrot.slane %v6447_v14, 1 }
  0xf2   : > { %11115 = vst [vmem:[#allocation44_spill] sm:$0xff] %v11114_v51  ;;  %v1508_v0 = vsel %vm11117_vm0, %v11116_v49, %v1450_v27  ;;  %v11120_v49 = vrot.slane %v6442_v60, 7  ;;  %v11121_v39 = vrot.slane %v6442_v60, 2  ;;  %v11122_v50 = vrot.slane %v6288_v36, 2 }
  0xf3   : > { %v1346_v37 = vsel %vm11119_vm6, %v11118_v32, %v10632_v3  ;;  %vm11123_vm6 = vcmp.lt.s32.totalorder %v5856_v48, 6  ;;  %v5491_v3 = vpop.eup %5490  ;;  %v11124_v10 = vrot.slane %v6007_v16, 6  ;;  %vm11125_vm15 = vcmp.lt.s32.totalorder %v5856_v48, 2 }
  0xf4   : > { %v1418_v21 = vsel %vm6454_vm8, %v1346_v37, -3.4028235e+38  ;;  %v6493_v53 = vsel %vm11117_vm0, %v1450_v27, %v11120_v49  ;;  %v1732_v32 = vsel %vm11123_vm6, %v11122_v50, %v11121_v39  ;;  %v1470_v37 = vrot.slane %v6447_v14, 7  ;;  %vm11127_vm0 = vmmov %vm11125_vm15  ;;  %v413_v49 = vpop.f32.mrf.mxu3 }
  0xf5   : > { %v1894_v59 = vsel %vm11125_vm15, %v11124_v10, %v1836_v24  ;;  %v1611_v55 = vmax.f32 %v1418_v21, %v1508_v0  ;;  %v1804_v27 = vsel %vm6463_vm2, %v1732_v32, -3.4028235e+38  ;;  %v11126_v18 = vrot.slane %v6442_v60, 6  ;;  %v356_v10 = vpop.f32.mrf.mxu0 }
  0xf6   : > { %v1997_v50 = vmax.f32 %v1804_v27, %v1894_v59  ;;  %v6517_v44 = vadd.f32 %v5805_v56, %v378_v5  ;;  %vm6519_vm15 = vcmp.lt.s32.totalorder %v811_v13, 14  ;;  %v11128_v6 = vmov 0 }
  0xf7   : > { %v6514_v39 = vsel %vm11127_vm0, %v1836_v24, %v11126_v18  ;;  %v11129_v6 = vsel %vm6519_vm15, 4294967295, %v11128_v6  ;;  %v6524_v21 = vmul.f32 %v5489_v4, %v6174_v42  ;;  %v1643_v0 = vmax.f32 %v6288_v36, %v1611_v55 }
  0xf8   : > { %11130 = vst [vmem:[#allocation45_spill] sm:$0xff] %v11129_v6  ;;  %v509_v32 = vmul.f32 1.442695, %v449_v33  ;;  %5492 = vpow2.f32 %v463_v38  ;;  %v11132_v18 = vrot.slane %v5899_v29, 1  ;;  %vm11133_vm6 = vcmp.lt.s32.totalorder %v5856_v48, 7 }
  0xf9   : > { %11131 = vst [vmem:[#allocation46_spill] sm:$0xff] %v6524_v21  ;;  %v531_v24 = vadd.f32 1.0, %v5491_v3  ;;  %v6532_v5 = vadd.s32 112, %v5856_v48  ;;  %v11134_v27 = vrot.slane %v6439_v54, 1  ;;  %v11135_v4 = vrot.slane %v6069_v2, 1  ;;  %vm11136_vm0 = vmmov %vm11133_vm6 }
  0xfa   : > { %v1326_v59 = vsel %vm11133_vm6, %v1309_v30, %v11132_v18  ;;  %vm6541_vm2 = vcmp.ge.s32.totalorder %v818_v17, 2  ;;  %v11137_v55 = vmov 0  ;;  %v11140_v33 = vrot.slane %v5899_v29, 7  ;;  %vm11143_vm8 = vmmov %vm11136_vm0 }
  0xfb   : > { %v1337_v42 = vsel %vm11136_vm0, %v11135_v4, %v11134_v27  ;;  %v11138_v55 = vsel %vm6541_vm2, 4294967295, %v11137_v55  ;;  %vm11141_vm6 = vcmp.lt.s32.totalorder %v5856_v48, 1  ;;  %v6549_v38 = vmax.f32 %v1643_v0, %v1997_v50 }
  0xfc   : > { %11139 = vst [vmem:[#allocation47_spill] sm:$0xff] %v11138_v55  ;;  %v1487_v3 = vsel %vm11141_vm6, %v1470_v37, %v11140_v33  ;;  %v6552_v18 = vadd.f32 %v5805_v56, %v356_v10  ;;  %v11142_v13 = vrot.slane %v6157_v47, 1  ;;  %v1695_v17 = vrot.slane %v6447_v14, 2  ;;  %vm11145_vm0 = vmmov %vm11141_vm6 }
  0xfd   : > { %v436_v27 = vsub.f32 0.0, %v6517_v44  ;;  %v6561_v4 = vadd.f32 %v5805_v56, %v413_v49  ;;  %v1438_v33 = vsel %vm6449_vm4, %v1326_v59, -3.4028235e+38  ;;  %v11144_v50 = vrot.slane %v6157_v47, 7 }
  0xfe   : > { %v1327_v51 = vsel %vm11143_vm8, %v11142_v13, %v1309_v30  ;;  %5494 = vpow2.f32 %v509_v32  ;;  %v11146_v30 = vsel %vm6152_vm12, %v6249_v22, -3.4028235e+38  ;;  %v1600_v49 = vsel %vm6459_vm3, %v1487_v3, -3.4028235e+38  ;;  %v5493_v59 = vpop.eup %5492 }
  0xff   : > { %v1488_v10 = vsel %vm11145_vm0, %v11144_v50, %v1470_v37  ;;  %v1620_v13 = vmax.f32 %v1337_v42, %v11146_v30  ;;  %5496 = vrcp.f32 %v531_v24  ;;  %v11147_v46 = vsel %vm6275_vm1, %v6313_v26, -3.4028235e+38 }
 0x100   : > { %v1630_v37 = vmax.f32 %v1327_v51, %v11147_v46  ;;  %v1856_v50 = vrot.slane %v6447_v14, 6  ;;  %v427_v0 = vsub.f32 0.0, %v6552_v18  ;;  %v1631_v30 = vmax.f32 %v1438_v33, %v1488_v10 }
 0x101   : > { %v450_v3 = vsub.f32 0.0, %v6561_v4  ;;  %v1632_v24 = vmax.f32 %v6103_v57, %v1600_v49  ;;  %v11148_v31 = vrot.slane %v5899_v29, 2  ;;  %vm11149_vm8 = vcmp.lt.s32.totalorder %v5856_v48, 6 }
 0x102   : > { %v11150_v46 = vrot.slane %v6524_v21, 1  ;;  %v11151_v51 = vrot.slane %v6225_v52, 1  ;;  %vm11152_vm6 = vcmp.lt.s32.totalorder %v5856_v48, 7  ;;  %v483_v22 = vmul.f32 1.442695, %v436_v27  ;;  %vm11155_vm0 = vmmov %vm11149_vm8 }
 0x103   : > { %v1712_v26 = vsel %vm11149_vm8, %v1695_v17, %v11148_v31  ;;  %v1652_v42 = vmax.f32 %v6069_v2, %v1620_v13  ;;  %v11153_v33 = vrot.slane %v6439_v54, 2  ;;  %v11154_v10 = vrot.slane %v6069_v2, 2  ;;  %vm11157_vm8 = vmmov %vm11155_vm0 }
 0x104   : > { %v1323_v32 = vsel %vm11152_vm6, %v11151_v51, %v11150_v46  ;;  %v11156_v49 = vrot.slane %v6157_v47, 2  ;;  %v11158_v23 = vand.u32 15, %v6421_v45  ;;  %v11159_v35 = vmov 0  ;;  %v5495_v51 = vpop.eup %5494 }
 0x105   : > { %v1723_v57 = vsel %vm11155_vm0, %v11154_v10, %v11153_v33  ;;  %v11163_v13 = vmov 0  ;;  %v522_v46 = vadd.f32 1.0, %v5493_v59  ;;  %v1662_v33 = vmax.f32 %v6157_v47, %v1630_v37  ;;  %v5497_v11 = vpop.eup %5496 }
 0x106   : > { %v1713_v31 = vsel %vm11157_vm8, %v11156_v49, %v1695_v17  ;;  %vm6611_vm3 = vcmp.ge.s32.totalorder %v11158_v23, 1  ;;  %v11162_v27 = vmov %v11158_v23  ;;  %v11166_v10 = vrot.slane %v5899_v29, 6 }
 0x107   : > { %v11160_v35 = vsel %vm6611_vm3, 4294967295, %v11159_v35  ;;  %vm6617_vm6 = vcmp.ge.s32.totalorder %v11162_v27, 2  ;;  %vm11167_vm0 = vcmp.lt.s32.totalorder %v5856_v48, 2  ;;  %v465_v49 = vmul.f32 1.442695, %v427_v0 }
 0x108   : > { %11161 = vst [vmem:[#allocation48_spill] sm:$0xff] %v11160_v35  ;;  %v11164_v13 = vsel %vm6617_vm6, 4294967295, %v11163_v13  ;;  %v1873_v17 = vsel %vm11167_vm0, %v1856_v50, %v11166_v10  ;;  %v1824_v45 = vsel %vm6519_vm15, %v1712_v26, -3.4028235e+38  ;;  %v11168_v27 = vrot.slane %v6157_v47, 6  ;;  %vm11169_vm8 = vmmov %vm11167_vm0  ;;  %v5384_v10 = vld [vmem:[%s10550_s3 + $0x78] sm:$0xff] }
 0x109   : > { %11165 = vst [vmem:[#allocation49_spill] sm:$0xff] %v11164_v13  ;;  %v11170_v37 = vsel %vm6323_vm11, %v6398_v58, -3.4028235e+38  ;;  %5498 = vrcp.f32 %v522_v46  ;;  %v1663_v0 = vmax.f32 %v6447_v14, %v1631_v30  ;;  %v1664_v23 = vmax.f32 %v5899_v29, %v1632_v24  ;;  %4219 = vmatpush.bf16.msrb.mxu1 %v5384_v10 }
 0x10a   : > { %v1874_v59 = vsel %vm11169_vm8, %v11168_v27, %v1856_v50  ;;  %v1634_v15 = vmax.f32 %v1323_v32, %v11170_v37  ;;  %5500 = vpow2.f32 %v483_v22  ;;  %v511_v26 = vmul.f32 1.442695, %v450_v3 }
 0x10b   : > { %v1986_v47 = vsel %vm6541_vm2, %v1873_v17, -3.4028235e+38  ;;  %v11171_v50 = vsel %vm6297_vm5, %v6360_v9, -3.4028235e+38  ;;  %v545_v32 = vadd.f32 1.0, %v5495_v51  ;;  %5502 = vpow2.f32 %v465_v49 }
 0x10c   : > { %v2016_v58 = vmax.f32 %v1713_v31, %v11171_v50  ;;  %v10667_v46 = vrot.slane %v6524_v21, 7  ;;  %v11172_v27 = vrot.slane %v6524_v21, 2  ;;  %v11173_v30 = vrot.slane %v6225_v52, 2 }
 0x10d   : > { %vm11174_vm0 = vcmp.lt.s32.totalorder %v5856_v48, 6  ;;  %v6656_v3 = vmul.f32 %v5497_v11, %v6351_v19  ;;  %v11176_v24 = vand.u32 15, %v6469_v7  ;;  %v11177_v9 = vmov 0 }
 0x10e   : > { %v1709_v22 = vsel %vm11174_vm0, %v11173_v30, %v11172_v27  ;;  %v4107_v31 = vpack.c.bf16 %v6288_v36, %v6007_v16  ;;  %v11180_v51 = vrot.slane %v6439_v54, 7  ;;  %v11181_v17 = vrot.slane %v6069_v2, 7 }
 0x10f   : > { %11175 = vst [vmem:[#allocation50_spill] sm:$0xff] %v6656_v3  ;;  %vm6660_vm8 = vcmp.lt.s32.totalorder %v11176_v24, 15  ;;  %vm11182_vm2 = vcmp.lt.s32.totalorder %v5856_v48, 1  ;;  %v11183_v11 = vsel %vm6162_vm13, %v6257_v28, -3.4028235e+38  ;;  %v1666_v37 = vmax.f32 %v6225_v52, %v1634_v15  ;;  %v381_v24 = vpop.f32.mrf.mxu1  ;;  %v5499_v28 = vpop.eup %5498 }
 0x110   : > { %v11178_v9 = vsel %vm6660_vm8, 4294967295, %v11177_v9  ;;  %v6672_v49 = vsel %vm11182_vm2, %v11181_v17, %v11180_v51  ;;  %v2006_v19 = vmax.f32 %v1723_v57, %v11183_v11  ;;  %v10664_v10 = vrot.slane %v6524_v21, 6  ;;  %4369 = vmatmul.bf16.gmra.mxu2 %v4107_v31  ;;  %v5501_v11 = vpop.eup %5500 }
 0x111   : > { %11179 = vst [vmem:[#allocation51_spill] sm:$0xff] %v11178_v9  ;;  %v11184_v50 = vrot.slane %v6439_v54, 6  ;;  %v11185_v16 = vrot.slane %v6069_v2, 6  ;;  %vm11186_vm0 = vcmp.lt.s32.totalorder %v5856_v48, 2  ;;  %v2017_v27 = vmax.f32 %v1824_v45, %v1874_v59 }
 0x112   : > { %v2018_v30 = vmax.f32 %v6126_v12, %v1986_v47  ;;  %5504 = vpow2.f32 %v511_v26  ;;  %v6689_v57 = vmax.f32 %v1652_v42, %v2006_v19  ;;  %v6691_v15 = vmax.f32 %v1662_v33, %v2016_v58  ;;  %v5503_v33 = vpop.eup %5502 }
 0x113   : > { %v6686_v36 = vsel %vm11186_vm0, %v11185_v16, %v11184_v50  ;;  %v11188_v51 = vsel %vm6327_vm7, %v6406_v34, -3.4028235e+38  ;;  %5506 = vrcp.f32 %v545_v32  ;;  %v6697_v50 = vmax.f32 %v1663_v0, %v2017_v27 }
 0x114   : > { %11187 = vst [vmem:[#allocation52_spill] sm:$0xff] %v6691_v15  ;;  %v2020_v17 = vmax.f32 %v1709_v22, %v11188_v51  ;;  %v6699_v45 = vmax.f32 %v1664_v23, %v2018_v30  ;;  %v11190_v47 = vrot.slane %v6225_v52, 7  ;;  %v10670_v42 = vrot.slane %v6656_v3, 1 }
 0x115   : > { %11189 = vst [vmem:[#allocation53_spill] sm:$0xff] %v6697_v50  ;;  %v11191_v34 = vrot.slane %v6225_v52, 6  ;;  %v6721_v0 = vmul.f32 %v5499_v28, %v6409_v20  ;;  %v6724_v26 = vadd.f32 %v5805_v56, %v381_v24  ;;  %v1580_v58 = vsel %vm6611_vm3, %v6493_v53, -3.4028235e+38 }
 0x116   : > { %v6707_v12 = vsel %vm11182_vm2, %v11190_v47, %v10667_v46  ;;  %v6718_v23 = vmax.f32 %v1666_v37, %v2020_v17  ;;  %v1966_v32 = vsel %vm6617_vm6, %v6514_v39, -3.4028235e+38  ;;  %v11193_v22 = vand.u32 15, %v6469_v7  ;;  %v416_v39 = vpop.f32.mrf.mxu3 }
 0x117   : > { %v6716_v59 = vsel %vm11186_vm0, %v11191_v34, %v10664_v10  ;;  %v11194_v31 = vmov 0  ;;  %v641_v20 = vadd.s32 216, %v5856_v48  ;;  %v6740_v19 = vadd.s32 224, %v5856_v48 }
 0x118   : > { %11192 = vst [vmem:[#allocation54_spill] sm:$0xff] %v6718_v23  ;;  %vm6734_vm2 = vcmp.lt.s32.totalorder %v11193_v22, 14  ;;  %v10671_v16 = vrot.slane %v6721_v0, 1  ;;  %v10672_v53 = vrot.slane %v6721_v0, 7  ;;  %v10674_v27 = vrot.slane %v6721_v0, 2  ;;  %v5505_v30 = vpop.eup %5504 }
 0x119   : > { %v11195_v31 = vsel %vm6734_vm2, 4294967295, %v11194_v31  ;;  %v11197_v7 = vand.u32 15, %v6532_v5  ;;  %v11198_v24 = vmov 0  ;;  %v11202_v51 = vmov 0  ;;  %v5507_v10 = vpop.eup %5506 }
 0x11a   : > { %11196 = vst [vmem:[#allocation55_spill] sm:$0xff] %v11195_v31  ;;  %v11205_v17 = vrot.slane %v6439_v54, 1  ;;  %vm11206_vm3 = vcmp.lt.s32.totalorder %v5856_v48, 7  ;;  %v10676_v34 = vrot.slane %v6721_v0, 6  ;;  %v532_v22 = vadd.f32 1.0, %v5501_v11 }
 0x11b   : > { %vm6748_vm0 = vcmp.ge.s32.totalorder %v11197_v7, 1  ;;  %v11201_v28 = vmov %v11197_v7  ;;  %v523_v7 = vadd.f32 1.0, %v5503_v33  ;;  %v11207_v5 = vrot.slane %v6442_v60, 1  ;;  %vm11208_vm5 = vmmov %vm11206_vm3 }
 0x11c   : > { %v11199_v24 = vsel %vm6748_vm0, 4294967295, %v11198_v24  ;;  %vm6754_vm6 = vcmp.ge.s32.totalorder %v11201_v28, 2  ;;  %v1336_v47 = vsel %vm11206_vm3, %v11205_v17, %v10670_v42  ;;  %v11209_v46 = vrot.slane %v6442_v60, 7 }
 0x11d   : > { %11200 = vst [vmem:[#allocation56_spill] sm:$0xff] %v11199_v24  ;;  %v11203_v51 = vsel %vm6754_vm6, 4294967295, %v11202_v51  ;;  %v1345_v28 = vsel %vm11208_vm5, %v11207_v5, %v10671_v16  ;;  %vm11210_vm15 = vcmp.lt.s32.totalorder %v5856_v48, 1  ;;  %v11211_v11 = vrot.slane %v6442_v60, 2 }
 0x11e   : > { %11204 = vst [vmem:[#allocation57_spill] sm:$0xff] %v11203_v51  ;;  %v6777_v37 = vsel %vm11210_vm15, %v11209_v46, %v10672_v53  ;;  %vm11212_vm3 = vcmp.lt.s32.totalorder %v5856_v48, 6  ;;  %v437_v17 = vsub.f32 0.0, %v6724_v26  ;;  %v1612_v42 = vmax.f32 %v1345_v28, %v1580_v58 }
 0x11f   : > { %v1731_v33 = vsel %vm11212_vm3, %v11211_v11, %v10674_v27  ;;  %v11213_v5 = vrot.slane %v6442_v60, 6  ;;  %vm11214_vm5 = vcmp.lt.s32.totalorder %v5856_v48, 2  ;;  %v6795_v53 = vadd.f32 %v5805_v56, %v416_v39  ;;  %vm11218_vm15 = vmmov %vm11212_vm3 }
 0x120   : > { %v1998_v46 = vmax.f32 %v1731_v33, %v1966_v32  ;;  %v1428_v52 = vsel %vm6660_vm8, %v1336_v47, -3.4028235e+38  ;;  %v10677_v11 = vrot.slane %v6656_v3, 7  ;;  %v546_v27 = vadd.f32 1.0, %v5505_v30 }
 0x121   : > { %v6792_v16 = vsel %vm11214_vm5, %v11213_v5, %v10676_v34  ;;  %v619_v58 = vadd.s32 40, %v5856_v48  ;;  %v10678_v28 = vrot.slane %v6656_v3, 6  ;;  %v6803_v29 = vmul.f32 %v5507_v10, %v6434_v43 }
 0x122   : > { %v1644_v5 = vmax.f32 %v6442_v60, %v1612_v42  ;;  %5508 = vrcp.f32 %v523_v7  ;;  %v2274_v56 = vmax.f32 %v6718_v23, %v6691_v15  ;;  %v839_v32 = vand.u32 15, %v641_v20 }
 0x123   : > { %11215 = vst [vmem:[#allocation58_spill] sm:$0xff] %v6803_v29  ;;  %5510 = vrcp.f32 %v532_v22  ;;  %v485_v39 = vmul.f32 1.442695, %v437_v17  ;;  %v1621_v47 = vmax.f32 %v1428_v52, %v6672_v49  ;;  %v11216_v30 = vrot.slane %v6656_v3, 2 }
 0x124   : > { %v11217_v33 = vrot.slane %v6439_v54, 2  ;;  %v6815_v43 = vmax.f32 %v1644_v5, %v1998_v46  ;;  %v451_v10 = vsub.f32 0.0, %v6795_v53  ;;  %v11219_v42 = vmax.f32 %v6444_v63, %v6423_v1 }
 0x125   : > { %5512 = vrcp.f32 %v546_v27  ;;  %v6825_v52 = vadd.s32 48, %v5856_v48  ;;  %v685_v49 = vand.u32 15, %v619_v58  ;;  %v11221_v22 = vrot.slane %v6439_v54, 7 }
 0x126   : > { %v1722_v34 = vsel %vm11218_vm15, %v11217_v33, %v11216_v30  ;;  %v6822_v20 = vmax.f32 %v6697_v50, %v11219_v42  ;;  %vm11222_vm3 = vcmp.lt.s32.totalorder %v5856_v48, 1  ;;  %v11223_v17 = vrot.slane %v6439_v54, 6 }
 0x127   : > { %v6833_v7 = vsel %vm11222_vm3, %v11221_v22, %v10677_v11  ;;  %v10687_v27 = vrot.slane %v6803_v29, 1  ;;  %v513_v5 = vmul.f32 1.442695, %v451_v10  ;;  %v6845_v58 = vmax.f32 %v6699_v45, %v2274_v56 }
 0x128   : > { %11220 = vst [vmem:[#allocation59_spill] sm:$0xff] %v6822_v20  ;;  %v6841_v46 = vsel %vm11214_vm5, %v11223_v17, %v10678_v28  ;;  %v1814_v30 = vsel %vm6734_vm2, %v1722_v34, -3.4028235e+38  ;;  %v846_v33 = vand.u32 15, %v6740_v19  ;;  %5514 = vpow2.f32 %v485_v39  ;;  %v5509_v42 = vpop.eup %5508 }
 0x129   : > { %11224 = vst [vmem:[#allocation60_spill] sm:$0xff] %v6845_v58  ;;  %v1653_v22 = vmax.f32 %v6439_v54, %v1621_v47  ;;  %vm6851_vm15 = vcmp.lt.s32.totalorder %v839_v32, 15  ;;  %v11225_v11 = vmov 0  ;;  %vm6855_vm3 = vcmp.lt.s32.totalorder %v839_v32, 14  ;;  %v5511_v56 = vpop.eup %5510  ;;  %v358_v32 = vpop.f32.mrf.mxu0 }
 0x12a   : > { %v11226_v11 = vsel %vm6851_vm15, 4294967295, %v11225_v11  ;;  %v11228_v17 = vmov 0  ;;  %5516 = vpow2.f32 %v513_v5  ;;  %v6868_v39 = vmul.f32 %v5509_v42, %v6552_v18 }
 0x12b   : > { %11227 = vst [vmem:[#allocation61_spill] sm:$0xff] %v11226_v11  ;;  %v11229_v17 = vsel %vm6855_vm3, 4294967295, %v11228_v17  ;;  %v2007_v47 = vmax.f32 %v1814_v30, %v6686_v36  ;;  %v11231_v5 = vrot.slane %v6524_v21, 1  ;;  %vm11232_vm5 = vcmp.lt.s32.totalorder %v5856_v48, 7  ;;  %v5513_v34 = vpop.eup %5512  ;;  %v6908_v30 = vld [vmem:[%s10549_s2] ss:$0 sm:$0xff] }
 0x12c   : > { %11230 = vst [vmem:[#allocation62_spill] sm:$0xff] %v11229_v17  ;;  %vm6878_vm2 = vcmp.lt.s32.totalorder %v685_v49, 15  ;;  %v11233_v19 = vmov 0  ;;  %vm6882_vm8 = vcmp.lt.s32.totalorder %v685_v49, 14  ;;  %v11236_v18 = vmov 0 }
 0x12d   : > { %v1322_v10 = vsel %vm11232_vm5, %v11231_v5, %v10687_v27  ;;  %v11234_v19 = vsel %vm6878_vm2, 4294967295, %v11233_v19  ;;  %v11237_v18 = vsel %vm6882_vm8, 4294967295, %v11236_v18  ;;  %v10700_v36 = vrot.slane %v6868_v39, 1 }
 0x12e   : > { %11235 = vst [vmem:[#allocation63_spill] sm:$0xff] %v11234_v19  ;;  %v6889_v42 = vadd.s32 120, %v5856_v48  ;;  %v6891_v14 = vmax.f32 %v1653_v22, %v2007_v47  ;;  %vm6893_vm5 = vcmp.ge.s32.totalorder %v846_v33, 1  ;;  %v11240_v5 = vmov 0  ;;  %v5515_v47 = vpop.eup %5514 }
 0x12f   : > { %11238 = vst [vmem:[#allocation64_spill] sm:$0xff] %v11237_v18  ;;  %v11241_v5 = vsel %vm6893_vm5, 4294967295, %v11240_v5  ;;  %vm6897_vm1 = vcmp.ge.s32.totalorder %v846_v33, 2  ;;  %v11243_v28 = vmov 0  ;;  %v6903_v27 = vmul.f32 %v5511_v56, %v6517_v44 }
 0x130   : > { %11239 = vst [vmem:[#allocation65_spill] sm:$0xff] %v6891_v14  ;;  %v11244_v28 = vsel %vm6897_vm1, 4294967295, %v11243_v28  ;;  %v6911_v22 = vadd.f32 %v6908_v30, %v358_v32  ;;  %v1442_v33 = vsel %vm6851_vm15, %v1322_v10, -3.4028235e+38  ;;  %v11247_v31 = vrot.slane %v6721_v0, 1  ;;  %v5517_v54 = vpop.eup %5516 }
 0x131   : > { %11242 = vst [vmem:[#allocation66_spill] sm:$0xff] %v11241_v5  ;;  %vm11248_vm4 = vcmp.lt.s32.totalorder %v5856_v48, 7  ;;  %v11249_v56 = vrot.slane %v6868_v39, 2  ;;  %v11250_v49 = vrot.slane %v6721_v0, 2  ;;  %vm11251_vm14 = vcmp.lt.s32.totalorder %v5856_v48, 6 }
 0x132   : > { %11245 = vst [vmem:[#allocation67_spill] sm:$0xff] %v11244_v28  ;;  %v1344_v44 = vsel %vm11248_vm4, %v11247_v31, %v10700_v36  ;;  %v6928_v32 = vadd.s32 128, %v5856_v48  ;;  %v6932_v2 = vmul.f32 %v5513_v34, %v6561_v4  ;;  %v418_v36 = vpop.f32.mrf.mxu3  ;;  %v547_v55 = vadd.f32 1.0, %v5517_v54 }
 0x133   : > { %11246 = vst [vmem:[#allocation68_spill] sm:$0xff] %v6903_v27  ;;  %v1730_v9 = vsel %vm11251_vm14, %v11250_v49, %v11249_v56  ;;  %v1420_v13 = vsel %vm6878_vm2, %v1344_v44, -3.4028235e+38  ;;  %v1635_v40 = vmax.f32 %v1442_v33, %v6707_v12  ;;  %v11253_v10 = vrot.slane %v6803_v29, 2 }
 0x134   : > { %11252 = vst [vmem:[#allocation69_spill] sm:$0xff] %v6932_v2  ;;  %v1806_v31 = vsel %vm6882_vm8, %v1730_v9, -3.4028235e+38  ;;  %v1613_v49 = vmax.f32 %v1420_v13, %v6777_v37  ;;  %v11254_v4 = vrot.slane %v6524_v21, 2  ;;  %v428_v9 = vsub.f32 0.0, %v6911_v22  ;;  %v5383_v13 = vld [vmem:[%s10550_s3 + $0x70] sm:$0xff] }
 0x135   : > { %v1999_v56 = vmax.f32 %v1806_v31, %v6792_v16  ;;  %v533_v54 = vadd.f32 1.0, %v5515_v47  ;;  %5518 = vrcp.f32 %v547_v55  ;;  %v6955_v12 = vadd.f32 %v6908_v30, %v418_v36  ;;  %4220 = vmatpush.bf16.msrb.mxu1 %v5383_v13 }
 0x136   : > { %v1708_v34 = vsel %vm11251_vm14, %v11254_v4, %v11253_v10  ;;  %v1645_v37 = vmax.f32 %v6721_v0, %v1613_v49  ;;  %v1315_v16 = vrot.slane %v6932_v2, 1  ;;  %v643_v10 = vadd.s32 232, %v5856_v48  ;;  %v383_v4 = vpop.f32.mrf.mxu1 }
 0x137   : > { %v467_v31 = vmul.f32 1.442695, %v428_v9  ;;  %v1828_v49 = vsel %vm6855_vm3, %v1708_v34, -3.4028235e+38  ;;  %v452_v55 = vsub.f32 0.0, %v6955_v12  ;;  %v11255_v36 = vrot.slane %v6803_v29, 7 }
 0x138   : > { %v6964_v47 = vmax.f32 %v1645_v37, %v1999_v56  ;;  %v11256_v35 = vrot.slane %v6524_v21, 7  ;;  %vm11257_vm4 = vcmp.lt.s32.totalorder %v5856_v48, 1  ;;  %v1667_v9 = vmax.f32 %v6524_v21, %v1635_v40 }
 0x139   : > { %v11258_v13 = vrot.slane %v6803_v29, 6  ;;  %v11259_v44 = vrot.slane %v6524_v21, 6  ;;  %vm11260_vm14 = vcmp.lt.s32.totalorder %v5856_v48, 2  ;;  %5520 = vpow2.f32 %v467_v31 }
 0x13a   : > { %v1483_v33 = vsel %vm11257_vm4, %v11256_v35, %v11255_v36  ;;  %v11261_v56 = vrot.slane %v6903_v27, 1  ;;  %v11262_v37 = vrot.slane %v6656_v3, 1  ;;  %vm11263_vm8 = vcmp.lt.s32.totalorder %v5856_v48, 7 }
 0x13b   : > { %v1869_v34 = vsel %vm11260_vm14, %v11259_v44, %v11258_v13  ;;  %5522 = vrcp.f32 %v533_v54  ;;  %v6988_v40 = vadd.f32 %v6908_v30, %v383_v4  ;;  %v2021_v36 = vmax.f32 %v1828_v49, %v6716_v59  ;;  %vm11265_vm4 = vmmov %vm11263_vm8  ;;  %v5519_v19 = vpop.eup %5518 }
 0x13c   : > { %v1335_v18 = vsel %vm11263_vm8, %v11262_v37, %v11261_v56  ;;  %v11264_v21 = vrot.slane %v6803_v29, 1  ;;  %v853_v31 = vand.u32 15, %v643_v10  ;;  %v515_v13 = vmul.f32 1.442695, %v452_v55 }
 0x13d   : > { %v1604_v6 = vsel %vm6893_vm5, %v1483_v33, -3.4028235e+38  ;;  %v1990_v54 = vsel %vm6897_vm1, %v1869_v34, -3.4028235e+38  ;;  %v10720_v4 = vrot.slane %v6903_v27, 2  ;;  %v7001_v37 = vmax.f32 %v1667_v9, %v2021_v36 }
 0x13e   : > { %v1321_v44 = vsel %vm11265_vm4, %v11264_v21, %v1315_v16  ;;  %v11267_v59 = vsel %vm6748_vm0, %v6833_v7, -3.4028235e+38  ;;  %v1701_v10 = vrot.slane %v6932_v2, 2  ;;  %v7009_v49 = vmul.f32 %v5519_v19, %v6795_v53 }
 0x13f   : > { %11266 = vst [vmem:[#allocation70_spill] sm:$0xff] %v7001_v37  ;;  %v1622_v21 = vmax.f32 %v1335_v18, %v11267_v59  ;;  %v1636_v55 = vmax.f32 %v1321_v44, %v1604_v6  ;;  %v438_v34 = vsub.f32 0.0, %v6988_v40  ;;  %5524 = vpow2.f32 %v515_v13  ;;  %v5521_v35 = vpop.eup %5520 }
 0x140   : > { %11268 = vst [vmem:[#allocation71_spill] sm:$0xff] %v7009_v49  ;;  %vm7013_vm8 = vcmp.lt.s32.totalorder %v853_v31, 15  ;;  %v11269_v9 = vmov 0  ;;  %vm7017_vm14 = vcmp.lt.s32.totalorder %v853_v31, 14  ;;  %v11272_v36 = vmov 0 }
 0x141   : > { %v11270_v9 = vsel %vm7013_vm8, 4294967295, %v11269_v9  ;;  %v11273_v36 = vsel %vm7017_vm14, 4294967295, %v11272_v36  ;;  %v5523_v19 = vpop.eup %5522  ;;  %v11275_v6 = vrot.slane %v6656_v3, 2  ;;  %vm11276_vm4 = vcmp.lt.s32.totalorder %v5856_v48, 6 }
 0x142   : > { %11271 = vst [vmem:[#allocation72_spill] sm:$0xff] %v11270_v9  ;;  %v524_v31 = vadd.f32 1.0, %v5521_v35  ;;  %v1654_v59 = vmax.f32 %v6656_v3, %v1622_v21  ;;  %v11277_v56 = vrot.slane %v6803_v29, 2  ;;  %vm11278_vm2 = vmmov %vm11276_vm4  ;;  %v11279_v53 = vand.u32 15, %v6825_v52 }
 0x143   : > { %11274 = vst [vmem:[#allocation73_spill] sm:$0xff] %v11273_v36  ;;  %v1721_v18 = vsel %vm11276_vm4, %v11275_v6, %v10720_v4  ;;  %v11280_v7 = vmov 0  ;;  %v11283_v6 = vrot.slane %v7009_v49, 1  ;;  %vm11284_vm4 = vcmp.lt.s32.totalorder %v5856_v48, 7  ;;  %vm11286_vm13 = vmmov %vm11278_vm2 }
 0x144   : > { %v1707_v33 = vsel %vm11278_vm2, %v11277_v56, %v1701_v10  ;;  %vm7038_vm0 = vcmp.ge.s32.totalorder %v11279_v53, 1  ;;  %v11285_v35 = vrot.slane %v7009_v49, 2  ;;  %v11287_v44 = vrot.slane %v6932_v2, 7 }
 0x145   : > { %v11281_v7 = vsel %vm7038_vm0, 4294967295, %v11280_v7  ;;  %v1320_v4 = vsel %vm11284_vm4, %v1315_v16, %v11283_v6  ;;  %v11288_v56 = vrot.slane %v6803_v29, 7  ;;  %vm11289_vm2 = vcmp.lt.s32.totalorder %v5856_v48, 1 }
 0x146   : > { %11282 = vst [vmem:[#allocation74_spill] sm:$0xff] %v11281_v7  ;;  %v1706_v21 = vsel %vm11286_vm13, %v1701_v10, %v11285_v35  ;;  %v11290_v13 = vand.u32 15, %v6825_v52  ;;  %v11291_v24 = vmov 0  ;;  %v1444_v16 = vsel %vm7013_vm8, %v1320_v4, -3.4028235e+38 }
 0x147   : > { %v1482_v53 = vsel %vm11289_vm2, %v11288_v56, %v11287_v44  ;;  %v1830_v6 = vsel %vm7017_vm14, %v1706_v21, -3.4028235e+38  ;;  %v487_v10 = vmul.f32 1.442695, %v438_v34  ;;  %v1668_v35 = vmax.f32 %v6803_v29, %v1636_v55  ;;  %v5525_v56 = vpop.eup %5524 }
 0x148   : > { %vm7058_vm12 = vcmp.ge.s32.totalorder %v11290_v13, 2  ;;  %v7068_v58 = vmul.f32 %v5523_v19, %v6724_v26  ;;  %v11295_v44 = vand.u32 15, %v6889_v42  ;;  %v11296_v52 = vmov 0 }
 0x149   : > { %v11292_v24 = vsel %vm7058_vm12, 4294967295, %v11291_v24  ;;  %v1637_v13 = vmax.f32 %v1444_v16, %v1482_v53  ;;  %5526 = vrcp.f32 %v524_v31  ;;  %v11299_v4 = vsel %vm6754_vm6, %v6841_v46, -3.4028235e+38  ;;  %vm11311_vm6 = vmmov %vm11289_vm2 }
 0x14a   : > { %11293 = vst [vmem:[#allocation75_spill] sm:$0xff] %v11292_v24  ;;  %vm7072_vm13 = vcmp.lt.s32.totalorder %v11295_v44, 15  ;;  %v2008_v21 = vmax.f32 %v1721_v18, %v11299_v4  ;;  %v11300_v34 = vrot.slane %v6932_v2, 6  ;;  %v11301_v55 = vrot.slane %v6803_v29, 6 }
 0x14b   : > { %11294 = vst [vmem:[#allocation76_spill] sm:$0xff] %v7068_v58  ;;  %v11297_v52 = vsel %vm7072_vm13, 4294967295, %v11296_v52  ;;  %vm11302_vm4 = vcmp.lt.s32.totalorder %v5856_v48, 2  ;;  %v2022_v19 = vmax.f32 %v1707_v33, %v1990_v54  ;;  %v644_v44 = vadd.s32 240, %v5856_v48 }
 0x14c   : > { %11298 = vst [vmem:[#allocation77_spill] sm:$0xff] %v11297_v52  ;;  %v1868_v26 = vsel %vm11302_vm4, %v11301_v55, %v11300_v34  ;;  %v10734_v36 = vrot.slane %v6868_v39, 7  ;;  %v1669_v31 = vmax.f32 %v6932_v2, %v1637_v13  ;;  %v548_v16 = vadd.f32 1.0, %v5525_v56 }
 0x14d   : > { %v2023_v53 = vmax.f32 %v1830_v6, %v1868_v26  ;;  %v7089_v51 = vmax.f32 %v1654_v59, %v2008_v21  ;;  %v10733_v46 = vrot.slane %v6868_v39, 6  ;;  %5528 = vpow2.f32 %v487_v10  ;;  %v361_v21 = vpop.f32.mrf.mxu0 }
 0x14e   : > { %v4108_v18 = vpack.c.bf16 %v6721_v0, %v6442_v60  ;;  %v7094_v4 = vmax.f32 %v1668_v35, %v2022_v19  ;;  %v10735_v54 = vrot.slane %v7068_v58, 1  ;;  %5530 = vrcp.f32 %v548_v16 }
 0x14f   : > { %v7097_v33 = vmax.f32 %v1669_v31, %v2023_v53  ;;  %v11304_v6 = vrot.slane %v6903_v27, 7  ;;  %v11305_v59 = vrot.slane %v6656_v3, 7  ;;  %v11306_v56 = vand.u32 15, %v6889_v42  ;;  %v5527_v34 = vpop.eup %5526 }
 0x150   : > { %11303 = vst [vmem:[#allocation78_spill] sm:$0xff] %v7094_v4  ;;  %v11307_v60 = vmov 0  ;;  %v645_v35 = vadd.s32 248, %v5856_v48  ;;  %4374 = vmatmul.bf16.gmra.mxu2 %v4108_v18  ;;  %v11310_v55 = vrot.slane %v6721_v0, 7  ;;  %v10740_v19 = vrot.slane %v7068_v58, 2 }
 0x151   : > { %v1496_v10 = vsel %vm11289_vm2, %v11305_v59, %v11304_v6  ;;  %vm7109_vm4 = vcmp.lt.s32.totalorder %v11306_v56, 14  ;;  %v860_v31 = vand.u32 15, %v644_v44  ;;  %v11312_v16 = vrot.slane %v6903_v27, 6 }
 0x152   : > { %v11308_v60 = vsel %vm7109_vm4, 4294967295, %v11307_v60  ;;  %v1505_v26 = vsel %vm11311_vm6, %v11310_v55, %v10734_v36  ;;  %v11313_v18 = vrot.slane %v6656_v3, 6  ;;  %vm11314_vm2 = vcmp.lt.s32.totalorder %v5856_v48, 2 }
 0x153   : > { %11309 = vst [vmem:[#allocation79_spill] sm:$0xff] %v11308_v60  ;;  %v11315_v59 = vrot.slane %v6721_v0, 6  ;;  %vm11316_vm6 = vmmov %vm11314_vm2  ;;  %v7138_v56 = vmul.f32 %v5527_v34, %v6911_v22  ;;  %v7151_v0 = vadd.f32 %v6908_v30, %v361_v21  ;;  %v1582_v22 = vsel %vm7038_vm0, %v1505_v26, -3.4028235e+38 }
 0x154   : > { %v1882_v6 = vsel %vm11314_vm2, %v11313_v18, %v11312_v16  ;;  %v11317_v16 = vrot.slane %v6903_v27, 1  ;;  %vm11318_vm2 = vcmp.lt.s32.totalorder %v5856_v48, 7  ;;  %vm7169_vm0 = vcmp.ge.s32.totalorder %v860_v31, 2 }
 0x155   : > { %v1891_v44 = vsel %vm11316_vm6, %v11315_v59, %v10733_v46  ;;  %v5529_v59 = vpop.eup %5528  ;;  %v10749_v34 = vrot.slane %v7138_v56, 1  ;;  %v10754_v55 = vrot.slane %v7138_v56, 2  ;;  %v867_v46 = vand.u32 15, %v645_v35 }
 0x156   : > { %v1334_v18 = vsel %vm11318_vm2, %v11317_v16, %v10735_v54  ;;  %v5531_v36 = vpop.eup %5530  ;;  %v1968_v42 = vsel %vm7058_vm12, %v1891_v44, -3.4028235e+38  ;;  %v11319_v16 = vrot.slane %v6903_v27, 2  ;;  %vm11320_vm6 = vcmp.lt.s32.totalorder %v5856_v48, 6 }
 0x157   : > { %vm7165_vm2 = vcmp.ge.s32.totalorder %v860_v31, 1  ;;  %v11321_v54 = vmov 0  ;;  %v11324_v26 = vmov 0  ;;  %v1430_v35 = vsel %vm7072_vm13, %v1334_v18, -3.4028235e+38 }
 0x158   : > { %v1720_v21 = vsel %vm11320_vm6, %v11319_v16, %v10740_v19  ;;  %v11322_v54 = vsel %vm7165_vm2, 4294967295, %v11321_v54  ;;  %v11325_v26 = vsel %vm7169_vm0, 4294967295, %v11324_v26  ;;  %v1477_v44 = vrot.slane %v7009_v49, 7 }
 0x159   : > { %11323 = vst [vmem:[#allocation80_spill] sm:$0xff] %v11322_v54  ;;  %v11327_v53 = vrot.slane %v6868_v39, 1  ;;  %vm11328_vm12 = vcmp.lt.s32.totalorder %v5856_v48, 7  ;;  %v11329_v19 = vrot.slane %v6868_v39, 2  ;;  %v1863_v13 = vrot.slane %v7009_v49, 6 }
 0x15a   : > { %11326 = vst [vmem:[#allocation81_spill] sm:$0xff] %v11325_v26  ;;  %v7190_v18 = vmul.f32 %v5531_v36, %v6955_v12  ;;  %v429_v52 = vsub.f32 0.0, %v7151_v0  ;;  %v11331_v3 = vand.u32 15, %v6928_v32  ;;  %v11332_v24 = vmov 0 }
 0x15b   : > { %v1343_v16 = vsel %vm11328_vm12, %v11327_v53, %v10749_v34  ;;  %v1729_v31 = vsel %vm11320_vm6, %v11329_v19, %v10754_v55  ;;  %v534_v7 = vadd.f32 1.0, %v5529_v59  ;;  %vm7201_vm12 = vcmp.lt.s32.totalorder %v867_v46, 15  ;;  %v386_v59 = vpop.f32.mrf.mxu1 }
 0x15c   : > { %v1614_v29 = vmax.f32 %v1343_v16, %v1582_v22  ;;  %11330 = vst [vmem:[#allocation82_spill] sm:$0xff] %v7190_v18  ;;  %vm7195_vm13 = vcmp.ge.s32.totalorder %v11331_v3, 1  ;;  %v11335_v19 = vmov 0  ;;  %v11338_v12 = vmov %v11331_v3 }
 0x15d   : > { %v11333_v24 = vsel %vm7195_vm13, 4294967295, %v11332_v24  ;;  %v11336_v19 = vsel %vm7201_vm12, 4294967295, %v11335_v19  ;;  %vm7207_vm6 = vcmp.ge.s32.totalorder %v11338_v12, 2  ;;  %v11339_v36 = vmov 0 }
 0x15e   : > { %11334 = vst [vmem:[#allocation83_spill] sm:$0xff] %v11333_v24  ;;  %v11340_v36 = vsel %vm7207_vm6, 4294967295, %v11339_v36  ;;  %v1816_v3 = vsel %vm7109_vm4, %v1720_v21, -3.4028235e+38  ;;  %v1646_v22 = vmax.f32 %v6868_v39, %v1614_v29  ;;  %v2000_v16 = vmax.f32 %v1729_v31, %v1968_v42 }
 0x15f   : > { %11337 = vst [vmem:[#allocation84_spill] sm:$0xff] %v11336_v19  ;;  %vm7214_vm14 = vcmp.lt.s32.totalorder %v867_v46, 14  ;;  %v11342_v55 = vmov 0  ;;  %v1623_v34 = vmax.f32 %v1430_v35, %v1496_v10  ;;  %v11345_v53 = vrot.slane %v6932_v2, 7 }
 0x160   : > { %11341 = vst [vmem:[#allocation85_spill] sm:$0xff] %v11340_v36  ;;  %v11343_v55 = vsel %vm7214_vm14, 4294967295, %v11342_v55  ;;  %vm11346_vm10 = vcmp.lt.s32.totalorder %v5856_v48, 1  ;;  %v1317_v12 = vrot.slane %v7190_v18, 1  ;;  %v11347_v21 = vrot.slane %v6932_v2, 6 }
 0x161   : > { %11344 = vst [vmem:[#allocation86_spill] sm:$0xff] %v11343_v55  ;;  %v1481_v32 = vsel %vm11346_vm10, %v11345_v53, %v1477_v44  ;;  %vm11348_vm4 = vcmp.lt.s32.totalorder %v5856_v48, 2  ;;  %v7228_v46 = vmax.f32 %v1646_v22, %v2000_v16  ;;  %v1703_v42 = vrot.slane %v7190_v18, 2 }
 0x162   : > { %v1867_v29 = vsel %vm11348_vm4, %v11347_v21, %v1863_v13  ;;  %v469_v31 = vmul.f32 1.442695, %v429_v52  ;;  %v11350_v10 = vrot.slane %v7068_v58, 7  ;;  %v11351_v35 = vrot.slane %v6903_v27, 7 }
 0x163   : > { %11349 = vst [vmem:[#allocation87_spill] sm:$0xff] %v7228_v46  ;;  %5532 = vrcp.f32 %v534_v7  ;;  %v11352_v20 = vrot.slane %v7009_v49, 1  ;;  %vm11353_vm9 = vcmp.lt.s32.totalorder %v5856_v48, 7  ;;  %v7244_v22 = vadd.f32 %v6908_v30, %v386_v59 }
 0x164   : > { %v7237_v53 = vsel %vm11346_vm10, %v11351_v35, %v11350_v10  ;;  %v2009_v16 = vmax.f32 %v1816_v3, %v1882_v6  ;;  %v1606_v52 = vsel %vm7165_vm2, %v1481_v32, -3.4028235e+38  ;;  %v11354_v21 = vrot.slane %v5869_v62, 1  ;;  %vm11355_vm4 = vmmov %vm11353_vm9 }
 0x165   : > { %v1319_v2 = vsel %vm11353_vm9, %v11352_v20, %v1317_v12  ;;  %v11356_v10 = vrot.slane %v7190_v18, 7  ;;  %v1655_v35 = vmax.f32 %v6903_v27, %v1623_v34  ;;  %v1992_v20 = vsel %vm7169_vm0, %v1867_v29, -3.4028235e+38 }
 0x166   : > { %v1350_v60 = vsel %vm11355_vm4, %v1317_v12, %v11354_v21  ;;  %v1638_v3 = vmax.f32 %v1319_v2, %v1606_v52  ;;  %v11357_v32 = vrot.slane %v7009_v49, 2  ;;  %vm11358_vm9 = vcmp.lt.s32.totalorder %v5856_v48, 6 }
 0x167   : > { %v1480_v7 = vsel %vm11346_vm10, %v1477_v44, %v11356_v10  ;;  %v1446_v6 = vsel %vm7201_vm12, %v1350_v60, -3.4028235e+38  ;;  %v11359_v21 = vrot.slane %v5869_v62, 2  ;;  %vm11360_vm4 = vmmov %vm11358_vm9  ;;  %5534 = vpow2.f32 %v469_v31 }
 0x168   : > { %v1639_v59 = vmax.f32 %v1446_v6, %v1480_v7  ;;  %v1705_v12 = vsel %vm11358_vm9, %v11357_v32, %v1703_v42  ;;  %v1670_v34 = vmax.f32 %v7009_v49, %v1638_v3  ;;  %v10767_v60 = vrot.slane %v7190_v18, 6 }
 0x169   : > { %v1736_v44 = vsel %vm11360_vm4, %v1703_v42, %v11359_v21  ;;  %v439_v2 = vsub.f32 0.0, %v7244_v22  ;;  %v11361_v52 = vrot.slane %v7068_v58, 6  ;;  %v11362_v10 = vrot.slane %v6903_v27, 6  ;;  %v5533_v32 = vpop.eup %5532 }
 0x16a   : > { %v1832_v29 = vsel %vm7214_vm14, %v1736_v44, -3.4028235e+38  ;;  %vm11363_vm10 = vcmp.lt.s32.totalorder %v5856_v48, 2  ;;  %v11364_v42 = vmax.f32 %v7001_v37, %v6697_v50  ;;  %v1671_v6 = vmax.f32 %v7190_v18, %v1639_v59 }
 0x16b   : > { %v7280_v7 = vsel %vm11363_vm10, %v11362_v10, %v11361_v52  ;;  %v2024_v3 = vmax.f32 %v1705_v12, %v1992_v20  ;;  %v7287_v21 = vmax.f32 %v1655_v35, %v2009_v16  ;;  %vm11365_vm9 = vmmov %vm11363_vm10  ;;  %v1592_v10 = vsel %vm7195_vm13, %v7237_v53, -3.4028235e+38 }
 0x16c   : > { %v2307_v31 = vmax.f32 %v6444_v63, %v11364_v42  ;;  %v1866_v49 = vsel %vm11365_vm9, %v1863_v13, %v10767_v60  ;;  %v2277_v16 = vmax.f32 %v7097_v33, %v6444_v63  ;;  %v11366_v20 = vmax.f32 %v7094_v4, %v6699_v45 }
 0x16d   : > { %v2025_v42 = vmax.f32 %v1832_v29, %v1866_v49  ;;  %v7298_v26 = vmax.f32 %v1670_v34, %v2024_v3  ;;  %v2534_v59 = vmax.f32 %v6699_v45, -3.4028235e+38  ;;  %v489_v12 = vmul.f32 1.442695, %v439_v2  ;;  %v5535_v60 = vpop.eup %5534  ;;  %v363_v3 = vpop.f32.mrf.mxu0 }
 0x16e   : > { %v2308_v13 = vmax.f32 %v6718_v23, %v11366_v20  ;;  %v7311_v49 = vmul.f32 %v5533_v32, %v6988_v40  ;;  %v11368_v20 = vmax.f32 %v7097_v33, %v6423_v1  ;;  %v2535_v40 = vmax.f32 %v6444_v63, -3.4028235e+38  ;;  %v5392_v32 = vld [vmem:[%s10550_s3 + $0xb8] sm:$0xff] }
 0x16f   : > { %v7313_v53 = vmax.f32 %v1671_v6, %v2025_v42  ;;  %v2278_v34 = vmax.f32 %v7298_v26, %v6718_v23  ;;  %v2532_v29 = vmax.f32 %v7298_v26, %v6691_v15  ;;  %v2309_v52 = vmax.f32 %v7001_v37, %v2277_v16  ;;  %4526 = vmatpush.bf16.msrb.mxu3 %v5392_v32 }
 0x170   : > { %11367 = vst [vmem:[#allocation88_spill] sm:$0xff] %v7311_v49  ;;  %v7324_v2 = vmax.f32 %v2307_v31, %v11368_v20  ;;  %v525_v20 = vadd.f32 1.0, %v5535_v60  ;;  %5536 = vpow2.f32 %v489_v12  ;;  %v7340_v6 = vadd.f32 %v6908_v30, %v363_v3 }
 0x171   : > { %v2279_v42 = vmax.f32 %v7313_v53, %v7001_v37  ;;  %v2310_v35 = vmax.f32 %v7094_v4, %v2278_v34  ;;  %v2533_v44 = vmax.f32 %v7313_v53, %v6697_v50  ;;  %v7337_v31 = vmax.f32 %v2308_v13, %v2532_v29 }
 0x172   : > { %11369 = vst [vmem:[#allocation89_spill] sm:$0xff] %v7324_v2  ;;  %v10777_v54 = vrot.slane %v7311_v49, 1  ;;  %v10775_v34 = vrot.slane %v7324_v2, 7  ;;  %vm11374_vm4 = vcmp.lt.s32.totalorder %v5856_v48, 1  ;;  %5538 = vrcp.f32 %v525_v20 }
 0x173   : > { %11370 = vst [vmem:[#allocation90_spill] sm:$0xff] %v7337_v31  ;;  %v2311_v27 = vmax.f32 %v7097_v33, %v2279_v42  ;;  %v7344_v55 = vmax.f32 %v2309_v52, %v2533_v44  ;;  %v7346_v16 = vmax.f32 %v2310_v35, %v2534_v59  ;;  %v10778_v13 = vrot.slane %v7337_v31, 1 }
 0x174   : > { %v10776_v60 = vrot.slane %v7337_v31, 7  ;;  %vm11376_vm10 = vcmp.lt.s32.totalorder %v5856_v48, 7  ;;  %v430_v19 = vsub.f32 0.0, %v7340_v6  ;;  %v10797_v24 = vrot.slane %v7311_v49, 2 }
 0x175   : > { %11371 = vst [vmem:[#allocation91_spill] sm:$0xff] %v7344_v55  ;;  %v7352_v12 = vmax.f32 %v2311_v27, %v2535_v40  ;;  %v10779_v29 = vrot.slane %v7344_v55, 1  ;;  %v10789_v3 = vrot.slane %v7346_v16, 1  ;;  %v10785_v32 = vrot.slane %v7344_v55, 7  ;;  %vm11377_vm9 = vmmov %vm11376_vm10 }
 0x176   : > { %11372 = vst [vmem:[#allocation92_spill] sm:$0xff] %v7346_v16  ;;  %v10784_v52 = vrot.slane %v7346_v16, 7  ;;  %v2703_v35 = vsel %vm11374_vm4, %v10775_v34, %v10776_v60  ;;  %v11375_v27 = vrot.slane %v7068_v58, 1  ;;  %v5537_v34 = vpop.eup %5536  ;;  %v10793_v1 = vrot.slane %v7346_v16, 2 }
 0x177   : > { %11373 = vst [vmem:[#allocation93_spill] sm:$0xff] %v7352_v12  ;;  %v10788_v40 = vrot.slane %v7352_v12, 1  ;;  %v2606_v42 = vsel %vm11377_vm9, %v10778_v13, %v10779_v29  ;;  %v11384_v5 = vrot.slane %v7138_v56, 7  ;;  %v11399_v61 = vmax.f32 %v6718_v23, -3.4028235e+38 }
 0x178   : > { %v1333_v59 = vsel %vm11376_vm10, %v11375_v27, %v10777_v54  ;;  %v11378_v27 = vand.u32 15, %v5856_v48  ;;  %v11379_v54 = vmov 0  ;;  %vm11382_vm10 = vcmp.lt.s32.totalorder %v5856_v48, 1 }
 0x179   : > { %v2701_v13 = vsel %vm11382_vm10, %v10785_v32, %v10784_v52  ;;  %v2604_v20 = vsel %vm11377_vm9, %v10789_v3, %v10788_v40  ;;  %v1624_v44 = vmax.f32 %v1333_v59, %v1592_v10  ;;  %v10802_v32 = vrot.slane %v7344_v55, 2  ;;  %v5539_v3 = vpop.eup %5538 }
 0x17a   : > { %vm7384_vm4 = vcmp.ge.s32.totalorder %v11378_v27, 1  ;;  %v2756_v27 = vsel %vm6323_vm11, %v2703_v35, -3.4028235e+38  ;;  %v2758_v60 = vsel %vm6893_vm5, %v2701_v13, -3.4028235e+38  ;;  %v10792_v40 = vrot.slane %v7352_v12, 2 }
 0x17b   : > { %v11380_v54 = vsel %vm7384_vm4, 4294967295, %v11379_v54  ;;  %v2788_v15 = vmax.f32 %v2606_v42, %v2756_v27  ;;  %v7407_v29 = vmax.f32 %v2604_v20, %v2758_v60  ;;  %v11385_v10 = vrot.slane %v6868_v39, 7 }
 0x17c   : > { %11381 = vst [vmem:[#allocation94_spill] sm:$0xff] %v11380_v54  ;;  %v11386_v60 = vand.u32 15, %v5856_v48  ;;  %v11387_v59 = vmov 0  ;;  %v11390_v42 = vmax.f32 %v7094_v4, -3.4028235e+38  ;;  %v535_v27 = vadd.f32 1.0, %v5537_v34 }
 0x17d   : > { %11383 = vst [vmem:[#allocation95_spill] sm:$0xff] %v7407_v29  ;;  %v7419_v13 = vsel %vm11382_vm10, %v11385_v10, %v11384_v5  ;;  %vm11391_vm10 = vcmp.lt.s32.totalorder %v5856_v48, 6  ;;  %v621_v10 = vadd.s32 56, %v5856_v48  ;;  %v1656_v52 = vmax.f32 %v7068_v58, %v1624_v44  ;;  %v11540_v29 = vld [vmem:[#allocation5_spill] sm:$0xff] }
 0x17e   : > { %vm7423_vm9 = vcmp.ge.s32.totalorder %v11386_v60, 2  ;;  %v2312_v20 = vmax.f32 %v7298_v26, %v11390_v42  ;;  %v2860_v5 = vsel %vm11391_vm10, %v10793_v1, %v10792_v40  ;;  %v7439_v60 = vadd.s32 64, %v5856_v48  ;;  %vm11393_vm5 = vmmov %vm11391_vm10 }
 0x17f   : > { %v11388_v59 = vsel %vm7423_vm9, 4294967295, %v11387_v59  ;;  %v11392_v26 = vrot.slane %v7068_v58, 2  ;;  %v11394_v42 = vrot.slane %v5869_v62, 7  ;;  %v11395_v35 = vrot.slane %v7190_v18, 7  ;;  %vm11398_vm11 = vmmov %vm11393_vm5 }
 0x180   : > { %11389 = vst [vmem:[#allocation96_spill] sm:$0xff] %v11388_v59  ;;  %vm11396_vm10 = vcmp.lt.s32.totalorder %v5856_v48, 1  ;;  %v10803_v1 = vrot.slane %v7337_v31, 6  ;;  %v11397_v44 = vrot.slane %v7337_v31, 2  ;;  %v10805_v4 = vrot.slane %v7344_v55, 6 }
 0x181   : > { %v1719_v34 = vsel %vm11393_vm5, %v11392_v26, %v10797_v24  ;;  %v1511_v40 = vsel %vm11396_vm10, %v11395_v35, %v11394_v42  ;;  %v10804_v26 = vrot.slane %v7346_v16, 6  ;;  %v7464_v24 = vmul.f32 %v5539_v3, %v7151_v0 }
 0x182   : > { %v2862_v25 = vsel %vm11398_vm11, %v11397_v44, %v10802_v32  ;;  %v7468_v50 = vmax.f32 %v2312_v20, %v11399_v61  ;;  %v2820_v35 = vmax.f32 %v7337_v31, %v2788_v15  ;;  %v11401_v42 = vrot.slane %v7324_v2, 6 }
 0x183   : > { %vm11402_vm5 = vcmp.lt.s32.totalorder %v5856_v48, 2  ;;  %5540 = vrcp.f32 %v535_v27  ;;  %v11403_v0 = vsel %vm7207_vm6, %v7280_v7, -3.4028235e+38  ;;  %v1576_v7 = vsel %vm7384_vm4, %v1511_v40, -3.4028235e+38 }
 0x184   : > { %11400 = vst [vmem:[#allocation97_spill] sm:$0xff] %v7468_v50  ;;  %v2959_v44 = vsel %vm11402_vm5, %v11401_v42, %v10803_v1  ;;  %v2010_v3 = vmax.f32 %v1719_v34, %v11403_v0  ;;  %vm11404_vm11 = vmmov %vm11402_vm5  ;;  %v699_v42 = vand.u32 15, %v621_v10  ;;  %v471_v0 = vmul.f32 1.442695, %v430_v19 }
 0x185   : > { %v2957_v61 = vsel %vm11404_vm11, %v10805_v4, %v10804_v26  ;;  %v3012_v15 = vsel %vm6327_vm7, %v2959_v44, -3.4028235e+38  ;;  %v11406_v26 = vrot.slane %v5869_v62, 6  ;;  %v11407_v4 = vrot.slane %v7190_v18, 6  ;;  %vm11408_vm10 = vmmov %vm11402_vm5 }
 0x186   : > { %v3014_v20 = vsel %vm6897_vm1, %v2957_v61, -3.4028235e+38  ;;  %v3044_v27 = vmax.f32 %v2862_v25, %v3012_v15  ;;  %v7493_v32 = vmax.f32 %v1656_v52, %v2010_v3  ;;  %v10806_v25 = vrot.slane %v7468_v50, 1  ;;  %vm11415_vm11 = vmmov %vm11408_vm10 }
 0x187   : > { %v7497_v34 = vmax.f32 %v2860_v5, %v3014_v20  ;;  %v1897_v44 = vsel %vm11408_vm10, %v11407_v4, %v11406_v26  ;;  %v11409_v10 = vrot.slane %v7346_v16, 1  ;;  %v11410_v52 = vrot.slane %v7344_v55, 1 }
 0x188   : > { %vm11411_vm5 = vcmp.lt.s32.totalorder %v5856_v48, 7  ;;  %v7512_v40 = vmax.f32 %v2820_v35, %v3044_v27  ;;  %v11413_v19 = vrot.slane %v7138_v56, 6  ;;  %v11414_v5 = vrot.slane %v6868_v39, 6 }
 0x189   : > { %11405 = vst [vmem:[#allocation98_spill] sm:$0xff] %v7497_v34  ;;  %v2605_v3 = vsel %vm11411_vm5, %v11410_v52, %v11409_v10  ;;  %v11416_v4 = vrot.slane %v7311_v49, 7  ;;  %v11417_v26 = vrot.slane %v7068_v58, 7  ;;  %vm11418_vm10 = vcmp.lt.s32.totalorder %v5856_v48, 1  ;;  %vm11421_vm5 = vmmov %vm11415_vm11  ;;  %v5541_v52 = vpop.eup %5540 }
 0x18a   : > { %11412 = vst [vmem:[#allocation99_spill] sm:$0xff] %v7512_v40  ;;  %v1890_v61 = vsel %vm11415_vm11, %v11414_v5, %v11413_v19  ;;  %v11419_v20 = vrot.slane %v7311_v49, 6  ;;  %v11420_v35 = vrot.slane %v7068_v58, 6  ;;  %v11422_v19 = vld [vmem:[#allocation8_spill] sm:$0xff]  ;;  %v11423_v1 = vrot.slane %v7352_v12, 1 }
 0x18b   : > { %v7526_v15 = vsel %vm11418_vm10, %v11417_v26, %v11416_v4  ;;  %v7538_v5 = vmax.f32 %v11422_v19, %v1576_v7  ;;  %vm11424_vm11 = vcmp.lt.s32.totalorder %v5856_v48, 7  ;;  %vm7546_vm10 = vcmp.lt.s32.totalorder %v699_v42, 15 }
 0x18c   : > { %v7534_v27 = vsel %vm11421_vm5, %v11420_v35, %v11419_v20  ;;  %v2603_v4 = vsel %vm11424_vm11, %v11423_v1, %v10806_v25  ;;  %v11425_v26 = vmov 0  ;;  %v11428_v20 = vrot.slane %v7464_v24, 1  ;;  %vm11430_vm5 = vmmov %vm11424_vm11 }
 0x18d   : > { %v11426_v26 = vsel %vm7546_vm10, 4294967295, %v11425_v26  ;;  %v11429_v35 = vrot.slane %v7138_v56, 1  ;;  %v2264_v7 = vmax.f32 %v7493_v32, %v6689_v57  ;;  %v1962_v19 = vsel %vm7423_vm9, %v1897_v44, -3.4028235e+38 }
 0x18e   : > { %11427 = vst [vmem:[#allocation8_spill] sm:$0xff] %v11426_v26  ;;  %v2661_v1 = vsel %vm6851_vm15, %v2605_v3, -3.4028235e+38  ;;  %v706_v25 = vand.u32 15, %v7439_v60  ;;  %v11431_v28 = vrot.slane %v7344_v55, 7  ;;  %v11432_v41 = vrot.slane %v7337_v31, 7 }
 0x18f   : > { %v1342_v10 = vsel %vm11430_vm5, %v11429_v35, %v11428_v20  ;;  %vm11433_vm11 = vcmp.lt.s32.totalorder %v5856_v48, 1  ;;  %v631_v35 = vadd.s32 136, %v5856_v48  ;;  %5542 = vpow2.f32 %v471_v0 }
 0x190   : > { %v2702_v18 = vsel %vm11433_vm11, %v11432_v41, %v11431_v28  ;;  %v2663_v44 = vsel %vm7013_vm8, %v2603_v4, -3.4028235e+38  ;;  %v11434_v11 = vrot.slane %v7352_v12, 7  ;;  %v11435_v3 = vrot.slane %v7346_v16, 7  ;;  %vm11436_vm5 = vmmov %vm11433_vm11 }
 0x191   : > { %v1422_v40 = vsel %vm7546_vm10, %v1342_v10, -3.4028235e+38  ;;  %v7582_v41 = vmul.f32 %v5541_v52, %v7244_v22  ;;  %v11438_v4 = vmax.f32 %v7097_v33, -3.4028235e+38  ;;  %v2789_v9 = vmax.f32 %v2661_v1, %v2702_v18  ;;  %v11440_v10 = vld [vmem:[#allocation9_spill] sm:$0xff] }
 0x192   : > { %v2700_v60 = vsel %vm11436_vm5, %v11435_v3, %v11434_v11  ;;  %v7592_v58 = vmax.f32 %v7089_v51, %v2264_v7  ;;  %v7597_v22 = vmax.f32 %v11440_v10, %v1962_v19  ;;  %vm7599_vm11 = vcmp.lt.s32.totalorder %v699_v42, 14 }
 0x193   : > { %11437 = vst [vmem:[#allocation100_spill] sm:$0xff] %v7582_v41  ;;  %v2313_v20 = vmax.f32 %v7313_v53, %v11438_v4  ;;  %v11441_v52 = vmov 0  ;;  %v7603_v3 = vmax.f32 %v2663_v44, %v2700_v60  ;;  %vm7605_vm5 = vcmp.ge.s32.totalorder %v706_v25, 1 }
 0x194   : > { %11439 = vst [vmem:[#allocation101_spill] sm:$0xff] %v7592_v58  ;;  %v11442_v52 = vsel %vm7599_vm11, 4294967295, %v11441_v52  ;;  %v11445_v33 = vmov 0  ;;  %v1615_v18 = vmax.f32 %v1422_v40, %v7419_v13  ;;  %v11448_v53 = vrot.slane %v7464_v24, 2  ;;  %v5381_v58 = vld [vmem:[%s10550_s3 + $0x60] sm:$0xff] }
 0x195   : > { %11443 = vst [vmem:[#allocation9_spill] sm:$0xff] %v11442_v52  ;;  %v11446_v33 = vsel %vm7605_vm5, 4294967295, %v11445_v33  ;;  %v11449_v7 = vrot.slane %v7138_v56, 2  ;;  %vm11450_vm1 = vcmp.lt.s32.totalorder %v5856_v48, 6  ;;  %v11451_v42 = vrot.slane %v7346_v16, 2  ;;  %v5543_v40 = vpop.eup %5542 }
 0x196   : > { %11444 = vst [vmem:[#allocation102_spill] sm:$0xff] %v7603_v3  ;;  %v11452_v1 = vrot.slane %v7344_v55, 2  ;;  %vm11453_vm7 = vmmov %vm11450_vm1  ;;  %vm7622_vm8 = vcmp.ge.s32.totalorder %v706_v25, 2  ;;  %v11454_v60 = vmov 0  ;;  %v769_v4 = vand.u32 15, %v631_v35 }
 0x197   : > { %11447 = vst [vmem:[#allocation103_spill] sm:$0xff] %v11446_v33  ;;  %v1728_v19 = vsel %vm11450_vm1, %v11449_v7, %v11448_v53  ;;  %v11455_v60 = vsel %vm7622_vm8, 4294967295, %v11454_v60  ;;  %v10826_v13 = vrot.slane %v7582_v41, 1  ;;  %v11457_v10 = vmax.f32 %v7001_v37, -3.4028235e+38  ;;  %v388_v7 = vpop.f32.mrf.mxu1  ;;  %v11546_v37 = vld [vmem:[#allocation18_spill] sm:$0xff] }
 0x198   : > { %v2861_v44 = vsel %vm11453_vm7, %v11452_v1, %v11451_v42  ;;  %11456 = vst [vmem:[#allocation104_spill] sm:$0xff] %v11455_v60  ;;  %v2821_v53 = vmax.f32 %v7344_v55, %v2789_v9  ;;  %v1455_v25 = vrot.slane %v7464_v24, 7  ;;  %v1808_v42 = vsel %vm7599_vm11, %v1728_v19, -3.4028235e+38 }
 0x199   : > { %v7629_v11 = vmax.f32 %v2313_v20, %v11457_v10  ;;  %v632_v35 = vadd.s32 144, %v5856_v48  ;;  %v526_v1 = vadd.f32 1.0, %v5543_v40  ;;  %v2917_v20 = vsel %vm6855_vm3, %v2861_v44, -3.4028235e+38 }
 0x19a   : > { %v1647_v9 = vmax.f32 %v7138_v56, %v1615_v18  ;;  %vm7645_vm7 = vcmp.lt.s32.totalorder %v769_v4, 15  ;;  %v11459_v0 = vmov 0  ;;  %v11462_v19 = vrot.slane %v7311_v49, 1 }
 0x19b   : > { %11458 = vst [vmem:[#allocation105_spill] sm:$0xff] %v7629_v11  ;;  %v11460_v0 = vsel %vm7645_vm7, 4294967295, %v11459_v0  ;;  %vm11463_vm1 = vcmp.lt.s32.totalorder %v5856_v48, 7  ;;  %5544 = vrcp.f32 %v526_v1  ;;  %v623_v28 = vadd.s32 72, %v5856_v48 }
 0x19c   : > { %11461 = vst [vmem:[#allocation106_spill] sm:$0xff] %v11460_v0  ;;  %v1332_v40 = vsel %vm11463_vm1, %v11462_v19, %v10826_v13  ;;  %v11464_v44 = vrot.slane %v7344_v55, 6  ;;  %v11465_v18 = vrot.slane %v7337_v31, 6  ;;  %vm11466_vm3 = vcmp.lt.s32.totalorder %v5856_v48, 2 }
 0x19d   : > { %v2001_v17 = vmax.f32 %v1808_v42, %v1890_v61  ;;  %v10837_v3 = vrot.slane %v7582_v41, 2  ;;  %v624_v52 = vadd.s32 80, %v5856_v48  ;;  %v11467_v59 = vrot.slane %v7138_v56, 7 }
 0x19e   : > { %v2958_v10 = vsel %vm11466_vm3, %v11465_v18, %v11464_v44  ;;  %vm11468_vm1 = vcmp.lt.s32.totalorder %v5856_v48, 1  ;;  %v776_v19 = vand.u32 15, %v632_v35  ;;  %v7669_v13 = vadd.f32 %v6908_v30, %v388_v7 }
 0x19f   : > { %v3045_v26 = vmax.f32 %v2917_v20, %v2958_v10  ;;  %v1503_v1 = vsel %vm11468_vm1, %v11467_v59, %v1455_v25  ;;  %v11469_v55 = vrot.slane %v7468_v50, 2  ;;  %v11470_v31 = vrot.slane %v7352_v12, 2 }
 0x1a0   : > { %vm11471_vm3 = vcmp.lt.s32.totalorder %v5856_v48, 6  ;;  %v11473_v42 = vrot.slane %v7464_v24, 6  ;;  %v11474_v20 = vrot.slane %v7138_v56, 6  ;;  %vm11475_vm15 = vcmp.lt.s32.totalorder %v5856_v48, 2 }
 0x1a1   : > { %v7677_v61 = vsel %vm11471_vm3, %v11470_v31, %v11469_v55  ;;  %v7685_v59 = vmax.f32 %v1647_v9, %v2001_v17  ;;  %v1432_v30 = vsel %vm7645_vm7, %v1332_v40, -3.4028235e+38  ;;  %v7690_v35 = vmax.f32 %v2821_v53, %v3045_v26  ;;  %v5545_v26 = vpop.eup %5544 }
 0x1a2   : > { %11472 = vst [vmem:[#allocation107_spill] sm:$0xff] %v7677_v61  ;;  %v1889_v10 = vsel %vm11475_vm15, %v11474_v20, %v11473_v42  ;;  %v10838_v44 = vrot.slane %v7582_v41, 7  ;;  %v713_v55 = vand.u32 15, %v623_v28  ;;  %v1584_v31 = vsel %vm7605_vm5, %v1503_v1, -3.4028235e+38  ;;  %vm11481_vm15 = vmmov %vm11471_vm3 }
 0x1a3   : > { %11476 = vst [vmem:[#allocation108_spill] sm:$0xff] %v7690_v35  ;;  %vm7695_vm1 = vcmp.lt.s32.totalorder %v769_v4, 14  ;;  %v11477_v18 = vmov 0  ;;  %v11480_v17 = vrot.slane %v7311_v49, 2  ;;  %v720_v40 = vand.u32 15, %v624_v52  ;;  %v11500_v35 = vld [vmem:[#allocation2_spill] sm:$0xff] }
 0x1a4   : > { %v11478_v18 = vsel %vm7695_vm1, 4294967295, %v11477_v18  ;;  %v1970_v53 = vsel %vm7622_vm8, %v1889_v10, -3.4028235e+38  ;;  %vm7707_vm3 = vcmp.ge.s32.totalorder %v776_v19, 1  ;;  %v11482_v28 = vmov 0 }
 0x1a5   : > { %11479 = vst [vmem:[#allocation109_spill] sm:$0xff] %v11478_v18  ;;  %v1718_v9 = vsel %vm11481_vm15, %v11480_v17, %v10837_v3  ;;  %v11483_v28 = vsel %vm7707_vm3, 4294967295, %v11482_v28  ;;  %v1625_v4 = vmax.f32 %v1432_v30, %v7526_v15  ;;  %v440_v1 = vsub.f32 0.0, %v7669_v13  ;;  %v11513_v18 = vld [vmem:[#allocation11_spill] sm:$0xff] }
 0x1a6   : > { %11484 = vst [vmem:[#allocation110_spill] sm:$0xff] %v11483_v28  ;;  %v7717_v17 = vmul.f32 %v5545_v26, %v7340_v6  ;;  %v11485_v52 = vmax.f32 %v7287_v21, %v6411_v8  ;;  %v11486_v15 = vrot.slane %v7311_v49, 7  ;;  %vm11487_vm15 = vcmp.lt.s32.totalorder %v5856_v48, 1 }
 0x1a7   : > { %v1818_v7 = vsel %vm7695_vm1, %v1718_v9, -3.4028235e+38  ;;  %vm7735_vm0 = vcmp.lt.s32.totalorder %v713_v55, 15  ;;  %v11488_v6 = vmov 0  ;;  %vm7739_vm2 = vcmp.lt.s32.totalorder %v713_v55, 14 }
 0x1a8   : > { %v7723_v10 = vmax.f32 %v6891_v14, %v11485_v52  ;;  %v7731_v30 = vsel %vm11487_vm15, %v11486_v15, %v10838_v44  ;;  %v11489_v6 = vsel %vm7735_vm0, 4294967295, %v11488_v6  ;;  %v11491_v26 = vmov 0 }
 0x1a9   : > { %11490 = vst [vmem:[#allocation111_spill] sm:$0xff] %v11489_v6  ;;  %v11492_v26 = vsel %vm7739_vm2, 4294967295, %v11491_v26  ;;  %vm7743_vm11 = vcmp.ge.s32.totalorder %v720_v40, 1  ;;  %v11494_v52 = vmov 0  ;;  %v1295_v3 = vrot.slane %v7717_v17, 1 }
 0x1aa   : > { %11493 = vst [vmem:[#allocation112_spill] sm:$0xff] %v11492_v26  ;;  %v11495_v52 = vsel %vm7743_vm11, 4294967295, %v11494_v52  ;;  %v1456_v15 = vrot.slane %v7717_v17, 7  ;;  %v1681_v44 = vrot.slane %v7717_v17, 2  ;;  %v1657_v9 = vmax.f32 %v7311_v49, %v1625_v4 }
 0x1ab   : > { %11496 = vst [vmem:[#allocation113_spill] sm:$0xff] %v11495_v52  ;;  %vm7751_vm15 = vcmp.ge.s32.totalorder %v720_v40, 2  ;;  %v11497_v42 = vmov 0  ;;  %v1842_v55 = vrot.slane %v7717_v17, 6  ;;  %v491_v20 = vmul.f32 1.442695, %v440_v1 }
 0x1ac   : > { %v11498_v42 = vsel %vm7751_vm15, 4294967295, %v11497_v42  ;;  %v11501_v61 = vrot.slane %v11500_v35, 1  ;;  %vm11502_vm10 = vcmp.lt.s32.totalorder %v5856_v48, 7  ;;  %v11503_v12 = vrot.slane %v7464_v24, 1 }
 0x1ad   : > { %11499 = vst [vmem:[#allocation114_spill] sm:$0xff] %v11498_v42  ;;  %vm11504_vm8 = vmmov %vm11502_vm10  ;;  %v11505_v50 = vrot.slane %v11500_v35, 7  ;;  %vm11506_vm9 = vcmp.lt.s32.totalorder %v5856_v48, 1  ;;  %v11508_v36 = vrot.slane %v11500_v35, 2  ;;  %5546 = vpow2.f32 %v491_v20 }
 0x1ae   : > { %v1340_v60 = vsel %vm11502_vm10, %v1295_v3, %v11501_v61  ;;  %v1341_v54 = vsel %vm11504_vm8, %v11503_v12, %v1295_v3  ;;  %vm11507_vm14 = vmmov %vm11506_vm9  ;;  %vm11509_vm10 = vcmp.lt.s32.totalorder %v5856_v48, 6  ;;  %vm7778_vm8 = vcmp.ge.s32.totalorder %v776_v19, 2 }
 0x1af   : > { %v1501_v40 = vsel %vm11506_vm9, %v1456_v15, %v11505_v50  ;;  %v1502_v4 = vsel %vm11507_vm14, %v1455_v25, %v1456_v15  ;;  %v1424_v1 = vsel %vm7735_vm0, %v1340_v60, -3.4028235e+38  ;;  %v1616_v61 = vmax.f32 %v1341_v54, %v1584_v31  ;;  %vm11515_vm14 = vmmov %vm11509_vm10 }
 0x1b0   : > { %v1586_v11 = vsel %vm7743_vm11, %v1501_v40, -3.4028235e+38  ;;  %v1726_v12 = vsel %vm11509_vm10, %v1681_v44, %v11508_v36  ;;  %v11510_v3 = vmov 0  ;;  %v1617_v50 = vmax.f32 %v1424_v1, %v1502_v4 }
 0x1b1   : > { %v11511_v3 = vsel %vm7778_vm8, 4294967295, %v11510_v3  ;;  %v1618_v0 = vmax.f32 %v11513_v18, %v1586_v11  ;;  %v11514_v25 = vrot.slane %v7464_v24, 2  ;;  %v1810_v54 = vsel %vm7739_vm2, %v1726_v12, -3.4028235e+38 }
 0x1b2   : > { %11512 = vst [vmem:[#allocation2_spill] sm:$0xff] %v11511_v3  ;;  %v1648_v31 = vmax.f32 %v7464_v24, %v1616_v61  ;;  %v11516_v15 = vrot.slane %v11500_v35, 6  ;;  %vm11517_vm9 = vcmp.lt.s32.totalorder %v5856_v48, 2  ;;  %v11518_v19 = vrot.slane %v7464_v24, 6 }
 0x1b3   : > { %v1727_v60 = vsel %vm11515_vm14, %v11514_v25, %v1681_v44  ;;  %vm11519_vm10 = vmmov %vm11517_vm9  ;;  %v1649_v40 = vmax.f32 %v7717_v17, %v1617_v50  ;;  %v1650_v44 = vmax.f32 %v11500_v35, %v1618_v0  ;;  %v2011_v12 = vmax.f32 %v1818_v7, %v7534_v27  ;;  %v11520_v25 = vld [vmem:[#allocation12_spill] sm:$0xff] }
 0x1b4   : > { %v1887_v36 = vsel %vm11517_vm9, %v1842_v55, %v11516_v15  ;;  %v1888_v11 = vsel %vm11519_vm10, %v11518_v19, %v1842_v55  ;;  %v2002_v18 = vmax.f32 %v1727_v60, %v1970_v53  ;;  %v11522_v53 = vrot.slane %v7582_v41, 6  ;;  %vm11524_vm14 = vmmov %vm11517_vm9 }
 0x1b5   : > { %v1972_v4 = vsel %vm7751_vm15, %v1887_v36, -3.4028235e+38  ;;  %v2003_v1 = vmax.f32 %v1810_v54, %v1888_v11  ;;  %v11523_v55 = vrot.slane %v7311_v49, 6  ;;  %v2259_v60 = vmax.f32 %v6411_v8, %v7685_v59 }
 0x1b6   : > { %v2004_v15 = vmax.f32 %v11520_v25, %v1972_v4  ;;  %v7807_v2 = vmax.f32 %v1648_v31, %v2002_v18  ;;  %v2515_v27 = vmax.f32 %v6891_v14, %v6964_v47  ;;  %v7823_v7 = vmax.f32 %v1657_v9, %v2011_v12  ;;  %v11525_v25 = vld [vmem:[#allocation36_spill] sm:$0xff] }
 0x1b7   : > { %v7815_v0 = vsel %vm11524_vm14, %v11523_v55, %v11522_v53  ;;  %v7817_v50 = vmax.f32 %v1649_v40, %v2003_v1  ;;  %vm11537_vm9 = vcmp.lt.s32.totalorder %v5856_v48, 7  ;;  %vm11548_vm4 = vcmp.lt.s32.totalorder %v5856_v48, 1 }
 0x1b8   : > { %11521 = vst [vmem:[#allocation11_spill] sm:$0xff] %v7807_v2  ;;  %v7825_v54 = vmax.f32 %v1650_v44, %v2004_v15  ;;  %v2256_v31 = vmax.f32 %v7807_v2, %v6815_v43  ;;  %v2260_v36 = vmax.f32 %v6689_v57, %v7807_v2  ;;  %vm11538_vm10 = vmmov %vm11537_vm9  ;;  %v11596_v42 = vrot.slane %v7582_v41, 1 }
 0x1b9   : > { %v2257_v19 = vmax.f32 %v7817_v50, %v6964_v47  ;;  %v2261_v11 = vmax.f32 %v6891_v14, %v7817_v50  ;;  %v2291_v18 = vmax.f32 %v7817_v50, %v2259_v60  ;;  %v2518_v60 = vmax.f32 %v7493_v32, %v7807_v2  ;;  %vm11544_vm14 = vmmov %vm11537_vm9 }
 0x1ba   : > { %v2258_v9 = vmax.f32 %v7825_v54, %v7228_v46  ;;  %v2262_v40 = vmax.f32 %v7089_v51, %v7825_v54  ;;  %v2288_v44 = vmax.f32 %v7228_v46, %v2256_v31  ;;  %v2292_v4 = vmax.f32 %v7825_v54, %v2260_v36  ;;  %vm11549_vm12 = vmmov %vm11548_vm4 }
 0x1bb   : > { %v2289_v1 = vmax.f32 %v7685_v59, %v2257_v19  ;;  %v2293_v12 = vmax.f32 %v6411_v8, %v2261_v11  ;;  %v2512_v15 = vmax.f32 %v7825_v54, %v11525_v25  ;;  %v7846_v53 = vmax.f32 %v2291_v18, %v2515_v27 }
 0x1bc   : > { %v2290_v20 = vmax.f32 %v7807_v2, %v2258_v9  ;;  %v2294_v55 = vmax.f32 %v6689_v57, %v2262_v40  ;;  %v11527_v31 = vmax.f32 %v7089_v51, %v7228_v46  ;;  %v11530_v11 = vmax.f32 %v6411_v8, %v6549_v38  ;;  %v5382_v2 = vld [vmem:[%s10550_s3 + $0x68] sm:$0xff]  ;;  %v11539_v40 = vld [vmem:[#allocation30_spill] sm:$0xff] }
 0x1bd   : > { %11526 = vst [vmem:[#allocation12_spill] sm:$0xff] %v7846_v53  ;;  %v7857_v19 = vmax.f32 %v2288_v44, %v2512_v15  ;;  %v11532_v27 = vmax.f32 %v7287_v21, %v7685_v59  ;;  %v2579_v9 = vrot.slane %v7846_v53, 1  ;;  %v11534_v44 = vmax.f32 %v6689_v57, %v6815_v43  ;;  %4221 = vmatpush.bf16.msrb.mxu1 %v5382_v2 }
 0x1be   : > { %v7855_v36 = vmax.f32 %v2292_v4, %v11527_v31  ;;  %v7862_v61 = vmax.f32 %v2289_v1, %v11530_v11  ;;  %v7878_v15 = vmax.f32 %v2294_v55, %v2518_v60  ;;  %v5547_v31 = vpop.eup %5546  ;;  %v2835_v6 = vrot.slane %v7846_v53, 2 }
 0x1bf   : > { %11529 = vst [vmem:[#allocation116_spill] sm:$0xff] %v7857_v19  ;;  %v7867_v18 = vmax.f32 %v2293_v12, %v11532_v27  ;;  %v7876_v4 = vmax.f32 %v2290_v20, %v11534_v44  ;;  %v2675_v27 = vrot.slane %v7846_v53, 7  ;;  %v11541_v19 = vld [vmem:[#allocation29_spill] sm:$0xff] }
 0x1c0   : > { %11528 = vst [vmem:[#allocation115_spill] sm:$0xff] %v7855_v36  ;;  %v2580_v1 = vrot.slane %v7855_v36, 1  ;;  %v2676_v49 = vrot.slane %v7855_v36, 7  ;;  %v11542_v16 = vmax.f32 %v11540_v29, %v11541_v19  ;;  %v11543_v60 = vrot.slane %v7878_v15, 1 }
 0x1c1   : > { %11531 = vst [vmem:[#allocation117_spill] sm:$0xff] %v7862_v61  ;;  %v2581_v11 = vrot.slane %v7867_v18, 1  ;;  %v2674_v55 = vrot.slane %v7876_v4, 7  ;;  %v2677_v12 = vrot.slane %v7867_v18, 7  ;;  %v11545_v14 = vrot.slane %v7876_v4, 1  ;;  %4222 = vmatpush.bf16.msrb.mxu1 %v5381_v58 }
 0x1c2   : > { %11533 = vst [vmem:[#allocation118_spill] sm:$0xff] %v7867_v18  ;;  %v2623_v20 = vsel %vm11537_vm9, %v2579_v9, %v2580_v1  ;;  %v7902_v34 = vmax.f32 %v11542_v16, %v11539_v40  ;;  %v2719_v19 = vsel %vm11549_vm12, %v2675_v27, %v2676_v49  ;;  %v536_v40 = vadd.f32 1.0, %v5547_v31 }
 0x1c3   : > { %11535 = vst [vmem:[#allocation119_spill] sm:$0xff] %v7876_v4  ;;  %v2622_v44 = vsel %vm11538_vm10, %v2580_v1, %v2581_v11  ;;  %v2621_v1 = vsel %vm11544_vm14, %v2581_v11, %v11543_v60  ;;  %v2624_v23 = vsel %vm11537_vm9, %v11545_v14, %v2579_v9  ;;  %v2643_v8 = vsel %vm7735_vm0, %v2623_v20, -3.4028235e+38  ;;  %vm11550_vm14 = vmmov %vm11548_vm4 }
 0x1c4   : > { %11536 = vst [vmem:[#allocation120_spill] sm:$0xff] %v7878_v15  ;;  %vm11547_vm10 = vnez %v11546_v37  ;;  %v2718_v29 = vsel %vm11548_vm4, %v2676_v49, %v2677_v12  ;;  %v2519_v11 = vmax.f32 %v7823_v7, %v7817_v50  ;;  %v2720_v14 = vsel %vm11550_vm14, %v2674_v55, %v2675_v27  ;;  %vm11552_vm9 = vmmov %vm11548_vm4 }
 0x1c5   : > { %v2645_v16 = vsel %vm11547_vm10, %v2621_v1, -3.4028235e+38  ;;  %v11551_v9 = vrot.slane %v7862_v61, 7  ;;  %v2740_v60 = vsel %vm7743_vm11, %v2719_v19, -3.4028235e+38  ;;  %v2771_v49 = vmax.f32 %v2643_v8, %v2720_v14 }
 0x1c6   : > { %v2772_v31 = vmax.f32 %v2622_v44, %v2740_v60  ;;  %v2773_v2 = vmax.f32 %v2645_v16, %v2718_v29  ;;  %v10882_v27 = vrot.slane %v7876_v4, 2  ;;  %v2836_v44 = vrot.slane %v7855_v36, 2 }
 0x1c7   : > { %v2721_v20 = vsel %vm11552_vm9, %v11551_v9, %v2674_v55  ;;  %v633_v55 = vadd.s32 152, %v5856_v48  ;;  %v2803_v19 = vmax.f32 %v7846_v53, %v2771_v49  ;;  %v7947_v16 = vmax.f32 %v7723_v10, %v2519_v11  ;;  %v5380_v11 = vld [vmem:[%s10550_s3 + $0x58] sm:$0xff] }
 0x1c8   : > { %v2738_v1 = vsel %vm7605_vm5, %v2721_v20, -3.4028235e+38  ;;  %v2804_v9 = vmax.f32 %v7855_v36, %v2772_v31  ;;  %v2805_v8 = vmax.f32 %v7867_v18, %v2773_v2  ;;  %v2837_v29 = vrot.slane %v7867_v18, 2  ;;  %v11559_v2 = vld [vmem:[#allocation20_spill] sm:$0xff]  ;;  %v11561_v10 = vld [vmem:[#allocation53_spill] sm:$0xff]  ;;  %4223 = vmatpush.bf16.msrb.mxu1 %v5380_v11 }
 0x1c9   : > { %v7937_v37 = vmax.f32 %v2624_v23, %v2738_v1  ;;  %v10884_v14 = vrot.slane %v7878_v15, 2  ;;  %vm11554_vm12 = vcmp.lt.s32.totalorder %v5856_v48, 6  ;;  %v2932_v23 = vrot.slane %v7855_v36, 6  ;;  %v5379_v11 = vld [vmem:[%s10550_s3 + $0x50] sm:$0xff] }
 0x1ca   : > { %v2879_v60 = vsel %vm11554_vm12, %v2835_v6, %v2836_v44  ;;  %vm11555_vm4 = vmmov %vm11554_vm12  ;;  %vm11560_vm12 = vnez %v11559_v2  ;;  %v2933_v20 = vrot.slane %v7867_v18, 6  ;;  %5548 = vrcp.f32 %v536_v40 }
 0x1cb   : > { %11553 = vst [vmem:[#allocation30_spill] sm:$0xff] %v7937_v37  ;;  %v7960_v58 = vsel %vm11555_vm4, %v10882_v27, %v2835_v6  ;;  %vm11557_vm14 = vmmov %vm11555_vm4  ;;  %v2899_v31 = vsel %vm7739_vm2, %v2879_v60, -3.4028235e+38  ;;  %v2931_v6 = vrot.slane %v7846_v53, 6  ;;  %v634_v60 = vadd.s32 160, %v5856_v48  ;;  %v11621_v37 = vld [vmem:[#allocation70_spill] sm:$0xff] }
 0x1cc   : > { %11556 = vst [vmem:[#allocation5_spill] sm:$0xff] %v7960_v58  ;;  %v2877_v1 = vsel %vm11557_vm14, %v2837_v29, %v10884_v14  ;;  %vm11558_vm9 = vmmov %vm11555_vm4  ;;  %vm11563_vm4 = vcmp.lt.s32.totalorder %v5856_v48, 2  ;;  %v11566_v14 = vrot.slane %v7878_v15, 7  ;;  %v783_v18 = vand.u32 15, %v633_v55  ;;  %4224 = vmatpush.bf16.msrb.mxu1 %v5379_v11  ;;  %v11593_v55 = vld [vmem:[#allocation3_spill] sm:$0xff] }
 0x1cd   : > { %v2878_v49 = vsel %vm11558_vm9, %v2836_v44, %v2837_v29  ;;  %v2901_v27 = vsel %vm11560_vm12, %v2877_v1, -3.4028235e+38  ;;  %v11562_v44 = vrot.slane %v7876_v4, 6  ;;  %vm11564_vm14 = vmmov %vm11563_vm4  ;;  %vm11595_vm10 = vcmp.lt.s32.totalorder %v5856_v48, 7 }
 0x1ce   : > { %v2974_v2 = vsel %vm11564_vm14, %v2932_v23, %v2933_v20  ;;  %vm11565_vm9 = vmmov %vm11563_vm4  ;;  %vm11571_vm14 = vcmp.lt.s32.totalorder %v5856_v48, 7  ;;  %vm11599_vm11 = vcmp.lt.s32.totalorder %v5856_v48, 1 }
 0x1cf   : > { %v2976_v29 = vsel %vm11563_vm4, %v11562_v44, %v2931_v6  ;;  %v2975_v26 = vsel %vm11565_vm9, %v2931_v6, %v2932_v23  ;;  %vm11567_vm4 = vcmp.lt.s32.totalorder %v5856_v48, 1  ;;  %v3029_v1 = vmax.f32 %v2901_v27, %v2974_v2  ;;  %v11573_v27 = vld [vmem:[#allocation6_spill] sm:$0xff]  ;;  %vm11601_vm2 = vmmov %vm11599_vm11 }
 0x1d0   : > { %v3027_v52 = vmax.f32 %v2899_v31, %v2976_v29  ;;  %v7999_v40 = vsel %vm11567_vm4, %v2677_v12, %v11566_v14  ;;  %v2996_v44 = vsel %vm7751_vm15, %v2975_v26, -3.4028235e+38  ;;  %v2250_v23 = vmax.f32 %v11525_v25, -3.4028235e+38  ;;  %vm11597_vm15 = vmmov %vm11595_vm10 }
 0x1d1   : > { %v3028_v36 = vmax.f32 %v2878_v49, %v2996_v44  ;;  %v2251_v31 = vmax.f32 %v6549_v38, -3.4028235e+38  ;;  %v11569_v6 = vrot.slane %v7947_v16, 1  ;;  %v11570_v29 = vrot.slane %v7878_v15, 1 }
 0x1d2   : > { %v8003_v33 = vmax.f32 %v2803_v19, %v3027_v52  ;;  %v8013_v14 = vmax.f32 %v2805_v8, %v3029_v1  ;;  %v790_v26 = vand.u32 15, %v634_v60  ;;  %v11574_v52 = vld [vmem:[#allocation22_spill] sm:$0xff]  ;;  %v11576_v2 = vrot.slane %v7878_v15, 6  ;;  %v5378_v8 = vld [vmem:[%s10550_s3 + $0x48] sm:$0xff]  ;;  %v5549_v60 = vpop.eup %5548 }
 0x1d3   : > { %v2620_v12 = vsel %vm11571_vm14, %v11570_v29, %v11569_v6  ;;  %vm11575_vm9 = vnez %v11574_v52  ;;  %vm11577_vm4 = vcmp.lt.s32.totalorder %v5856_v48, 2  ;;  %v8027_v44 = vmax.f32 %v2804_v9, %v3028_v36  ;;  %4225 = vmatpush.bf16.msrb.mxu1 %v5378_v8 }
 0x1d4   : > { %11568 = vst [vmem:[#allocation29_spill] sm:$0xff] %v8003_v33  ;;  %v2742_v19 = vsel %vm11575_vm9, %v7999_v40, -3.4028235e+38  ;;  %v8025_v11 = vsel %vm11577_vm4, %v2933_v20, %v11576_v2  ;;  %vm8032_vm14 = vcmp.lt.s32.totalorder %v783_v18, 15  ;;  %v11579_v1 = vmov 0 }
 0x1d5   : > { %11572 = vst [vmem:[#allocation53_spill] sm:$0xff] %v8013_v14  ;;  %v11580_v1 = vsel %vm8032_vm14, 4294967295, %v11579_v1  ;;  %v4109_v40 = vpack.c.bf16 %v7138_v56, %v6868_v39  ;;  %v11582_v6 = vmax.f32 %v5869_v62, %v7538_v5  ;;  %v2254_v36 = vmax.f32 %v7228_v46, %v11525_v25 }
 0x1d6   : > { %11578 = vst [vmem:[#allocation6_spill] sm:$0xff] %v8027_v44  ;;  %v8047_v9 = vmul.f32 %v5549_v60, %v7669_v13  ;;  %vm8049_vm4 = vcmp.lt.s32.totalorder %v783_v18, 14  ;;  %v11584_v29 = vmov 0  ;;  %v2283_v2 = vmax.f32 %v7902_v34, %v2251_v31  ;;  %v5377_v60 = vld [vmem:[%s10550_s3 + $0x40] sm:$0xff] }
 0x1d7   : > { %11581 = vst [vmem:[#allocation121_spill] sm:$0xff] %v11580_v1  ;;  %v8042_v20 = vmax.f32 %v11582_v6, %v7597_v22  ;;  %v11585_v29 = vsel %vm8049_vm4, 4294967295, %v11584_v29  ;;  %v2507_v39 = vmax.f32 %v6964_v47, -3.4028235e+38  ;;  %vm8055_vm9 = vcmp.ge.s32.totalorder %v790_v26, 1  ;;  %4379 = vmatmul.bf16.gmra.mxu2 %v4109_v40  ;;  %v5391_v40 = vld [vmem:[%s10550_s3 + $0xb0] sm:$0xff]  ;;  %4226 = vmatpush.bf16.msrb.mxu1 %v5377_v60 }
 0x1d8   : > { %11583 = vst [vmem:[#allocation122_spill] sm:$0xff] %v8047_v9  ;;  %v11587_v56 = vmov 0  ;;  %v8061_v5 = vmax.f32 %v6815_v43, %v2254_v36  ;;  %v2506_v22 = vmax.f32 %v6815_v43, -3.4028235e+38  ;;  %vm8064_vm12 = vcmp.ge.s32.totalorder %v790_v26, 2  ;;  %4527 = vmatpush.bf16.msrb.mxu3 %v5391_v40  ;;  %v11661_v1 = vld [vmem:[#allocation25_spill] sm:$0xff] }
 0x1d9   : > { %11586 = vst [vmem:[#allocation123_spill] sm:$0xff] %v11585_v29  ;;  %v11588_v56 = vsel %vm8055_vm9, 4294967295, %v11587_v56  ;;  %v2282_v62 = vmax.f32 %v8042_v20, %v2250_v23  ;;  %v11590_v13 = vmov 0  ;;  %v1305_v18 = vrot.slane %v8047_v9, 1 }
 0x1da   : > { %11589 = vst [vmem:[#allocation124_spill] sm:$0xff] %v11588_v56  ;;  %v11591_v13 = vsel %vm8064_vm12, 4294967295, %v11590_v13  ;;  %v1466_v31 = vrot.slane %v8047_v9, 7  ;;  %v1691_v8 = vrot.slane %v8047_v9, 2  ;;  %v1852_v23 = vrot.slane %v8047_v9, 6 }
 0x1db   : > { %11592 = vst [vmem:[#allocation125_spill] sm:$0xff] %v11591_v13  ;;  %v2255_v26 = vmax.f32 %v7685_v59, %v6549_v38  ;;  %v8080_v6 = vmax.f32 %v2282_v62, %v2506_v22  ;;  %v8082_v36 = vmax.f32 %v2283_v2, %v2507_v39  ;;  %v11594_v49 = vrot.slane %v11593_v55, 1 }
 0x1dc   : > { %v1331_v53 = vsel %vm11597_vm15, %v11596_v42, %v1305_v18  ;;  %v11598_v14 = vrot.slane %v11593_v55, 7  ;;  %v11600_v62 = vrot.slane %v7582_v41, 7  ;;  %v11602_v42 = vsel %vm7707_vm3, %v7731_v30, -3.4028235e+38 }
 0x1dd   : > { %v1330_v52 = vsel %vm11595_vm10, %v1305_v18, %v11594_v49  ;;  %v1626_v22 = vmax.f32 %v1331_v53, %v11602_v42  ;;  %v11603_v18 = vrot.slane %v11593_v55, 2  ;;  %v11608_v53 = vrot.slane %v11593_v55, 6 }
 0x1de   : > { %v1491_v44 = vsel %vm11599_vm11, %v1466_v31, %v11598_v14  ;;  %v1492_v2 = vsel %vm11601_vm2, %v11600_v62, %v1466_v31  ;;  %v1434_v39 = vsel %vm8032_vm14, %v1330_v52, -3.4028235e+38  ;;  %vm11604_vm11 = vcmp.lt.s32.totalorder %v5856_v48, 6  ;;  %v11605_v31 = vld [vmem:[#allocation14_spill] sm:$0xff] }
 0x1df   : > { %v1596_v49 = vsel %vm8055_vm9, %v1491_v44, -3.4028235e+38  ;;  %v1716_v14 = vsel %vm11604_vm11, %v1691_v8, %v11603_v18  ;;  %v1627_v33 = vmax.f32 %v1434_v39, %v1492_v2  ;;  %v11606_v62 = vrot.slane %v7582_v41, 2  ;;  %vm11607_vm2 = vmmov %vm11604_vm11 }
 0x1e0   : > { %v1628_v60 = vmax.f32 %v11605_v31, %v1596_v49  ;;  %v1820_v44 = vsel %vm8049_vm4, %v1716_v14, -3.4028235e+38  ;;  %v1658_v30 = vmax.f32 %v7582_v41, %v1626_v22  ;;  %vm11609_vm15 = vcmp.lt.s32.totalorder %v5856_v48, 2  ;;  %v5390_v49 = vld [vmem:[%s10550_s3 + $0xa8] sm:$0xff]  ;;  %vm11616_vm11 = vmmov %vm11607_vm2 }
 0x1e1   : > { %v1717_v52 = vsel %vm11607_vm2, %v11606_v62, %v1691_v8  ;;  %v1877_v42 = vsel %vm11609_vm15, %v1852_v23, %v11608_v53  ;;  %v11610_v40 = vrot.slane %v7582_v41, 6  ;;  %vm11611_vm10 = vmmov %vm11609_vm15  ;;  %v11612_v39 = vsel %vm7778_vm8, %v7815_v0, -3.4028235e+38  ;;  %v11613_v62 = vld [vmem:[#allocation19_spill] sm:$0xff]  ;;  %4528 = vmatpush.bf16.msrb.mxu3 %v5390_v49 }
 0x1e2   : > { %v2012_v8 = vmax.f32 %v1717_v52, %v11612_v39  ;;  %v1659_v22 = vmax.f32 %v8047_v9, %v1627_v33  ;;  %v1660_v18 = vmax.f32 %v11593_v55, %v1628_v60  ;;  %v1982_v14 = vsel %vm8064_vm12, %v1877_v42, -3.4028235e+38 }
 0x1e3   : > { %v1878_v2 = vsel %vm11611_vm10, %v11610_v40, %v1852_v23  ;;  %v2014_v53 = vmax.f32 %v11613_v62, %v1982_v14  ;;  %v8141_v40 = vmax.f32 %v6964_v47, %v2255_v26  ;;  %v8145_v52 = vmax.f32 %v2620_v12, %v2742_v19  ;;  %v11620_v12 = vld [vmem:[#allocation52_spill] sm:$0xff]  ;;  %v5389_v14 = vld [vmem:[%s10550_s3 + $0xa0] sm:$0xff] }
 0x1e4   : > { %v2013_v31 = vmax.f32 %v1820_v44, %v1878_v2  ;;  %v2044_v23 = vmax.f32 %v1658_v30, %v2012_v8  ;;  %v11614_v33 = vrot.slane %v7947_v16, 2  ;;  %v11615_v60 = vrot.slane %v7878_v15, 2  ;;  %v11617_v44 = vld [vmem:[#allocation24_spill] sm:$0xff]  ;;  %v11619_v8 = vld [vmem:[#allocation38_spill] sm:$0xff] }
 0x1e5   : > { %vm11618_vm2 = vnez %v11617_v44  ;;  %v2046_v39 = vmax.f32 %v1660_v18, %v2014_v53  ;;  %v2269_v49 = vmax.f32 %v11619_v8, %v7823_v7  ;;  %4529 = vmatpush.bf16.msrb.mxu3 %v5389_v14  ;;  %vm11645_vm15 = vcmp.lt.s32.totalorder %v5856_v48, 7 }
 0x1e6   : > { %v2876_v42 = vsel %vm11616_vm11, %v11615_v60, %v11614_v33  ;;  %v2998_v30 = vsel %vm11618_vm2, %v8025_v11, -3.4028235e+38  ;;  %v2045_v2 = vmax.f32 %v1659_v22, %v2013_v31  ;;  %v2266_v26 = vmax.f32 %v2044_v23, %v7089_v51  ;;  %vm11646_vm10 = vmmov %vm11645_vm15 }
 0x1e7   : > { %v2270_v19 = vmax.f32 %v11620_v12, %v2044_v23  ;;  %v2520_v60 = vmax.f32 %v2044_v23, %v7825_v54  ;;  %v4110_v11 = vpack.c.bf16 %v7717_v17, %v7464_v24  ;;  %v2268_v22 = vmax.f32 %v2046_v39, %v7493_v32  ;;  %v11622_v17 = vld [vmem:[#allocation78_spill] sm:$0xff]  ;;  %vm11647_vm11 = vmmov %vm11646_vm10 }
 0x1e8   : > { %v2267_v62 = vmax.f32 %v2045_v2, %v7287_v21  ;;  %v2271_v33 = vmax.f32 %v11561_v10, %v2045_v2  ;;  %v2272_v18 = vmax.f32 %v6699_v45, %v2046_v39  ;;  %v2301_v31 = vmax.f32 %v2045_v2, %v2269_v49  ;;  %v5388_v49 = vld [vmem:[%s10550_s3 + $0x98] sm:$0xff]  ;;  %vm11648_vm2 = vmmov %vm11646_vm10 }
 0x1e9   : > { %v2302_v53 = vmax.f32 %v2046_v39, %v2270_v19  ;;  %v2298_v0 = vmax.f32 %v7493_v32, %v2266_v26  ;;  %v2522_v9 = vmax.f32 %v2046_v39, %v6689_v57  ;;  %v2300_v41 = vmax.f32 %v2044_v23, %v2268_v22  ;;  %v11623_v19 = vld [vmem:[#allocation37_spill] sm:$0xff]  ;;  %4530 = vmatpush.bf16.msrb.mxu3 %v5388_v49  ;;  %vm11650_vm0 = vmmov %vm11648_vm2 }
 0x1ea   : > { %v2299_v44 = vmax.f32 %v7823_v7, %v2267_v62  ;;  %v2303_v55 = vmax.f32 %v11619_v8, %v2271_v33  ;;  %v2304_v54 = vmax.f32 %v11620_v12, %v2272_v18  ;;  %v2529_v24 = vmax.f32 %v11621_v37, %v2045_v2  ;;  %v11624_v62 = vld [vmem:[#allocation54_spill] sm:$0xff]  ;;  %v11625_v57 = vld [vmem:[#allocation65_spill] sm:$0xff]  ;;  %4384 = vmatmul.bf16.gmra.mxu2 %v4110_v11 }
 0x1eb   : > { %v2530_v58 = vmax.f32 %v11622_v17, %v2046_v39  ;;  %v2806_v26 = vmax.f32 %v7878_v15, %v8145_v52  ;;  %v2521_v14 = vmax.f32 %v2045_v2, %v11623_v19  ;;  %v2528_v33 = vmax.f32 %v11624_v62, %v2044_v23 }
 0x1ec   : > { %v11626_v22 = vmax.f32 %v11619_v8, %v11625_v57  ;;  %v11628_v37 = vmax.f32 %v11620_v12, %v7089_v51  ;;  %v11630_v18 = vmax.f32 %v11561_v10, %v7287_v21  ;;  %v11632_v52 = vmax.f32 %v6699_v45, %v7493_v32  ;;  %v5400_v51 = vld [vmem:[%s10550_s3 + $0xf8] sm:$0xff]  ;;  %v11637_v10 = vld [vmem:[#allocation59_spill] sm:$0xff] }
 0x1ed   : > { %v11634_v23 = vmax.f32 %v6444_v63, %v7823_v7  ;;  %v8212_v8 = vmax.f32 %v2304_v54, %v2528_v33  ;;  %v8215_v12 = vmax.f32 %v11637_v10, %v2529_v24  ;;  %v11641_v63 = vmax.f32 %v7823_v7, %v11625_v57  ;;  %4728 = vmatpush.bf16.msrb.mxu0 %v5400_v51  ;;  %v11653_v10 = vld [vmem:[#allocation95_spill] sm:$0xff] }
 0x1ee   : > { %v8187_v4 = vmax.f32 %v2299_v44, %v11626_v22  ;;  %v8192_v39 = vmax.f32 %v2300_v41, %v11628_v37  ;;  %v8197_v17 = vmax.f32 %v2301_v31, %v11630_v18  ;;  %v8202_v2 = vmax.f32 %v2302_v53, %v11632_v52  ;;  %v11639_v31 = vld [vmem:[#allocation60_spill] sm:$0xff]  ;;  %5404 = vmatpush.bf16.msra.mxu2 %v5400_v51 }
 0x1ef   : > { %v8207_v44 = vmax.f32 %v2303_v55, %v11634_v23  ;;  %v3030_v41 = vmax.f32 %v2876_v42, %v2998_v30  ;;  %11636 = vst [vmem:[#allocation78_spill] sm:$0xff] %v8212_v8  ;;  %v8218_v45 = vmax.f32 %v11639_v31, %v2530_v58  ;;  %v2297_v32 = vmax.f32 %v7287_v21, %v11641_v63  ;;  %v11642_v55 = vld [vmem:[#allocation101_spill] sm:$0xff]  ;;  %v11651_v23 = vld [vmem:[#allocation98_spill] sm:$0xff]  ;;  %v11652_v51 = vld [vmem:[#allocation92_spill] sm:$0xff] }
 0x1f0   : > { %11627 = vst [vmem:[#allocation14_spill] sm:$0xff] %v8187_v4  ;;  %v8225_v53 = vmax.f32 %v11642_v55, %v2520_v60  ;;  %v8227_v19 = vmax.f32 %v2298_v0, %v2522_v9  ;;  %v2588_v42 = vrot.slane %v8192_v39, 1  ;;  %v2589_v30 = vrot.slane %v8197_v17, 1  ;;  %v5399_v0 = vld [vmem:[%s10550_s3 + $0xf0] sm:$0xff]  ;;  %v5397_v55 = vld [vmem:[%s10550_s3 + $0xe0] sm:$0xff] }
 0x1f1   : > { %11629 = vst [vmem:[#allocation19_spill] sm:$0xff] %v8192_v39  ;;  %v2590_v58 = vrot.slane %v8202_v2, 1  ;;  %v2591_v11 = vrot.slane %v8207_v44, 1  ;;  %v2592_v54 = vrot.slane %v8212_v8, 1  ;;  %v8234_v7 = vmax.f32 %v2297_v32, %v2521_v14  ;;  %4729 = vmatpush.bf16.msrb.mxu0 %v5399_v0  ;;  %v11656_v32 = vld [vmem:[#allocation11_spill] sm:$0xff] }
 0x1f2   : > { %11631 = vst [vmem:[#allocation38_spill] sm:$0xff] %v8197_v17  ;;  %v2587_v21 = vrot.slane %v8187_v4, 1  ;;  %v2593_v60 = vrot.slane %v8215_v12, 1  ;;  %v2594_v9 = vrot.slane %v8218_v45, 1  ;;  %v2614_v62 = vsel %vm11648_vm2, %v2588_v42, %v2589_v30  ;;  %5405 = vmatpush.bf16.msra.mxu2 %v5399_v0  ;;  %vm11657_vm2 = vmmov %vm11650_vm0 }
 0x1f3   : > { %11633 = vst [vmem:[#allocation52_spill] sm:$0xff] %v8202_v2  ;;  %v2611_v24 = vsel %vm11645_vm15, %v2591_v11, %v2592_v54  ;;  %v2612_v49 = vsel %vm11646_vm10, %v2590_v58, %v2591_v11  ;;  %v2613_v14 = vsel %vm11647_vm11, %v2589_v30, %v2590_v58  ;;  %v8252_v22 = vmax.f32 %v2806_v26, %v3030_v41  ;;  %v5398_v11 = vld [vmem:[%s10550_s3 + $0xe8] sm:$0xff] }
 0x1f4   : > { %11635 = vst [vmem:[#allocation70_spill] sm:$0xff] %v8207_v44  ;;  %v2610_v37 = vsel %vm11650_vm0, %v2592_v54, %v2593_v60  ;;  %v11654_v31 = vmax.f32 %v11652_v51, %v11653_v10  ;;  %v2609_v26 = vsel %vm11657_vm2, %v2593_v60, %v2594_v9  ;;  %v8270_v41 = vsel %vm11650_vm0, %v2587_v21, %v2588_v42  ;;  %v5387_v42 = vld [vmem:[%s10550_s3 + $0x90] sm:$0xff] }
 0x1f5   : > { %11638 = vst [vmem:[#allocation37_spill] sm:$0xff] %v8215_v12  ;;  %v2653_v30 = vsel %vm8032_vm14, %v2613_v14, -3.4028235e+38  ;;  %v2683_v54 = vrot.slane %v8187_v4, 7  ;;  %v2684_v0 = vrot.slane %v8192_v39, 7  ;;  %v2686_v60 = vrot.slane %v8202_v2, 7  ;;  %4730 = vmatpush.bf16.msrb.mxu0 %v5398_v11  ;;  %4531 = vmatpush.bf16.msrb.mxu3 %v5387_v42 }
 0x1f6   : > { %11640 = vst [vmem:[#allocation54_spill] sm:$0xff] %v8218_v45  ;;  %v8262_v63 = vmax.f32 %v11654_v31, %v11651_v23  ;;  %v2685_v23 = vrot.slane %v8197_v17, 7  ;;  %v2682_v14 = vrot.slane %v8227_v19, 7  ;;  %v2687_v10 = vrot.slane %v8207_v44, 7  ;;  %5406 = vmatpush.bf16.msra.mxu2 %v5398_v11 }
 0x1f7   : > { %11643 = vst [vmem:[#allocation65_spill] sm:$0xff] %v8227_v19  ;;  %v2688_v31 = vrot.slane %v8212_v8, 7  ;;  %v2689_v57 = vrot.slane %v8215_v12, 7  ;;  %vm11658_vm15 = vcmp.lt.s32.totalorder %v5856_v48, 1  ;;  %vm11662_vm2 = vnez %v11661_v1 }
 0x1f8   : > { %11644 = vst [vmem:[#allocation59_spill] sm:$0xff] %v8234_v7  ;;  %v2709_v33 = vsel %vm11658_vm15, %v2685_v23, %v2686_v60  ;;  %vm11659_vm10 = vmmov %vm11658_vm15  ;;  %v2655_v15 = vsel %vm11662_vm2, %v2611_v24, -3.4028235e+38  ;;  %v11666_v1 = vrot.slane %v8227_v19, 1  ;;  %v11670_v11 = vrot.slane %v8234_v7, 7 }
 0x1f9   : > { %11649 = vst [vmem:[#allocation60_spill] sm:$0xff] %v8252_v22  ;;  %v2710_v58 = vsel %vm11659_vm10, %v2684_v0, %v2685_v23  ;;  %vm11660_vm11 = vmmov %vm11659_vm10  ;;  %v2750_v24 = vsel %vm8055_vm9, %v2709_v33, -3.4028235e+38  ;;  %4731 = vmatpush.bf16.msrb.mxu0 %v5397_v55  ;;  %v5396_v33 = vld [vmem:[%s10550_s3 + $0xd8] sm:$0xff] }
 0x1fa   : > { %11655 = vst [vmem:[#allocation101_spill] sm:$0xff] %v8262_v63  ;;  %v2711_v52 = vsel %vm11660_vm11, %v2683_v54, %v2684_v0  ;;  %v5386_v63 = vld [vmem:[%s10550_s3 + $0x88] sm:$0xff]  ;;  %vm11663_vm0 = vmmov %vm11659_vm10  ;;  %vm11667_vm10 = vcmp.lt.s32.totalorder %v5856_v48, 7  ;;  %v8346_v56 = vmax.f32 %v2653_v30, %v2710_v58  ;;  %v8348_v28 = vmax.f32 %v2612_v49, %v2750_v24  ;;  %5407 = vmatpush.bf16.msra.mxu2 %v5397_v55 }
 0x1fb   : > { %v2706_v18 = vsel %vm11663_vm0, %v2688_v31, %v2689_v57  ;;  %vm11664_vm14 = vmmov %vm11663_vm0  ;;  %v2748_v51 = vsel %vm7707_vm3, %v2711_v52, -3.4028235e+38  ;;  %v2616_v61 = vsel %vm11667_vm10, %v11666_v1, %v2587_v21  ;;  %v11674_v52 = vld [vmem:[#allocation89_spill] sm:$0xff]  ;;  %4532 = vmatpush.bf16.msrb.mxu3 %v5386_v63  ;;  %v2939_v55 = vrot.slane %v8187_v4, 6 }
 0x1fc   : > { %v2707_v22 = vsel %vm11664_vm14, %v2687_v10, %v2688_v31  ;;  %vm11665_vm15 = vmmov %vm11663_vm0  ;;  %v11668_v31 = vld [vmem:[#allocation41_spill] sm:$0xff]  ;;  %v11675_v42 = vrot.slane %v11674_v52, 1  ;;  %v2943_v49 = vrot.slane %v8207_v44, 6  ;;  %v2511_v21 = vmax.f32 %v7817_v50, %v7902_v34 }
 0x1fd   : > { %v2708_v23 = vsel %vm11665_vm15, %v2686_v60, %v2687_v10  ;;  %vm11669_vm14 = vnez %v11668_v31  ;;  %vm11671_vm11 = vmmov %vm11663_vm0  ;;  %v11672_v10 = vld [vmem:[#allocation31_spill] sm:$0xff]  ;;  %v11678_v31 = vrot.slane %v8225_v53, 7  ;;  %4732 = vmatpush.bf16.msrb.mxu0 %v5396_v33  ;;  %v11720_v50 = vrot.slane %v8218_v45, 6 }
 0x1fe   : > { %v2657_v46 = vsel %vm11669_vm14, %v2609_v26, -3.4028235e+38  ;;  %v2713_v60 = vsel %vm11671_vm11, %v11670_v11, %v2682_v14  ;;  %vm11673_vm0 = vnez %v11672_v10  ;;  %vm11676_vm15 = vmmov %vm11667_vm10  ;;  %v2651_v26 = vsel %vm7645_vm7, %v8270_v41, -3.4028235e+38  ;;  %5408 = vmatpush.bf16.msra.mxu2 %v5396_v33 }
 0x1ff   : > { %v2752_v0 = vsel %vm11673_vm0, %v2707_v22, -3.4028235e+38  ;;  %v2608_v1 = vsel %vm11676_vm15, %v2594_v9, %v11675_v42  ;;  %v11679_v11 = vrot.slane %v7947_v16, 7  ;;  %vm11680_vm10 = vmmov %vm11671_vm11  ;;  %v8344_v10 = vmax.f32 %v2614_v62, %v2748_v51  ;;  %v11711_v62 = vld [vmem:[#allocation32_spill] sm:$0xff] }
 0x200   : > { %v8350_v25 = vmax.f32 %v2655_v15, %v2708_v23  ;;  %v8352_v9 = vmax.f32 %v2610_v37, %v2752_v0  ;;  %v11681_v41 = vrot.slane %v8218_v45, 7  ;;  %vm11682_vm11 = vmmov %vm11680_vm10  ;;  %v2746_v51 = vsel %vm7195_vm13, %v2713_v60, -3.4028235e+38 }
 0x201   : > { %v2715_v22 = vsel %vm11680_vm10, %v11679_v11, %v11678_v31  ;;  %vm11683_vm15 = vmmov %vm11680_vm10  ;;  %v8362_v63 = vmax.f32 %v2657_v46, %v2706_v18  ;;  %v11685_v15 = vpack.c.bf16 %v11573_v27, %v11500_v35  ;;  %v11686_v46 = vrot.slane %v8234_v7, 1  ;;  %v11689_v27 = vld [vmem:[#allocation56_spill] sm:$0xff] }
 0x202   : > { %v2705_v42 = vsel %vm11682_vm11, %v2689_v57, %v11681_v41  ;;  %v2712_v31 = vsel %vm11683_vm15, %v2682_v14, %v2683_v54  ;;  %v11687_v18 = vrot.slane %v8225_v53, 1  ;;  %vm11688_vm10 = vcmp.lt.s32.totalorder %v5856_v48, 7  ;;  %v11691_v14 = vld [vmem:[#allocation43_spill] sm:$0xff] }
 0x203   : > { %4389 = vmatmul.bf16.gmra.mxu2 %v11685_v15  ;;  %vm11690_vm11 = vnez %v11689_v27  ;;  %vm11692_vm15 = vnez %v11691_v14  ;;  %v8389_v0 = vmax.f32 %v2616_v61, %v2746_v51  ;;  %v8391_v24 = vmax.f32 %v2651_v26, %v2712_v31 }
 0x204   : > { %v2618_v35 = vsel %vm11688_vm10, %v11687_v18, %v11686_v46  ;;  %v2744_v30 = vsel %vm11690_vm11, %v2715_v22, -3.4028235e+38  ;;  %v2754_v23 = vsel %vm11692_vm15, %v2705_v42, -3.4028235e+38  ;;  %v2844_v60 = vrot.slane %v8192_v39, 2 }
 0x205   : > { %11693 = vst [vmem:[#allocation98_spill] sm:$0xff] %v8391_v24  ;;  %v2845_v11 = vrot.slane %v8197_v17, 2  ;;  %v2846_v22 = vrot.slane %v8202_v2, 2  ;;  %v2847_v41 = vrot.slane %v8207_v44, 2  ;;  %v2848_v15 = vrot.slane %v8212_v8, 2 }
 0x206   : > { %v8398_v46 = vmax.f32 %v2618_v35, %v2744_v30  ;;  %v2843_v18 = vrot.slane %v8187_v4, 2  ;;  %v2849_v61 = vrot.slane %v8215_v12, 2  ;;  %v10916_v26 = vrot.slane %v8218_v45, 2  ;;  %v5385_v35 = vld [vmem:[%s10550_s3 + $0x80] sm:$0xff]  ;;  %v5395_v30 = vld [vmem:[%s10550_s3 + $0xd0] sm:$0xff] }
 0x207   : > { %vm11694_vm10 = vcmp.lt.s32.totalorder %v5856_v48, 6  ;;  %v8417_v54 = vmax.f32 %v2608_v1, %v2754_v23  ;;  %4533 = vmatpush.bf16.msrb.mxu3 %v5385_v35  ;;  %4733 = vmatpush.bf16.msrb.mxu0 %v5395_v30  ;;  %v2940_v57 = vrot.slane %v8192_v39, 6  ;;  %v2941_v35 = vrot.slane %v8197_v17, 6 }
 0x208   : > { %v2867_v42 = vsel %vm11694_vm10, %v2847_v41, %v2848_v15  ;;  %vm11695_vm15 = vmmov %vm11694_vm10  ;;  %5409 = vmatpush.bf16.msra.mxu2 %v5395_v30  ;;  %v2942_v37 = vrot.slane %v8202_v2, 6  ;;  %v2938_v1 = vrot.slane %v8227_v19, 6  ;;  %v11713_v27 = vrot.slane %v8227_v19, 2 }
 0x209   : > { %v2868_v33 = vsel %vm11695_vm15, %v2846_v22, %v2847_v41  ;;  %vm11696_vm0 = vmmov %vm11694_vm10  ;;  %11698 = vst [vmem:[#allocation95_spill] sm:$0xff] %v8417_v54 }
 0x20a   : > { %v2869_v31 = vsel %vm11696_vm0, %v2845_v11, %v2846_v22  ;;  %vm11697_vm14 = vmmov %vm11696_vm0  ;;  %v2865_v22 = vsel %vm11696_vm0, %v2849_v61, %v10916_v26  ;;  %v11701_v26 = vld [vmem:[#allocation26_spill] sm:$0xff] }
 0x20b   : > { %v2870_v51 = vsel %vm11697_vm14, %v2844_v60, %v2845_v11  ;;  %vm11699_vm14 = vmmov %vm11696_vm0  ;;  %v2909_v58 = vsel %vm8049_vm4, %v2869_v31, -3.4028235e+38  ;;  %vm11702_vm10 = vnez %v11701_v26  ;;  %v2944_v31 = vrot.slane %v8212_v8, 6 }
 0x20c   : > { %v2866_v11 = vsel %vm11699_vm14, %v2848_v15, %v2849_v61  ;;  %vm11700_vm15 = vmmov %vm11696_vm0  ;;  %v2911_v15 = vsel %vm11702_vm10, %v2867_v42, -3.4028235e+38  ;;  %v11703_v61 = vld [vmem:[#allocation45_spill] sm:$0xff]  ;;  %v2945_v42 = vrot.slane %v8215_v12, 6  ;;  %vm11705_vm14 = vcmp.lt.s32.totalorder %v5856_v48, 2 }
 0x20d   : > { %v2871_v23 = vsel %vm11700_vm15, %v2843_v18, %v2844_v60  ;;  %vm11704_vm0 = vnez %v11703_v61  ;;  %v2965_v30 = vsel %vm11705_vm14, %v2941_v35, %v2942_v37  ;;  %vm11706_vm15 = vmmov %vm11705_vm14 }
 0x20e   : > { %v2913_v41 = vsel %vm11704_vm0, %v2865_v22, -3.4028235e+38  ;;  %v2966_v22 = vsel %vm11706_vm15, %v2940_v57, %v2941_v35  ;;  %vm11707_vm0 = vmmov %vm11705_vm14 }
 0x20f   : > { %v2967_v14 = vsel %vm11707_vm0, %v2939_v55, %v2940_v57  ;;  %vm11708_vm10 = vmmov %vm11707_vm0  ;;  %v3006_v57 = vsel %vm8064_vm12, %v2965_v30, -3.4028235e+38  ;;  %v3037_v13 = vmax.f32 %v2909_v58, %v2966_v22  ;;  %v11722_v58 = vmax.f32 %v8197_v17, %v8346_v56  ;;  %v11760_v22 = vld [vmem:[#allocation63_spill] sm:$0xff] }
 0x210   : > { %v2962_v60 = vsel %vm11708_vm10, %v2944_v31, %v2945_v42  ;;  %vm11709_vm9 = vmmov %vm11707_vm0  ;;  %v3004_v35 = vsel %vm7778_vm8, %v2967_v14, -3.4028235e+38  ;;  %vm11714_vm10 = vcmp.lt.s32.totalorder %v5856_v48, 6  ;;  %v11716_v14 = vrot.slane %v8234_v7, 6 }
 0x211   : > { %v2963_v26 = vsel %vm11709_vm9, %v2943_v49, %v2944_v31  ;;  %vm11710_vm2 = vmmov %vm11707_vm0  ;;  %vm11712_vm0 = vnez %v11711_v62  ;;  %v2872_v31 = vsel %vm11714_vm10, %v11713_v27, %v2843_v18  ;;  %v3038_v62 = vmax.f32 %v2868_v33, %v3006_v57 }
 0x212   : > { %v2964_v29 = vsel %vm11710_vm2, %v2942_v37, %v2943_v49  ;;  %v3008_v61 = vsel %vm11712_vm0, %v2963_v26, -3.4028235e+38  ;;  %v2907_v49 = vsel %vm7695_vm1, %v2871_v23, -3.4028235e+38  ;;  %v3036_v37 = vmax.f32 %v2870_v51, %v3004_v35  ;;  %vm11717_vm9 = vmmov %vm11710_vm2  ;;  %v11739_v35 = vld [vmem:[#allocation47_spill] sm:$0xff] }
 0x213   : > { %v2969_v30 = vsel %vm11717_vm9, %v11716_v14, %v2938_v1  ;;  %v3039_v26 = vmax.f32 %v2911_v15, %v2964_v29  ;;  %v2968_v3 = vsel %vm11710_vm2, %v2938_v1, %v2939_v55  ;;  %v3040_v54 = vmax.f32 %v2866_v11, %v3008_v61  ;;  %vm11721_vm14 = vmmov %vm11710_vm2 }
 0x214   : > { %v3041_v27 = vmax.f32 %v2913_v41, %v2962_v60  ;;  %v11718_v18 = vmax.f32 %v8192_v39, %v8344_v10  ;;  %v2961_v23 = vsel %vm11721_vm14, %v2945_v42, %v11720_v50  ;;  %v8496_v33 = vmax.f32 %v11722_v58, %v3037_v13  ;;  %vm11736_vm15 = vmmov %vm11714_vm10  ;;  %v11744_v58 = vld [vmem:[#allocation87_spill] sm:$0xff]  ;;  %v11802_v41 = vld [vmem:[#allocation93_spill] sm:$0xff] }
 0x215   : > { %v11724_v29 = vmax.f32 %v8202_v2, %v8348_v28  ;;  %v11726_v10 = vmax.f32 %v8207_v44, %v8350_v25  ;;  %v3002_v1 = vsel %vm7207_vm6, %v2969_v30, -3.4028235e+38  ;;  %v11729_v15 = vmax.f32 %v8212_v8, %v8352_v9  ;;  %v11795_v39 = vld [vmem:[#allocation119_spill] sm:$0xff] }
 0x216   : > { %v8487_v51 = vmax.f32 %v11718_v18, %v3036_v37  ;;  %11723 = vst [vmem:[#allocation126_spill] sm:$0xff] %v8496_v33  ;;  %v11731_v56 = vmax.f32 %v8215_v12, %v8362_v63  ;;  %v11733_v28 = vmax.f32 %v11656_v32, %v8042_v20  ;;  %v11735_v60 = vrot.slane %v8218_v45, 2  ;;  %v11743_v18 = vld [vmem:[#allocation36_spill] sm:$0xff] }
 0x217   : > { %v8501_v55 = vmax.f32 %v11724_v29, %v3038_v62  ;;  %v8506_v11 = vmax.f32 %v11726_v10, %v3039_v26  ;;  %v8513_v61 = vmax.f32 %v11729_v15, %v3040_v54  ;;  %v11734_v62 = vrot.slane %v11674_v52, 2  ;;  %v11768_v12 = vld [vmem:[#allocation48_spill] sm:$0xff] }
 0x218   : > { %11719 = vst [vmem:[#allocation11_spill] sm:$0xff] %v8487_v51  ;;  %v8518_v13 = vmax.f32 %v11731_v56, %v3041_v27  ;;  %v8524_v25 = vmax.f32 %v8061_v5, %v11733_v28  ;;  %v11737_v54 = vrot.slane %v8234_v7, 2  ;;  %v11738_v42 = vrot.slane %v8225_v53, 2  ;;  %v11808_v45 = vld [vmem:[#allocation96_spill] sm:$0xff] }
 0x219   : > { %11725 = vst [vmem:[#allocation127_spill] sm:$0xff] %v8501_v55  ;;  %v2864_v9 = vsel %vm11736_vm15, %v11735_v60, %v11734_v62  ;;  %v8541_v32 = vmax.f32 %v8141_v40, %v2511_v21  ;;  %v4138_v5 = vpack.c.bf16 %v8082_v36, %v8080_v6  ;;  %vm11740_vm9 = vnez %v11739_v35 }
 0x21a   : > { %11727 = vst [vmem:[#allocation128_spill] sm:$0xff] %v8506_v11  ;;  %v8538_v63 = vsel %vm11714_vm10, %v11738_v42, %v11737_v54  ;;  %v3010_v57 = vsel %vm11740_vm9, %v2961_v23, -3.4028235e+38  ;;  %v2252_v37 = vmax.f32 %v6815_v43, %v8042_v20  ;;  %v11741_v14 = vmax.f32 %v6964_v47, %v7902_v34  ;;  %v11745_v34 = vld [vmem:[#allocation116_spill] sm:$0xff] }
 0x21b   : > { %11730 = vst [vmem:[#allocation129_spill] sm:$0xff] %v8513_v61  ;;  %v3034_v26 = vmax.f32 %v2872_v31, %v3002_v1  ;;  %v8554_v27 = vmax.f32 %v2907_v49, %v2968_v3  ;;  %4227 = vmatmul.bf16.vlgmr.msrb.gmra.mxu1 %v4138_v5  ;;  %v2509_v40 = vmax.f32 %v7685_v59, -3.4028235e+38  ;;  %v2570_v21 = vrot.slane %v8080_v6, 1  ;;  %v11747_v49 = vld [vmem:[#allocation105_spill] sm:$0xff] }
 0x21c   : > { %11732 = vst [vmem:[#allocation130_spill] sm:$0xff] %v8518_v13  ;;  %v2285_v30 = vmax.f32 %v6549_v38, %v11741_v14  ;;  %v2284_v50 = vmax.f32 %v11743_v18, %v2252_v37  ;;  %v2508_v23 = vmax.f32 %v11744_v58, -3.4028235e+38  ;;  %v2670_v29 = vrot.slane %v8524_v25, 7  ;;  %v5393_v58 = vld [vmem:[%s10550_s3 + $0xc0] sm:$0xff] }
 0x21d   : > { %11742 = vst [vmem:[#allocation131_spill] sm:$0xff] %v8554_v27  ;;  %v2571_v43 = vrot.slane %v8082_v36, 1  ;;  %v2574_v38 = vrot.slane %v8524_v25, 1  ;;  %v2575_v47 = vrot.slane %v8541_v32, 1  ;;  %v10924_v3 = vrot.slane %v11745_v34, 1 }
 0x21e   : > { %v8562_v20 = vmax.f32 %v2285_v30, %v2509_v40  ;;  %v8567_v31 = vmax.f32 %v2864_v9, %v3010_v57  ;;  %v8569_v59 = vmax.f32 %v2284_v50, %v2508_v23  ;;  %v10923_v10 = vrot.slane %v11747_v49, 1  ;;  %v5394_v30 = vld [vmem:[%s10550_s3 + $0xc8] sm:$0xff]  ;;  %v11756_v23 = vld [vmem:[#allocation13_spill] sm:$0xff] }
 0x21f   : > { %vm11748_vm2 = vcmp.lt.s32.totalorder %v5856_v48, 7  ;;  %v11749_v15 = vmax.f32 %v8227_v19, %v8389_v0  ;;  %v2666_v60 = vrot.slane %v8080_v6, 7  ;;  %v2667_v5 = vrot.slane %v8082_v36, 7  ;;  %4734 = vmatpush.bf16.msrb.mxu0 %v5394_v30  ;;  %5410 = vmatpush.bf16.msra.mxu2 %v5394_v30 }
 0x220   : > { %11746 = vst [vmem:[#allocation36_spill] sm:$0xff] %v8567_v31  ;;  %v2632_v1 = vsel %vm11748_vm2, %v2570_v21, %v2571_v43  ;;  %v2573_v28 = vrot.slane %v8562_v20, 1  ;;  %v2669_v62 = vrot.slane %v8562_v20, 7  ;;  %v2572_v9 = vrot.slane %v8569_v59, 1  ;;  %vm11751_vm15 = vmmov %vm11748_vm2 }
 0x221   : > { %v8577_v56 = vmax.f32 %v11749_v15, %v3034_v26  ;;  %v2668_v54 = vrot.slane %v8569_v59, 7  ;;  %v4139_v42 = vpack.c.bf16 %v8562_v20, %v8569_v59  ;;  %vm11750_vm14 = vcmp.lt.s32.totalorder %v5856_v48, 1  ;;  %vm11752_vm10 = vmmov %vm11748_vm2  ;;  %v11758_v15 = vld [vmem:[#allocation42_spill] sm:$0xff] }
 0x222   : > { %v2725_v0 = vsel %vm11750_vm14, %v2669_v62, %v2670_v29  ;;  %v2829_v57 = vrot.slane %v8562_v20, 2  ;;  %v2627_v37 = vsel %vm11751_vm15, %v2575_v47, %v10924_v3  ;;  %v2628_v14 = vsel %vm11752_vm10, %v2574_v38, %v2575_v47  ;;  %vm11753_vm9 = vmmov %vm11748_vm2  ;;  %v11765_v3 = vld [vmem:[#allocation97_spill] sm:$0xff] }
 0x223   : > { %v2629_v26 = vsel %vm11748_vm2, %v2573_v28, %v2574_v38  ;;  %v2630_v40 = vsel %vm11753_vm9, %v2572_v9, %v2573_v28  ;;  %vm11754_vm14 = vmmov %vm11748_vm2  ;;  %vm11757_vm10 = vnez %v11756_v23  ;;  %vm11761_vm9 = vnez %v11760_v22  ;;  %4735 = vmatpush.bf16.msrb.mxu0 %v5393_v58  ;;  %5411 = vmatpush.bf16.msra.mxu2 %v5393_v58 }
 0x224   : > { %v2631_v18 = vsel %vm11754_vm14, %v2571_v43, %v2572_v9  ;;  %vm11755_vm15 = vmmov %vm11748_vm2  ;;  %vm11759_vm2 = vnez %v11758_v15  ;;  %v2639_v28 = vsel %vm11761_vm9, %v2627_v37, -3.4028235e+38  ;;  %vm11762_vm14 = vcmp.lt.s32.totalorder %v5856_v48, 1  ;;  %v11763_v9 = vld [vmem:[#allocation84_spill] sm:$0xff] }
 0x225   : > { %v2633_v50 = vsel %vm11755_vm15, %v10923_v10, %v2570_v21  ;;  %v2635_v47 = vsel %vm11757_vm10, %v2631_v18, -3.4028235e+38  ;;  %v2637_v38 = vsel %vm11759_vm2, %v2629_v26, -3.4028235e+38  ;;  %v2726_v43 = vsel %vm11762_vm14, %v2668_v54, %v2669_v62  ;;  %vm11766_vm0 = vmmov %vm11762_vm14 }
 0x226   : > { %vm11764_vm15 = vnez %v11763_v9  ;;  %v10942_v10 = vrot.slane %v8541_v32, 7  ;;  %v10934_v35 = vrot.slane %v11765_v3, 7  ;;  %v2697_v18 = vrot.slane %v11747_v49, 7  ;;  %vm11767_vm12 = vmmov %vm11766_vm0  ;;  %v11772_v9 = vld [vmem:[#allocation94_spill] sm:$0xff] }
 0x227   : > { %v2665_v21 = vsel %vm11764_vm15, %v2633_v50, -3.4028235e+38  ;;  %v2727_v26 = vsel %vm11766_vm0, %v2667_v5, %v2668_v54  ;;  %v2728_v37 = vsel %vm11767_vm12, %v2666_v60, %v2667_v5  ;;  %vm11769_vm4 = vnez %v11768_v12  ;;  %vm11770_vm14 = vmmov %vm11766_vm0 }
 0x228   : > { %v2734_v62 = vsel %vm11769_vm4, %v2725_v0, -3.4028235e+38  ;;  %v8631_v8 = vmax.f32 %v2637_v38, %v2726_v43  ;;  %v2925_v30 = vrot.slane %v8562_v20, 6  ;;  %v2698_v50 = vsel %vm11770_vm14, %v10934_v35, %v2697_v18  ;;  %vm11771_vm15 = vmmov %vm11766_vm0  ;;  %v11774_v38 = vld [vmem:[#allocation16_spill] sm:$0xff] }
 0x229   : > { %v2724_v54 = vsel %vm11771_vm15, %v2670_v29, %v10942_v10  ;;  %v2729_v5 = vsel %vm11766_vm0, %v2697_v18, %v2666_v60  ;;  %vm11773_vm12 = vnez %v11772_v9  ;;  %vm11775_vm8 = vnez %v11774_v38 }
 0x22a   : > { %v2730_v0 = vsel %vm11773_vm12, %v2729_v5, -3.4028235e+38  ;;  %v2732_v43 = vsel %vm11775_vm8, %v2727_v26, -3.4028235e+38  ;;  %v8648_v52 = vmax.f32 %v2635_v47, %v2728_v37  ;;  %v8650_v44 = vmax.f32 %v2628_v14, %v2734_v62  ;;  %v11783_v5 = vld [vmem:[#allocation15_spill] sm:$0xff] }
 0x22b   : > { %v2762_v35 = vmax.f32 %v2632_v1, %v2730_v0  ;;  %v2764_v2 = vmax.f32 %v2630_v40, %v2732_v43  ;;  %v8652_v17 = vmax.f32 %v2639_v28, %v2724_v54  ;;  %v8654_v29 = vmax.f32 %v2665_v21, %v2698_v50  ;;  %4232 = vmatmul.bf16.gmra.mxu1 %v4139_v42  ;;  %v11785_v0 = vld [vmem:[#allocation44_spill] sm:$0xff] }
 0x22c   : > { %v2924_v60 = vrot.slane %v8569_v59, 6  ;;  %v2795_v18 = vmax.f32 %v8082_v36, %v8648_v52  ;;  %v2797_v26 = vmax.f32 %v8562_v20, %v8631_v8  ;;  %v2798_v14 = vmax.f32 %v8524_v25, %v8650_v44 }
 0x22d   : > { %v2794_v47 = vmax.f32 %v8080_v6, %v2762_v35  ;;  %v2796_v1 = vmax.f32 %v8569_v59, %v2764_v2  ;;  %v2799_v40 = vmax.f32 %v8541_v32, %v8652_v17  ;;  %v2826_v58 = vrot.slane %v8080_v6, 2 }
 0x22e   : > { %v2827_v28 = vrot.slane %v8082_v36, 2  ;;  %v2828_v52 = vrot.slane %v8569_v59, 2  ;;  %v2830_v21 = vrot.slane %v8524_v25, 2  ;;  %v2831_v8 = vrot.slane %v8541_v32, 2 }
 0x22f   : > { %v2825_v44 = vmax.f32 %v11747_v49, %v8654_v29  ;;  %v10940_v35 = vrot.slane %v11745_v34, 2  ;;  %v10941_v2 = vrot.slane %v11747_v49, 2  ;;  %v2922_v17 = vrot.slane %v8080_v6, 6  ;;  %v11787_v29 = vld [vmem:[#allocation64_spill] sm:$0xff] }
 0x230   : > { %vm11776_vm15 = vcmp.lt.s32.totalorder %v5856_v48, 6  ;;  %v2923_v54 = vrot.slane %v8082_v36, 6  ;;  %v11792_v36 = vld [vmem:[#allocation117_spill] sm:$0xff]  ;;  %v2953_v10 = vrot.slane %v11747_v49, 6  ;;  %v11796_v24 = vrot.slane %v11795_v39, 6 }
 0x231   : > { %v2884_v20 = vsel %vm11776_vm15, %v2830_v21, %v2831_v8  ;;  %vm11777_vm14 = vmmov %vm11776_vm15  ;;  %v11803_v11 = vrot.slane %v11802_v41, 6 }
 0x232   : > { %v2885_v42 = vsel %vm11777_vm14, %v2829_v57, %v2830_v21  ;;  %vm11778_vm0 = vmmov %vm11777_vm14  ;;  %vm11784_vm14 = vnez %v11783_v5 }
 0x233   : > { %v2886_v59 = vsel %vm11778_vm0, %v2828_v52, %v2829_v57  ;;  %vm11779_vm3 = vmmov %vm11778_vm0 }
 0x234   : > { %v2887_v37 = vsel %vm11779_vm3, %v2827_v28, %v2828_v52  ;;  %vm11780_vm1 = vmmov %vm11778_vm0  ;;  %vm11786_vm3 = vnez %v11785_v0  ;;  %v11879_v0 = vld [vmem:[#allocation68_spill] sm:$0xff] }
 0x235   : > { %v2883_v62 = vsel %vm11780_vm1, %v2831_v8, %v10940_v35  ;;  %vm11781_vm7 = vmmov %vm11778_vm0  ;;  %v2891_v57 = vsel %vm11784_vm14, %v2887_v37, -3.4028235e+38  ;;  %v2893_v43 = vsel %vm11786_vm3, %v2885_v42, -3.4028235e+38  ;;  %vm11789_vm1 = vcmp.lt.s32.totalorder %v5856_v48, 2 }
 0x236   : > { %v2888_v6 = vsel %vm11781_vm7, %v2826_v58, %v2827_v28  ;;  %vm11782_vm15 = vmmov %vm11778_vm0  ;;  %vm11788_vm0 = vnez %v11787_v29  ;;  %v2982_v21 = vsel %vm11789_vm1, %v2924_v60, %v2925_v30  ;;  %v11790_v28 = vld [vmem:[#allocation86_spill] sm:$0xff]  ;;  %v2926_v35 = vrot.slane %v8524_v25, 6 }
 0x237   : > { %v2889_v50 = vsel %vm11782_vm15, %v10941_v2, %v2826_v58  ;;  %v2895_v52 = vsel %vm11788_vm0, %v2883_v62, -3.4028235e+38  ;;  %vm11791_vm7 = vnez %v11790_v28  ;;  %v10951_v58 = vrot.slane %v8541_v32, 6  ;;  %vm11793_vm15 = vmmov %vm11789_vm1 }
 0x238   : > { %v2921_v8 = vsel %vm11791_vm7, %v2889_v50, -3.4028235e+38  ;;  %v10950_v2 = vrot.slane %v11792_v36, 6  ;;  %v2952_v37 = vrot.slane %v11765_v3, 6  ;;  %v2983_v42 = vsel %vm11793_vm15, %v2923_v54, %v2924_v60  ;;  %vm11794_vm6 = vmmov %vm11789_vm1  ;;  %v11799_v3 = vld [vmem:[#allocation21_spill] sm:$0xff] }
 0x239   : > { %v2984_v62 = vsel %vm11794_vm6, %v2922_v17, %v2923_v54  ;;  %vm11797_vm7 = vmmov %vm11789_vm1  ;;  %vm11800_vm15 = vnez %v11799_v3  ;;  %v3021_v4 = vmax.f32 %v2893_v43, %v2982_v21  ;;  %v11819_v43 = vld [vmem:[#allocation39_spill] sm:$0xff]  ;;  %v4140_v21 = vpack.c.bf16 %v8541_v32, %v8524_v25 }
 0x23a   : > { %v2977_v50 = vsel %vm11789_vm1, %v10950_v2, %v11796_v24  ;;  %v2980_v28 = vsel %vm11797_vm7, %v2926_v35, %v10951_v58  ;;  %vm11798_vm13 = vmmov %vm11789_vm1  ;;  %v2988_v60 = vsel %vm11800_vm15, %v2983_v42, -3.4028235e+38  ;;  %v2985_v24 = vsel %vm11789_vm1, %v2953_v10, %v2922_v17  ;;  %v11806_v2 = vld [vmem:[#allocation49_spill] sm:$0xff] }
 0x23b   : > { %v2981_v49 = vsel %vm11798_vm13, %v2925_v30, %v2926_v35  ;;  %vm11801_vm6 = vmmov %vm11789_vm1  ;;  %vm11807_vm7 = vnez %v11806_v2  ;;  %vm11809_vm13 = vnez %v11808_v45  ;;  %v11810_v35 = vld [vmem:[#allocation104_spill] sm:$0xff]  ;;  %v3019_v31 = vmax.f32 %v2891_v57, %v2984_v62  ;;  %4237 = vmatmul.bf16.gmra.mxu1 %v4140_v21  ;;  %v11835_v21 = vld [vmem:[#allocation74_spill] sm:$0xff] }
 0x23c   : > { %v2954_v54 = vsel %vm11801_vm6, %v2952_v37, %v2953_v10  ;;  %vm11804_vm11 = vmmov %vm11789_vm1  ;;  %v2990_v58 = vsel %vm11807_vm7, %v2981_v49, -3.4028235e+38  ;;  %v2986_v30 = vsel %vm11809_vm13, %v2985_v24, -3.4028235e+38  ;;  %vm11811_vm5 = vnez %v11810_v35 }
 0x23d   : > { %v8735_v61 = vsel %vm11804_vm11, %v11803_v11, %v2952_v37  ;;  %v2994_v42 = vsel %vm11811_vm5, %v2977_v50, -3.4028235e+38  ;;  %v3020_v33 = vmax.f32 %v2886_v59, %v2988_v60  ;;  %v3018_v51 = vmax.f32 %v2888_v6, %v2986_v30  ;;  %v11812_v11 = vld [vmem:[#allocation5_spill] sm:$0xff]  ;;  %v11813_v59 = vld [vmem:[#allocation30_spill] sm:$0xff] }
 0x23e   : > { %11805 = vst [vmem:[#allocation87_spill] sm:$0xff] %v8735_v61  ;;  %v3022_v27 = vmax.f32 %v2884_v20, %v2990_v58  ;;  %v3023_v7 = vmax.f32 %v2895_v52, %v2980_v28  ;;  %v3026_v37 = vmax.f32 %v11812_v11, %v2994_v42  ;;  %v3049_v61 = vmax.f32 %v2921_v8, %v2954_v54 }
 0x23f   : > { %v8746_v19 = vmax.f32 %v2795_v18, %v3019_v31  ;;  %v8748_v10 = vmax.f32 %v2796_v1, %v3020_v33  ;;  %v8750_v49 = vmax.f32 %v2794_v47, %v3018_v51  ;;  %v8752_v17 = vmax.f32 %v2797_v26, %v3021_v4  ;;  %v11816_v33 = vld [vmem:[#allocation29_spill] sm:$0xff] }
 0x240   : > { %v8754_v24 = vmax.f32 %v2798_v14, %v3022_v27  ;;  %v8756_v50 = vmax.f32 %v2799_v40, %v3023_v7  ;;  %v11814_v6 = vmax.f32 %v11795_v39, %v11813_v59  ;;  %v8763_v57 = vmax.f32 %v2825_v44, %v3049_v61  ;;  %v11817_v7 = vld [vmem:[#allocation6_spill] sm:$0xff]  ;;  %v11818_v44 = vld [vmem:[#allocation17_spill] sm:$0xff] }
 0x241   : > { %v3146_v31 = vmax.f32 %v8748_v10, -3.4028235e+38  ;;  %v3147_v51 = vmax.f32 %v8752_v17, -3.4028235e+38  ;;  %v3280_v26 = vmax.f32 %v11817_v7, %v8748_v10  ;;  %v4112_v52 = vpack.c.bf16 %v11819_v43, %v11818_v44  ;;  %v11825_v59 = vld [vmem:[#allocation73_spill] sm:$0xff] }
 0x242   : > { %v8761_v20 = vmax.f32 %v11814_v6, %v3026_v37  ;;  %11815 = vst [vmem:[#allocation116_spill] sm:$0xff] %v8763_v57  ;;  %v3274_v4 = vmax.f32 %v8754_v24, -3.4028235e+38  ;;  %v3275_v27 = vmax.f32 %v8756_v50, -3.4028235e+38  ;;  %v2577_v28 = vrot.slane %v11792_v36, 1 }
 0x243   : > { %v3178_v61 = vmax.f32 %v8750_v49, %v3146_v31  ;;  %v3179_v40 = vmax.f32 %v8746_v19, %v3147_v51  ;;  %v2672_v58 = vrot.slane %v11745_v34, 7  ;;  %v2833_v62 = vrot.slane %v11792_v36, 2  ;;  %4394 = vmatmul.bf16.gmra.mxu2 %v4112_v52  ;;  %v11824_v37 = vld [vmem:[#allocation107_spill] sm:$0xff]  ;;  %v11827_v31 = vld [vmem:[#allocation8_spill] sm:$0xff] }
 0x244   : > { %v2928_v60 = vrot.slane %v11745_v34, 6  ;;  %v11820_v30 = vrot.slane %v11795_v39, 1  ;;  %vm11821_vm11 = vcmp.lt.s32.totalorder %v5856_v48, 7  ;;  %v11822_v25 = vrot.slane %v11745_v34, 1 }
 0x245   : > { %v8786_v8 = vmax.f32 %v3178_v61, %v3274_v4  ;;  %v8791_v54 = vmax.f32 %v3179_v40, %v3275_v27  ;;  %vm11823_vm6 = vmmov %vm11821_vm11  ;;  %vm11826_vm1 = vnez %v11825_v59  ;;  %vm11828_vm5 = vnez %v11827_v31 }
 0x246   : > { %v2625_v42 = vsel %vm11821_vm11, %v2577_v28, %v11820_v30  ;;  %v2626_v11 = vsel %vm11823_vm6, %v11822_v25, %v2577_v28  ;;  %v2919_v6 = vsel %vm11826_vm1, %v11824_v37, -3.4028235e+38  ;;  %v11829_v4 = vrot.slane %v11792_v36, 7 }
 0x247   : > { %v2641_v51 = vsel %vm11828_vm5, %v2625_v42, -3.4028235e+38  ;;  %vm11830_vm13 = vcmp.lt.s32.totalorder %v5856_v48, 1  ;;  %v11831_v61 = vrot.slane %v8541_v32, 7  ;;  %v11833_v44 = vrot.slane %v11795_v39, 2 }
 0x248   : > { %v2722_v27 = vsel %vm11830_vm13, %v2672_v58, %v11829_v4  ;;  %vm11832_vm11 = vmmov %vm11830_vm13  ;;  %vm11834_vm6 = vcmp.lt.s32.totalorder %v5856_v48, 6  ;;  %v4445_v52 = vpack.c.bf16 %v8791_v54, %v8786_v8  ;;  %vm11836_vm1 = vnez %v11835_v21  ;;  %v11839_v4 = vld [vmem:[#allocation9_spill] sm:$0xff] }
 0x249   : > { %v2723_v40 = vsel %vm11832_vm11, %v11831_v61, %v2672_v58  ;;  %v2881_v43 = vsel %vm11834_vm6, %v2833_v62, %v11833_v44  ;;  %v2769_v30 = vmax.f32 %v2641_v51, %v2722_v27  ;;  %v11837_v42 = vrot.slane %v11745_v34, 2  ;;  %vm11838_vm13 = vmmov %vm11834_vm6  ;;  %v11845_v27 = vld [vmem:[#allocation75_spill] sm:$0xff] }
 0x24a   : > { %v2736_v28 = vsel %vm11836_vm1, %v2723_v40, -3.4028235e+38  ;;  %vm11840_vm11 = vnez %v11839_v4  ;;  %v11841_v61 = vrot.slane %v11792_v36, 6  ;;  %vm11842_vm6 = vcmp.lt.s32.totalorder %v5856_v48, 2  ;;  %4534 = vmatmul.bf16.vlgmr.msrb.gmra.mxu3 %v4445_v52 }
 0x24b   : > { %v2882_v25 = vsel %vm11838_vm13, %v11837_v42, %v2833_v62  ;;  %v2768_v37 = vmax.f32 %v2626_v11, %v2736_v28  ;;  %v2897_v58 = vsel %vm11840_vm11, %v2881_v43, -3.4028235e+38  ;;  %v11843_v1 = vrot.slane %v8541_v32, 6  ;;  %vm11844_vm5 = vmmov %vm11842_vm6 }
 0x24c   : > { %v2978_v44 = vsel %vm11842_vm6, %v2928_v60, %v11841_v61  ;;  %v2801_v51 = vmax.f32 %v11792_v36, %v2769_v30  ;;  %vm11846_vm1 = vnez %v11845_v27  ;;  %v3148_v43 = vmax.f32 %v8754_v24, %v8750_v49  ;;  %v11848_v30 = vld [vmem:[#allocation92_spill] sm:$0xff] }
 0x24d   : > { %v2979_v40 = vsel %vm11844_vm5, %v11843_v1, %v2928_v60  ;;  %v3025_v11 = vmax.f32 %v2897_v58, %v2978_v44  ;;  %v2800_v28 = vmax.f32 %v11745_v34, %v2768_v37  ;;  %v3149_v61 = vmax.f32 %v8756_v50, %v8746_v19 }
 0x24e   : > { %v2992_v62 = vsel %vm11846_vm1, %v2979_v40, -3.4028235e+38  ;;  %v3152_v32 = vmax.f32 %v8761_v20, %v8754_v24  ;;  %v3180_v60 = vmax.f32 %v8748_v10, %v3148_v43  ;;  %v11847_v52 = vrot.slane %v11802_v41, 6  ;;  %v11850_v40 = vld [vmem:[#allocation108_spill] sm:$0xff] }
 0x24f   : > { %v3024_v42 = vmax.f32 %v2882_v25, %v2992_v62  ;;  %v8846_v1 = vmax.f32 %v2801_v51, %v3025_v11  ;;  %v11849_v58 = vrot.slane %v11848_v30, 6  ;;  %v3305_v37 = vmax.f32 %v11850_v40, -3.4028235e+38 }
 0x250   : > { %v3181_v62 = vmax.f32 %v8752_v17, %v3149_v61  ;;  %v3339_v43 = vrot.slane %v8791_v54, 1  ;;  %v3434_v18 = vrot.slane %v8786_v8, 7  ;;  %v11854_v59 = vrot.slane %v8786_v8, 1 }
 0x251   : > { %v2956_v44 = vsel %vm11844_vm5, %v11849_v58, %v11847_v52  ;;  %v8856_v25 = vmax.f32 %v2800_v28, %v3024_v42  ;;  %v3277_v51 = vmax.f32 %v8846_v1, -3.4028235e+38  ;;  %v3151_v11 = vmax.f32 %v8846_v1, %v8752_v17 }
 0x252   : > { %v3047_v14 = vmax.f32 %v2919_v6, %v2956_v44  ;;  %v11851_v6 = vld [vmem:[#allocation102_spill] sm:$0xff]  ;;  %vm11855_vm13 = vcmp.lt.s32.totalorder %v5856_v48, 7  ;;  %v10973_v55 = vrot.slane %v8786_v8, 2  ;;  %v3595_v12 = vrot.slane %v8791_v54, 2 }
 0x253   : > { %v3184_v28 = vmax.f32 %v8856_v25, %v3152_v32  ;;  %v3276_v42 = vmax.f32 %v8856_v25, -3.4028235e+38  ;;  %v11852_v61 = vmax.f32 %v11802_v41, %v11851_v6  ;;  %v8874_v44 = vmax.f32 %v3181_v62, %v3277_v51  ;;  %vm11859_vm6 = vmmov %vm11855_vm13 }
 0x254   : > { %v3150_v47 = vmax.f32 %v8856_v25, %v8748_v10  ;;  %v3183_v30 = vmax.f32 %v8756_v50, %v3151_v11  ;;  %v3400_v52 = vsel %vm11855_vm13, %v11854_v59, %v3339_v43  ;;  %v11856_v10 = vmax.f32 %v11816_v33, %v8746_v19  ;;  %vm11860_vm5 = vmmov %vm11859_vm6 }
 0x255   : > { %v8872_v58 = vmax.f32 %v11852_v61, %v3047_v14  ;;  %v8883_v32 = vmax.f32 %v3180_v60, %v3276_v42  ;;  %v8886_v13 = vmax.f32 %v3184_v28, %v3280_v26  ;;  %v3435_v14 = vrot.slane %v8791_v54, 7  ;;  %vm11863_vm11 = vmmov %vm11860_vm5 }
 0x256   : > { %v3182_v62 = vmax.f32 %v8754_v24, %v3150_v47  ;;  %v8893_v51 = vmax.f32 %v3183_v30, %v11856_v10  ;;  %v3341_v11 = vrot.slane %v8874_v44, 1  ;;  %v3437_v6 = vrot.slane %v8874_v44, 7 }
 0x257   : > { %11853 = vst [vmem:[#allocation13_spill] sm:$0xff] %v8872_v58  ;;  %v3177_v40 = vmax.f32 %v8872_v58, -3.4028235e+38  ;;  %v4446_v59 = vpack.c.bf16 %v8874_v44, %v8883_v32  ;;  %v3340_v26 = vrot.slane %v8883_v32, 1  ;;  %v11857_v47 = vmax.f32 %v8761_v20, %v8750_v49 }
 0x258   : > { %v3343_v19 = vrot.slane %v8893_v51, 1  ;;  %v3436_v30 = vrot.slane %v8883_v32, 7  ;;  %vm11861_vm13 = vcmp.lt.s32.totalorder %v5856_v48, 1  ;;  %v4141_v29 = vpack.c.bf16 %v11792_v36, %v11745_v34 }
 0x259   : > { %v3209_v60 = vmax.f32 %v8763_v57, %v3177_v40  ;;  %v8905_v42 = vmax.f32 %v3182_v62, %v11857_v47  ;;  %v3398_v40 = vsel %vm11859_vm6, %v3340_v26, %v3341_v11  ;;  %v3399_v58 = vsel %vm11860_vm5, %v3339_v43, %v3340_v26  ;;  %vm11864_vm6 = vmmov %vm11861_vm13 }
 0x25a   : > { %v3496_v28 = vsel %vm11861_vm13, %v3434_v18, %v3435_v14  ;;  %v11862_v62 = vrot.slane %v8886_v13, 1  ;;  %v3494_v26 = vsel %vm11864_vm6, %v3436_v30, %v3437_v6  ;;  %vm11865_vm5 = vmmov %vm11864_vm6  ;;  %4539 = vmatmul.bf16.gmra.mxu3 %v4446_v59  ;;  %4242 = vmatmul.bf16.gmra.mxu1 %v4141_v29  ;;  %v3696_v29 = vrot.slane %v8886_v13, 6 }
 0x25b   : > { %v8910_v10 = vmax.f32 %v3209_v60, %v3305_v37  ;;  %v3342_v49 = vrot.slane %v8905_v42, 1  ;;  %v3403_v37 = vsel %vm11757_vm10, %v3399_v58, -3.4028235e+38  ;;  %v3438_v60 = vrot.slane %v8905_v42, 7  ;;  %vm11866_vm13 = vmmov %vm11863_vm11 }
 0x25c   : > { %v3395_v47 = vsel %vm11863_vm11, %v3343_v19, %v11862_v62  ;;  %v3495_v57 = vsel %vm11865_vm5, %v3435_v14, %v3436_v30  ;;  %v11867_v58 = vrot.slane %v8893_v51, 7  ;;  %vm11868_vm10 = vmmov %vm11865_vm5  ;;  %v4447_v3 = vpack.c.bf16 %v8893_v51, %v8905_v42 }
 0x25d   : > { %11858 = vst [vmem:[#allocation42_spill] sm:$0xff] %v8910_v10  ;;  %v3407_v61 = vsel %vm11761_vm9, %v3395_v47, -3.4028235e+38  ;;  %v10974_v43 = vrot.slane %v8910_v10, 7  ;;  %v3396_v41 = vsel %vm11866_vm13, %v3342_v49, %v3343_v19  ;;  %v3397_v23 = vsel %vm11863_vm11, %v3341_v11, %v3342_v49  ;;  %vm11869_vm9 = vmmov %vm11865_vm5 }
 0x25e   : > { %v3492_v22 = vsel %vm11868_vm10, %v3438_v60, %v11867_v58  ;;  %v3493_v62 = vsel %vm11869_vm9, %v3437_v6, %v3438_v60  ;;  %v3405_v47 = vsel %vm11759_vm2, %v3397_v23, -3.4028235e+38  ;;  %vm11870_vm6 = vmmov %vm11865_vm5  ;;  %v3500_v19 = vsel %vm11775_vm8, %v3495_v57, -3.4028235e+38 }
 0x25f   : > { %v3497_v14 = vsel %vm11870_vm6, %v10974_v43, %v3434_v18  ;;  %v3502_v11 = vsel %vm11769_vm4, %v3493_v62, -3.4028235e+38  ;;  %v3531_v49 = vmax.f32 %v3403_v37, %v3496_v28  ;;  %v3532_v6 = vmax.f32 %v3398_v40, %v3500_v19 }
 0x260   : > { %v3498_v30 = vsel %vm11773_vm12, %v3497_v14, -3.4028235e+38  ;;  %v3533_v60 = vmax.f32 %v3405_v47, %v3494_v26  ;;  %v3534_v23 = vmax.f32 %v3396_v41, %v3502_v11  ;;  %v3535_v58 = vmax.f32 %v3407_v61, %v3492_v22 }
 0x261   : > { %v3530_v15 = vmax.f32 %v3400_v52, %v3498_v30  ;;  %v3563_v18 = vmax.f32 %v8791_v54, %v3531_v49  ;;  %v3564_v38 = vmax.f32 %v8883_v32, %v3532_v6  ;;  %v3596_v52 = vrot.slane %v8883_v32, 2 }
 0x262   : > { %v3565_v57 = vmax.f32 %v8874_v44, %v3533_v60  ;;  %v3566_v9 = vmax.f32 %v8905_v42, %v3534_v23  ;;  %v3567_v28 = vmax.f32 %v8893_v51, %v3535_v58  ;;  %v3597_v41 = vrot.slane %v8874_v44, 2 }
 0x263   : > { %v3562_v59 = vmax.f32 %v8786_v8, %v3530_v15  ;;  %v3598_v61 = vrot.slane %v8905_v42, 2  ;;  %v3599_v40 = vrot.slane %v8893_v51, 2  ;;  %v3600_v37 = vrot.slane %v8886_v13, 2 }
 0x264   : > { %vm11871_vm8 = vcmp.lt.s32.totalorder %v5856_v48, 6  ;;  %v3690_v62 = vrot.slane %v8786_v8, 6  ;;  %v3691_v47 = vrot.slane %v8791_v54, 6  ;;  %vm11877_vm11 = vcmp.lt.s32.totalorder %v5856_v48, 2 }
 0x265   : > { %v3655_v26 = vsel %vm11871_vm8, %v3595_v12, %v3596_v52  ;;  %vm11872_vm4 = vmmov %vm11871_vm8  ;;  %v3692_v15 = vrot.slane %v8883_v32, 6  ;;  %v3693_v23 = vrot.slane %v8874_v44, 6  ;;  %v3694_v58 = vrot.slane %v8905_v42, 6  ;;  %v11887_v42 = vld [vmem:[#allocation53_spill] sm:$0xff] }
 0x266   : > { %v3656_v22 = vsel %vm11872_vm4, %v10973_v55, %v3595_v12  ;;  %vm11873_vm2 = vmmov %vm11872_vm4  ;;  %v3659_v49 = vsel %vm11784_vm14, %v3655_v26, -3.4028235e+38  ;;  %v3752_v60 = vsel %vm11877_vm11, %v3690_v62, %v3691_v47  ;;  %v3695_v12 = vrot.slane %v8893_v51, 6 }
 0x267   : > { %v3651_v14 = vsel %vm11873_vm2, %v3599_v40, %v3600_v37  ;;  %vm11874_vm12 = vmmov %vm11873_vm2  ;;  %v10972_v5 = vrot.slane %v8910_v10, 6  ;;  %vm11885_vm6 = vnez %v11808_v45  ;;  %v3153_v45 = vmax.f32 %v11816_v33, %v8756_v50 }
 0x268   : > { %v3652_v19 = vsel %vm11874_vm12, %v3598_v61, %v3599_v40  ;;  %vm11875_vm5 = vmmov %vm11873_vm2  ;;  %v3663_v6 = vsel %vm11788_vm0, %v3651_v14, -3.4028235e+38  ;;  %vm11892_vm8 = vnez %v11835_v21  ;;  %vm11894_vm4 = vcmp.lt.s32.totalorder %v5856_v48, 7 }
 0x269   : > { %v3653_v11 = vsel %vm11875_vm5, %v3597_v41, %v3598_v61  ;;  %vm11876_vm13 = vmmov %vm11873_vm2 }
 0x26a   : > { %v3654_v30 = vsel %vm11876_vm13, %v3596_v52, %v3597_v41  ;;  %v3661_v54 = vsel %vm11786_vm3, %v3653_v11, -3.4028235e+38  ;;  %v3787_v52 = vmax.f32 %v3659_v49, %v3752_v60  ;;  %v11878_v41 = vld [vmem:[#allocation50_spill] sm:$0xff]  ;;  %vm11880_vm14 = vmmov %vm11877_vm11  ;;  %4544 = vmatmul.bf16.gmra.mxu3 %v4447_v3 }
 0x26b   : > { %v4113_v61 = vpack.c.bf16 %v11879_v0, %v11878_v41  ;;  %v3748_v40 = vsel %vm11880_vm14, %v3694_v58, %v3695_v12  ;;  %vm11881_vm3 = vmmov %vm11877_vm11  ;;  %vm11898_vm11 = vnez %v11827_v31  ;;  %v11903_v31 = vld [vmem:[#allocation12_spill] sm:$0xff] }
 0x26c   : > { %v3749_v32 = vsel %vm11881_vm3, %v3693_v23, %v3694_v58  ;;  %vm11882_vm0 = vmmov %vm11881_vm3  ;;  %v9021_v58 = vmax.f32 %v3563_v18, %v3787_v52  ;;  %v11886_v18 = vmax.f32 %v11817_v7, %v8856_v25  ;;  %v11888_v52 = vld [vmem:[#allocation60_spill] sm:$0xff] }
 0x26d   : > { %v3750_v44 = vsel %vm11882_vm0, %v3692_v15, %v3693_v23  ;;  %vm11883_vm10 = vmmov %vm11882_vm0  ;;  %v3758_v36 = vsel %vm11807_vm7, %v3749_v32, -3.4028235e+38  ;;  %4399 = vmatmul.bf16.gmra.mxu2 %v4113_v61  ;;  %v3282_v0 = vmax.f32 %v11888_v52, %v8754_v24  ;;  %v3440_v61 = vrot.slane %v8886_v13, 7 }
 0x26e   : > { %v3751_v26 = vsel %vm11883_vm10, %v3691_v47, %v3692_v15  ;;  %vm11884_vm9 = vmmov %vm11882_vm0  ;;  %v3789_v11 = vmax.f32 %v3661_v54, %v3750_v44  ;;  %v3790_v23 = vmax.f32 %v3652_v19, %v3758_v36  ;;  %v3791_v47 = vmax.f32 %v3663_v6, %v3748_v40 }
 0x26f   : > { %v3753_v14 = vsel %vm11884_vm9, %v10972_v5, %v3690_v62  ;;  %v3756_v34 = vsel %vm11800_vm15, %v3751_v26, -3.4028235e+38  ;;  %vm11890_vm15 = vcmp.lt.s32.totalorder %v5856_v48, 1  ;;  %vm11891_vm7 = vmmov %vm11882_vm0  ;;  %v11961_v5 = vld [vmem:[#allocation79_spill] sm:$0xff] }
 0x270   : > { %v3754_v49 = vsel %vm11885_vm6, %v3753_v14, -3.4028235e+38  ;;  %v3788_v60 = vmax.f32 %v3654_v30, %v3756_v34  ;;  %v9023_v41 = vmax.f32 %v3565_v57, %v3789_v11  ;;  %v9029_v2 = vmax.f32 %v3566_v9, %v3790_v23  ;;  %vm11895_vm2 = vmmov %vm11890_vm15 }
 0x271   : > { %v3786_v15 = vmax.f32 %v3656_v22, %v3754_v49  ;;  %v9031_v54 = vmax.f32 %v3567_v28, %v3791_v47  ;;  %v3186_v57 = vmax.f32 %v8761_v20, %v11886_v18  ;;  %v11889_v34 = vrot.slane %v8893_v51, 7  ;;  %vm11896_vm12 = vmmov %vm11894_vm4 }
 0x272   : > { %v9027_v62 = vmax.f32 %v3564_v38, %v3788_v60  ;;  %v3915_v22 = vmax.f32 %v9023_v41, -3.4028235e+38  ;;  %v3281_v38 = vmax.f32 %v11887_v42, %v8752_v17  ;;  %v4042_v28 = vmax.f32 %v9029_v2, -3.4028235e+38  ;;  %vm11897_vm13 = vmmov %vm11875_vm5 }
 0x273   : > { %v9035_v30 = vmax.f32 %v3562_v59, %v3786_v15  ;;  %v4043_v19 = vmax.f32 %v9031_v54, -3.4028235e+38  ;;  %v3185_v59 = vmax.f32 %v8846_v1, %v3153_v45  ;;  %v3917_v44 = vmax.f32 %v9031_v54, %v9021_v58  ;;  %vm11900_vm14 = vmmov %vm11882_vm0 }
 0x274   : > { %v3914_v9 = vmax.f32 %v9027_v62, -3.4028235e+38  ;;  %v3947_v6 = vmax.f32 %v9021_v58, %v3915_v22  ;;  %v9060_v14 = vmax.f32 %v3186_v57, %v3282_v0  ;;  %v3491_v24 = vsel %vm11890_vm15, %v11889_v34, %v3440_v61  ;;  %vm11906_vm3 = vmmov %vm11894_vm4 }
 0x275   : > { %v9054_v40 = vmax.f32 %v3185_v59, %v3281_v38  ;;  %v3916_v32 = vmax.f32 %v9029_v2, %v9035_v30  ;;  %v3747_v36 = vsel %vm11891_vm7, %v3695_v12, %v3696_v29  ;;  %v3504_v23 = vsel %vm11892_vm8, %v3491_v24, -3.4028235e+38  ;;  %v11902_v24 = vld [vmem:[#allocation88_spill] sm:$0xff]  ;;  %vm11910_vm0 = vmmov %vm11895_vm2 }
 0x276   : > { %v3946_v17 = vmax.f32 %v9035_v30, %v3914_v9  ;;  %v4075_v26 = vmax.f32 %v3947_v6, %v4043_v19  ;;  %v3346_v47 = vrot.slane %v9060_v14, 1  ;;  %v3602_v51 = vrot.slane %v9060_v14, 2  ;;  %vm11915_vm9 = vmmov %vm11875_vm5 }
 0x277   : > { %v3345_v49 = vrot.slane %v9054_v40, 1  ;;  %v3441_v60 = vrot.slane %v9054_v40, 7  ;;  %v3601_v15 = vrot.slane %v9054_v40, 2  ;;  %v3697_v3 = vrot.slane %v9054_v40, 6  ;;  %vm11918_vm6 = vmmov %vm11891_vm7 }
 0x278   : > { %v4074_v11 = vmax.f32 %v3946_v17, %v4042_v28  ;;  %v11893_v22 = vrot.slane %v8886_v13, 1  ;;  %v3760_v21 = vsel %vm11846_vm1, %v3747_v36, -3.4028235e+38  ;;  %vm11899_vm1 = vnez %v11839_v4  ;;  %vm11923_vm7 = vmmov %vm11918_vm6 }
 0x279   : > { %v3490_v18 = vsel %vm11895_vm2, %v3440_v61, %v3441_v60  ;;  %v3393_v57 = vsel %vm11896_vm12, %v3345_v49, %v3346_v47  ;;  %v3649_v9 = vsel %vm11875_vm5, %v3601_v15, %v3602_v51  ;;  %v3650_v28 = vsel %vm11897_vm13, %v3600_v37, %v3601_v15  ;;  %v11901_v37 = vld [vmem:[#allocation76_spill] sm:$0xff]  ;;  %vm11931_vm12 = vmmov %vm11918_vm6 }
 0x27a   : > { %v4647_v45 = vpack.c.bf16 %v4075_v26, %v4074_v11  ;;  %v3394_v12 = vsel %vm11894_vm4, %v11893_v22, %v3345_v49  ;;  %v3409_v27 = vsel %vm11898_vm11, %v3393_v57, -3.4028235e+38  ;;  %v3665_v19 = vsel %vm11899_vm1, %v3649_v9, -3.4028235e+38  ;;  %vm11926_vm4 = vmmov %vm11910_vm0 }
 0x27b   : > { %v3536_v38 = vmax.f32 %v3394_v12, %v3504_v23  ;;  %v3746_v59 = vsel %vm11900_vm14, %v3696_v29, %v3697_v3  ;;  %v3792_v6 = vmax.f32 %v3650_v28, %v3760_v21  ;;  %v3537_v0 = vmax.f32 %v3409_v27, %v3490_v18  ;;  %vm11939_vm13 = vmmov %vm11906_vm3 }
 0x27c   : > { %4736 = vmatmul.bf16.vlgmr.msrb.gmra.mxu0 %v4647_v45  ;;  %v3793_v17 = vmax.f32 %v3665_v19, %v3746_v59  ;;  %v3948_v26 = vmax.f32 %v9027_v62, %v3916_v32  ;;  %v3949_v34 = vmax.f32 %v9023_v41, %v3917_v44  ;;  %v4114_v36 = vpack.c.bf16 %v11902_v24, %v11901_v37  ;;  %v11908_v45 = vld [vmem:[#allocation120_spill] sm:$0xff]  ;;  %v11924_v24 = vld [vmem:[#allocation57_spill] sm:$0xff]  ;;  %vm11942_vm11 = vmmov %vm11910_vm0 }
 0x27d   : > { %v3568_v61 = vmax.f32 %v8886_v13, %v3536_v38  ;;  %v4142_v11 = vpack.c.bf16 %v11903_v31, %v11795_v39  ;;  %v4448_v4 = vpack.c.bf16 %v9054_v40, %v8886_v13  ;;  %v3569_v29 = vmax.f32 %v9054_v40, %v3537_v0  ;;  %v11911_v13 = vld [vmem:[#allocation51_spill] sm:$0xff]  ;;  %vm11947_vm14 = vmmov %vm11915_vm9 }
 0x27e   : > { %v11904_v23 = vrot.slane %v8225_v53, 1  ;;  %v11905_v15 = vrot.slane %v7947_v16, 1  ;;  %v11907_v44 = vrot.slane %v7947_v16, 7  ;;  %v11909_v22 = vrot.slane %v11908_v45, 7  ;;  %4404 = vmatmul.bf16.gmra.mxu2 %v4114_v36 }
 0x27f   : > { %v9112_v49 = vmax.f32 %v3568_v61, %v3792_v6  ;;  %4247 = vmatmul.bf16.gmra.mxu1 %v4142_v11  ;;  %vm11912_vm10 = vnez %v11911_v13  ;;  %v2808_v12 = vmax.f32 %v8225_v53, %v8398_v46  ;;  %v11913_v18 = vrot.slane %v8225_v53, 2  ;;  %v11919_v46 = vld [vmem:[#allocation55_spill] sm:$0xff]  ;;  %4549 = vmatmul.bf16.gmra.mxu3 %v4448_v4 }
 0x280   : > { %v2619_v32 = vsel %vm11906_vm3, %v11905_v15, %v11904_v23  ;;  %v2716_v39 = vsel %vm11910_vm0, %v11909_v22, %v11907_v44  ;;  %v11914_v21 = vrot.slane %v7947_v16, 2  ;;  %v11916_v38 = vrot.slane %v8225_v53, 6  ;;  %vm11950_vm3 = vmmov %vm11918_vm6 }
 0x281   : > { %v2647_v40 = vsel %vm11912_vm10, %v2619_v32, -3.4028235e+38  ;;  %v11917_v9 = vrot.slane %v7947_v16, 6  ;;  %v9142_v27 = vmax.f32 %v3569_v29, %v3793_v17  ;;  %v4044_v19 = vmax.f32 %v9112_v49, -3.4028235e+38  ;;  %vm11951_vm0 = vmmov %vm11939_vm13 }
 0x282   : > { %v2875_v57 = vsel %vm11915_vm9, %v11914_v21, %v11913_v18  ;;  %v2775_v59 = vmax.f32 %v2647_v40, %v2716_v39  ;;  %vm11920_vm15 = vnez %v11919_v46  ;;  %v11922_v61 = vrot.slane %v11908_v45, 6  ;;  %vm11952_vm9 = vmmov %vm11926_vm4 }
 0x283   : > { %v2971_v28 = vsel %vm11918_vm6, %v11917_v9, %v11916_v38  ;;  %v2903_v6 = vsel %vm11920_vm15, %v2875_v57, -3.4028235e+38  ;;  %v11921_v0 = vmov %v11917_v9  ;;  %vm11925_vm8 = vnez %v11924_v24  ;;  %v11927_v38 = vld [vmem:[#allocation100_spill] sm:$0xff]  ;;  %v11928_v9 = vld [vmem:[#allocation122_spill] sm:$0xff]  ;;  %vm11953_vm6 = vmmov %vm11947_vm14 }
 0x284   : > { %v2972_v37 = vsel %vm11923_vm7, %v11922_v61, %v11921_v0  ;;  %v3000_v36 = vsel %vm11925_vm8, %v2971_v28, -3.4028235e+38  ;;  %v3155_v17 = vmax.f32 %v11887_v42, %v8846_v1  ;;  %v3156_v31 = vmax.f32 %v11888_v52, %v8761_v20  ;;  %vm11954_vm7 = vmmov %vm11950_vm3 }
 0x285   : > { %v4045_v11 = vmax.f32 %v9142_v27, -3.4028235e+38  ;;  %v4076_v29 = vmax.f32 %v3948_v26, %v4044_v19  ;;  %v2807_v23 = vmax.f32 %v7947_v16, %v2775_v59  ;;  %v3031_v15 = vmax.f32 %v2903_v6, %v2972_v37  ;;  %v11929_v59 = vld [vmem:[#allocation103_spill] sm:$0xff] }
 0x286   : > { %v3032_v32 = vmax.f32 %v8538_v63, %v3000_v36  ;;  %v3187_v44 = vmax.f32 %v11816_v33, %v3155_v17  ;;  %v3188_v22 = vmax.f32 %v11817_v7, %v3156_v31  ;;  %v3442_v39 = vrot.slane %v9060_v14, 7  ;;  %v11933_v17 = vld [vmem:[#allocation115_spill] sm:$0xff] }
 0x287   : > { %v4077_v40 = vmax.f32 %v3949_v34, %v4045_v11  ;;  %v9165_v18 = vmax.f32 %v2807_v23, %v3031_v15  ;;  %v3698_v21 = vrot.slane %v9060_v14, 6  ;;  %v3918_v26 = vmax.f32 %v9112_v49, %v9027_v62  ;;  %v11935_v11 = vld [vmem:[#allocation65_spill] sm:$0xff]  ;;  %v11937_v23 = vld [vmem:[#allocation59_spill] sm:$0xff] }
 0x288   : > { %v9170_v57 = vmax.f32 %v2808_v12, %v3032_v32  ;;  %v3489_v4 = vsel %vm11926_vm4, %v3441_v60, %v3442_v39  ;;  %v3919_v63 = vmax.f32 %v9142_v27, %v9023_v41  ;;  %v4115_v28 = vpack.c.bf16 %v11928_v9, %v11927_v38  ;;  %vm11955_vm4 = vmmov %vm11951_vm0 }
 0x289   : > { %v4648_v19 = vpack.c.bf16 %v4077_v40, %v4076_v29  ;;  %v3283_v34 = vmax.f32 %v9165_v18, %v8756_v50  ;;  %vm11930_vm2 = vnez %v11929_v59  ;;  %v3745_v12 = vsel %vm11931_vm12, %v3697_v3, %v3698_v21  ;;  %v11934_v50 = vld [vmem:[#allocation118_spill] sm:$0xff] }
 0x28a   : > { %v3506_v6 = vsel %vm11930_vm2, %v3489_v4, -3.4028235e+38  ;;  %v3284_v0 = vmax.f32 %v9170_v57, %v8856_v25  ;;  %vm11932_vm5 = vnez %v11810_v35  ;;  %v3950_v61 = vmax.f32 %v9029_v2, %v3918_v26  ;;  %vm11956_vm2 = vmmov %vm11953_vm6 }
 0x28b   : > { %v3762_v60 = vsel %vm11932_vm5, %v3745_v12, -3.4028235e+38  ;;  %v9190_v37 = vmax.f32 %v9031_v54, %v3919_v63  ;;  %v3315_v36 = vmax.f32 %v3187_v44, %v3283_v34  ;;  %v4143_v31 = vpack.c.bf16 %v11934_v50, %v11933_v17  ;;  %v11943_v44 = vld [vmem:[#allocation77_spill] sm:$0xff] }
 0x28c   : > { %v11936_v29 = vrot.slane %v11935_v11, 1  ;;  %v11938_v15 = vrot.slane %v11937_v23, 1  ;;  %v11940_v25 = vrot.slane %v11937_v23, 7  ;;  %v11941_v35 = vrot.slane %v8225_v53, 7  ;;  %4741 = vmatmul.bf16.gmra.mxu0 %v4648_v19 }
 0x28d   : > { %v9206_v40 = vmax.f32 %v3188_v22, %v3284_v0  ;;  %vm11944_vm1 = vnez %v11943_v44  ;;  %v11945_v4 = vrot.slane %v11935_v11, 2  ;;  %v11946_v63 = vrot.slane %v11937_v23, 2 }
 0x28e   : > { %v2617_v3 = vsel %vm11939_vm13, %v11938_v15, %v11936_v29  ;;  %v2714_v32 = vsel %vm11942_vm11, %v11941_v35, %v11940_v25  ;;  %v11948_v9 = vrot.slane %v11937_v23, 6  ;;  %v11949_v34 = vrot.slane %v8225_v53, 6  ;;  %4409 = vmatmul.bf16.gmra.mxu2 %v4115_v28  ;;  %vm11963_vm11 = vmmov %vm11952_vm9 }
 0x28f   : > { %v2649_v26 = vsel %vm11944_vm1, %v2617_v3, -3.4028235e+38  ;;  %v2873_v38 = vsel %vm11947_vm14, %v11946_v63, %v11945_v4  ;;  %v3347_v12 = vrot.slane %v3315_v36, 1  ;;  %v3443_v22 = vrot.slane %v3315_v36, 7  ;;  %v11957_v63 = vld [vmem:[#allocation111_spill] sm:$0xff]  ;;  %4252 = vmatmul.bf16.gmra.mxu1 %v4143_v31 }
 0x290   : > { %v2970_v59 = vsel %vm11950_vm3, %v11949_v34, %v11948_v9  ;;  %v3603_v0 = vrot.slane %v3315_v36, 2  ;;  %v3699_v17 = vrot.slane %v3315_v36, 6  ;;  %v3348_v50 = vrot.slane %v9206_v40, 1  ;;  %v11959_v34 = vld [vmem:[#allocation112_spill] sm:$0xff] }
 0x291   : > { %v3604_v29 = vrot.slane %v9206_v40, 2  ;;  %v4449_v15 = vpack.c.bf16 %v3315_v36, %v9060_v14  ;;  %v2777_v3 = vmax.f32 %v2649_v26, %v2714_v32  ;;  %v3392_v25 = vsel %vm11951_vm0, %v3346_v47, %v3347_v12 }
 0x292   : > { %v3488_v35 = vsel %vm11952_vm9, %v3442_v39, %v3443_v22  ;;  %v3648_v19 = vsel %vm11953_vm6, %v3602_v51, %v3603_v0  ;;  %v3744_v4 = vsel %vm11954_vm7, %v3698_v21, %v3699_v17  ;;  %v3391_v32 = vsel %vm11955_vm4, %v3347_v12, %v3348_v50  ;;  %vm11974_vm9 = vmmov %vm11955_vm4 }
 0x293   : > { %v3538_v26 = vmax.f32 %v3392_v25, %v3506_v6  ;;  %v3647_v47 = vsel %vm11956_vm2, %v3603_v0, %v3604_v29  ;;  %v3794_v39 = vmax.f32 %v3648_v19, %v3762_v60  ;;  %vm11958_vm12 = vnez %v11957_v63  ;;  %4554 = vmatmul.bf16.gmra.mxu3 %v4449_v15  ;;  %vm11975_vm6 = vmmov %vm11955_vm4 }
 0x294   : > { %v3411_v9 = vsel %vm11958_vm12, %v3391_v32, -3.4028235e+38  ;;  %vm11960_vm5 = vnez %v11959_v34  ;;  %v2809_v21 = vmax.f32 %v11937_v23, %v2777_v3  ;;  %vm11962_vm13 = vnez %v11961_v5  ;;  %v11969_v34 = vld [vmem:[#allocation7_spill] sm:$0xff]  ;;  %vm11976_vm7 = vmmov %vm11963_vm11  ;;  %v12011_v5 = vld [vmem:[#allocation129_spill] sm:$0xff] }
 0x295   : > { %v3667_v51 = vsel %vm11960_vm5, %v3647_v47, -3.4028235e+38  ;;  %v2905_v55 = vsel %vm11962_vm13, %v2873_v38, -3.4028235e+38  ;;  %v3539_v43 = vmax.f32 %v3411_v9, %v3488_v35  ;;  %v3570_v6 = vmax.f32 %v9060_v14, %v3538_v26  ;;  %v11964_v35 = vld [vmem:[#allocation113_spill] sm:$0xff]  ;;  %v11968_v9 = vld [vmem:[#allocation3_spill] sm:$0xff]  ;;  %vm11977_vm4 = vmmov %vm11956_vm2 }
 0x296   : > { %v3795_v12 = vmax.f32 %v3667_v51, %v3744_v4  ;;  %v3444_v0 = vrot.slane %v9206_v40, 7  ;;  %v3033_v60 = vmax.f32 %v2905_v55, %v2970_v59  ;;  %v3157_v25 = vmax.f32 %v9165_v18, %v11816_v33  ;;  %vm11980_vm12 = vmmov %vm11977_vm4 }
 0x297   : > { %v3158_v19 = vmax.f32 %v9170_v57, %v11817_v7  ;;  %v3286_v3 = vmax.f32 %v8577_v56, %v8761_v20  ;;  %v3571_v32 = vmax.f32 %v3315_v36, %v3539_v43  ;;  %v9260_v38 = vmax.f32 %v3570_v6, %v3794_v39  ;;  %v11966_v39 = vld [vmem:[#allocation114_spill] sm:$0xff] }
 0x298   : > { %v3487_v14 = vsel %vm11963_vm11, %v3443_v22, %v3444_v0  ;;  %v3700_v28 = vrot.slane %v9206_v40, 6  ;;  %v9265_v31 = vmax.f32 %v2809_v21, %v3033_v60  ;;  %v3189_v55 = vmax.f32 %v11887_v42, %v3157_v25  ;;  %vm11983_vm11 = vmmov %vm11950_vm3 }
 0x299   : > { %v3190_v59 = vmax.f32 %v11888_v52, %v3158_v19  ;;  %vm11965_vm14 = vnez %v11964_v35  ;;  %v9271_v26 = vmax.f32 %v3571_v32, %v3795_v12  ;;  %v4046_v20 = vmax.f32 %v9260_v38, %v9035_v30 }
 0x29a   : > { %v3508_v4 = vsel %vm11965_vm14, %v3487_v14, -3.4028235e+38  ;;  %v3743_v43 = vsel %vm11950_vm3, %v3699_v17, %v3700_v28  ;;  %v3920_v36 = vmax.f32 %v9260_v38, %v9029_v2  ;;  %v3285_v22 = vmax.f32 %v9265_v31, %v8846_v1  ;;  %vm11987_vm14 = vmmov %vm11976_vm7 }
 0x29b   : > { %v9281_v47 = vmax.f32 %v3190_v59, %v3286_v3  ;;  %vm11967_vm0 = vnez %v11966_v39  ;;  %v4116_v51 = vpack.c.bf16 %v11969_v34, %v11968_v9  ;;  %v4047_v30 = vmax.f32 %v9271_v26, %v9021_v58  ;;  %v11970_v3 = vld [vmem:[#allocation131_spill] sm:$0xff]  ;;  %v11971_v58 = vld [vmem:[#allocation14_spill] sm:$0xff] }
 0x29c   : > { %v3764_v63 = vsel %vm11967_vm0, %v3743_v43, -3.4028235e+38  ;;  %v4078_v15 = vmax.f32 %v3950_v61, %v4046_v20  ;;  %v3921_v17 = vmax.f32 %v9271_v26, %v9031_v54  ;;  %v3952_v21 = vmax.f32 %v9112_v49, %v3920_v36  ;;  %v11972_v61 = vld [vmem:[#allocation98_spill] sm:$0xff] }
 0x29d   : > { %v3317_v6 = vmax.f32 %v3189_v55, %v3285_v22  ;;  %v3350_v1 = vrot.slane %v9281_v47, 1  ;;  %v3606_v12 = vrot.slane %v9281_v47, 2  ;;  %v4144_v60 = vpack.c.bf16 %v7947_v16, %v11908_v45 }
 0x29e   : > { %v4079_v25 = vmax.f32 %v9190_v37, %v4047_v30  ;;  %v3953_v19 = vmax.f32 %v9142_v27, %v3921_v17  ;;  %v11973_v32 = vmax.f32 %v11971_v58, %v11972_v61  ;;  %v3159_v55 = vmax.f32 %v9265_v31, %v11887_v42  ;;  %v11978_v30 = vld [vmem:[#allocation18_spill] sm:$0xff]  ;;  %4414 = vmatmul.bf16.gmra.mxu2 %v4116_v51 }
 0x29f   : > { %v3349_v59 = vrot.slane %v3317_v6, 1  ;;  %v3445_v35 = vrot.slane %v3317_v6, 7  ;;  %v3605_v20 = vrot.slane %v3317_v6, 2  ;;  %v3701_v43 = vrot.slane %v3317_v6, 6  ;;  %4257 = vmatmul.bf16.gmra.mxu1 %v4144_v60 }
 0x2a0   : > { %v9302_v14 = vmax.f32 %v11973_v32, %v11970_v3  ;;  %v4649_v36 = vpack.c.bf16 %v4079_v25, %v4078_v15  ;;  %v4450_v16 = vpack.c.bf16 %v3317_v6, %v9206_v40  ;;  %v3160_v45 = vmax.f32 %v8577_v56, %v11888_v52  ;;  %v11981_v3 = vld [vmem:[#allocation20_spill] sm:$0xff] }
 0x2a1   : > { %v3191_v37 = vmax.f32 %v9165_v18, %v3159_v55  ;;  %v3389_v22 = vsel %vm11974_vm9, %v3349_v59, %v3350_v1  ;;  %v3390_v39 = vsel %vm11975_vm6, %v3348_v50, %v3349_v59  ;;  %v3486_v9 = vsel %vm11976_vm7, %v3444_v0, %v3445_v35  ;;  %vm11990_vm9 = vmmov %vm11975_vm6 }
 0x2a2   : > { %v3645_v34 = vsel %vm11977_vm4, %v3605_v20, %v3606_v12  ;;  %4746 = vmatmul.bf16.gmra.mxu0 %v4649_v36  ;;  %vm11979_vm2 = vnez %v11978_v30  ;;  %v3540_v17 = vmax.f32 %v3390_v39, %v3508_v4  ;;  %v3646_v25 = vsel %vm11980_vm12, %v3604_v29, %v3605_v20  ;;  %v11986_v30 = vld [vmem:[#allocation40_spill] sm:$0xff]  ;;  %vm11994_vm12 = vmmov %vm11950_vm3 }
 0x2a3   : > { %v3413_v15 = vsel %vm11979_vm2, %v3389_v22, -3.4028235e+38  ;;  %vm11982_vm5 = vnez %v11981_v3  ;;  %v3742_v0 = vsel %vm11983_vm11, %v3700_v28, %v3701_v43  ;;  %v3796_v32 = vmax.f32 %v3646_v25, %v3764_v63  ;;  %v11984_v22 = vld [vmem:[#allocation11_spill] sm:$0xff]  ;;  %v11988_v3 = vld [vmem:[#allocation22_spill] sm:$0xff]  ;;  %4559 = vmatmul.bf16.gmra.mxu3 %v4450_v16  ;;  %vm11991_vm2 = vmmov %vm11977_vm4 }
 0x2a4   : > { %v3669_v50 = vsel %vm11982_vm5, %v3645_v34, -3.4028235e+38  ;;  %v3541_v61 = vmax.f32 %v3413_v15, %v3486_v9  ;;  %v3192_v55 = vmax.f32 %v9170_v57, %v3160_v45  ;;  %v3572_v59 = vmax.f32 %v9206_v40, %v3540_v17  ;;  %v11985_v34 = vld [vmem:[#allocation23_spill] sm:$0xff]  ;;  %vm12000_vm11 = vmmov %vm11950_vm3 }
 0x2a5   : > { %v3797_v36 = vmax.f32 %v3669_v50, %v3742_v0  ;;  %v3287_v4 = vmax.f32 %v9302_v14, %v11816_v33  ;;  %v3288_v39 = vmax.f32 %v11984_v22, %v11817_v7  ;;  %v3446_v20 = vrot.slane %v9281_v47, 7 }
 0x2a6   : > { %v3573_v29 = vmax.f32 %v3317_v6, %v3541_v61  ;;  %v3702_v9 = vrot.slane %v9281_v47, 6  ;;  %v4117_v28 = vpack.c.bf16 %v11986_v30, %v11985_v34  ;;  %v9342_v63 = vmax.f32 %v3572_v59, %v3796_v32 }
 0x2a7   : > { %v9344_v40 = vmax.f32 %v3191_v37, %v3287_v4  ;;  %v9346_v45 = vmax.f32 %v3192_v55, %v3288_v39  ;;  %v3485_v7 = vsel %vm11987_vm14, %v3445_v35, %v3446_v20  ;;  %v4145_v15 = vpack.c.bf16 %v11937_v23, %v8225_v53  ;;  %vm12001_vm14 = vmmov %vm11975_vm6 }
 0x2a8   : > { %v9348_v33 = vmax.f32 %v3573_v29, %v3797_v36  ;;  %v3741_v6 = vsel %vm11950_vm3, %v3701_v43, %v3702_v9  ;;  %v4048_v17 = vmax.f32 %v9342_v63, %v9027_v62  ;;  %vm11989_vm0 = vnez %v11988_v3  ;;  %v11992_v36 = vld [vmem:[#allocation24_spill] sm:$0xff]  ;;  %vm12002_vm3 = vmmov %vm11976_vm7 }
 0x2a9   : > { %v3351_v51 = vrot.slane %v9344_v40, 1  ;;  %v3352_v60 = vrot.slane %v9346_v45, 1  ;;  %v3447_v37 = vrot.slane %v9344_v40, 7  ;;  %v3510_v35 = vsel %vm11989_vm0, %v3485_v7, -3.4028235e+38  ;;  %vm12003_vm0 = vmmov %vm11991_vm2 }
 0x2aa   : > { %v4049_v25 = vmax.f32 %v9348_v33, %v9023_v41  ;;  %v3607_v43 = vrot.slane %v9344_v40, 2  ;;  %v3608_v50 = vrot.slane %v9346_v45, 2  ;;  %v4080_v53 = vmax.f32 %v3952_v21, %v4048_v17 }
 0x2ab   : > { %v3387_v62 = vsel %vm11990_vm9, %v3351_v51, %v3352_v60  ;;  %v3388_v23 = vsel %vm11975_vm6, %v3350_v1, %v3351_v51  ;;  %v3484_v41 = vsel %vm11976_vm7, %v3446_v20, %v3447_v37  ;;  %v3922_v39 = vmax.f32 %v9342_v63, %v9112_v49  ;;  %vm12005_vm9 = vmmov %vm12003_vm0 }
 0x2ac   : > { %v4081_v61 = vmax.f32 %v3953_v19, %v4049_v25  ;;  %v3415_v0 = vsel %vm11912_vm10, %v3387_v62, -3.4028235e+38  ;;  %v3542_v32 = vmax.f32 %v3388_v23, %v3510_v35  ;;  %v3643_v21 = vsel %vm11977_vm4, %v3607_v43, %v3608_v50  ;;  %v9403_v25 = vpop.f32.mrf.mxu2 }
 0x2ad   : > { %v3543_v16 = vmax.f32 %v3415_v0, %v3484_v41  ;;  %v3644_v55 = vsel %vm11991_vm2, %v3606_v12, %v3607_v43  ;;  %v3671_v1 = vsel %vm11920_vm15, %v3643_v21, -3.4028235e+38  ;;  %v3703_v19 = vrot.slane %v9344_v40, 6  ;;  %v11995_v43 = vld [vmem:[#allocation126_spill] sm:$0xff]  ;;  %vm11997_vm15 = vmmov %vm11976_vm7 }
 0x2ae   : > { %v4650_v59 = vpack.c.bf16 %v4081_v61, %v4080_v53  ;;  %v3574_v13 = vmax.f32 %v9281_v47, %v3542_v32  ;;  %vm11993_vm10 = vnez %v11992_v36  ;;  %v3923_v46 = vmax.f32 %v9348_v33, %v9142_v27  ;;  %4419 = vmatmul.bf16.gmra.mxu2 %v4117_v28 }
 0x2af   : > { %v3766_v4 = vsel %vm11993_vm10, %v3741_v6, -3.4028235e+38  ;;  %v3575_v29 = vmax.f32 %v9344_v40, %v3543_v16  ;;  %v3740_v20 = vsel %vm11994_vm12, %v3702_v9, %v3703_v19  ;;  %v3954_v17 = vmax.f32 %v9260_v38, %v3922_v39  ;;  %4262 = vmatmul.bf16.gmra.mxu1 %v4145_v15 }
 0x2b0   : > { %v3798_v12 = vmax.f32 %v3644_v55, %v3766_v4  ;;  %v3799_v7 = vmax.f32 %v3671_v1, %v3740_v20  ;;  %v4451_v51 = vpack.c.bf16 %v9344_v40, %v9281_v47  ;;  %v3161_v6 = vmax.f32 %v9302_v14, %v9165_v18  ;;  %v11996_v47 = vld [vmem:[#allocation127_spill] sm:$0xff] }
 0x2b1   : > { %v3955_v35 = vmax.f32 %v9271_v26, %v3923_v46  ;;  %v3162_v9 = vmax.f32 %v11984_v22, %v9170_v57  ;;  %v3289_v53 = vmax.f32 %v11995_v43, %v11887_v42  ;;  %v3290_v40 = vmax.f32 %v11996_v47, %v11888_v52  ;;  %v9449_v46 = vpop.f32.mrf.mxu1 }
 0x2b2   : > { %v9405_v3 = vmax.f32 %v3574_v13, %v3798_v12  ;;  %v9412_v62 = vmax.f32 %v3575_v29, %v3799_v7  ;;  %v3193_v23 = vmax.f32 %v9265_v31, %v3161_v6  ;;  %v3448_v41 = vrot.slane %v9346_v45, 7  ;;  %4751 = vmatmul.bf16.gmra.mxu0 %v4650_v59  ;;  %v11998_v59 = vld [vmem:[#allocation56_spill] sm:$0xff] }
 0x2b3   : > { %v3194_v0 = vmax.f32 %v8577_v56, %v3162_v9  ;;  %v3704_v32 = vrot.slane %v9346_v45, 6  ;;  %vm11999_vm5 = vnez %v11998_v59  ;;  %4564 = vmatmul.bf16.gmra.mxu3 %v4451_v51 }
 0x2b4   : > { %v4050_v61 = vmax.f32 %v9405_v3, %v9029_v2  ;;  %v3924_v42 = vmax.f32 %v9405_v3, %v9260_v38  ;;  %v4051_v21 = vmax.f32 %v9412_v62, %v9031_v54  ;;  %v9426_v16 = vmax.f32 %v3193_v23, %v3289_v53  ;;  %v9476_v53 = vpop.f32.mrf.mxu2 }
 0x2b5   : > { %v3483_v52 = vsel %vm11997_vm15, %v3447_v37, %v3448_v41  ;;  %v3925_v55 = vmax.f32 %v9412_v62, %v9271_v26  ;;  %v9432_v2 = vmax.f32 %v3194_v0, %v3290_v40  ;;  %v3739_v36 = vsel %vm12000_vm11, %v3703_v19, %v3704_v32  ;;  %v12007_v0 = vld [vmem:[#allocation36_spill] sm:$0xff] }
 0x2b6   : > { %v4082_v1 = vmax.f32 %v3954_v17, %v4050_v61  ;;  %v3512_v13 = vsel %vm11999_vm5, %v3483_v52, -3.4028235e+38  ;;  %v4083_v4 = vmax.f32 %v3955_v35, %v4051_v21  ;;  %v3353_v54 = vrot.slane %v9426_v16, 1  ;;  %v12009_v21 = vld [vmem:[#allocation95_spill] sm:$0xff]  ;;  %vm12027_vm5 = vmmov %vm12003_vm0 }
 0x2b7   : > { %v3449_v39 = vrot.slane %v9426_v16, 7  ;;  %v3609_v29 = vrot.slane %v9426_v16, 2  ;;  %v3354_v37 = vrot.slane %v9432_v2, 1  ;;  %v3610_v20 = vrot.slane %v9432_v2, 2 }
 0x2b8   : > { %v3705_v12 = vrot.slane %v9426_v16, 6  ;;  %v3768_v19 = vsel %vm11925_vm8, %v3739_v36, -3.4028235e+38  ;;  %v4651_v7 = vpack.c.bf16 %v4083_v4, %v4082_v1  ;;  %v3386_v17 = vsel %vm12001_vm14, %v3352_v60, %v3353_v54  ;;  %vm12004_vm8 = vmmov %vm11975_vm6  ;;  %v12013_v4 = vld [vmem:[#allocation128_spill] sm:$0xff] }
 0x2b9   : > { %v3482_v34 = vsel %vm12002_vm3, %v3448_v41, %v3449_v39  ;;  %v3642_v30 = vsel %vm12003_vm0, %v3608_v50, %v3609_v29  ;;  %v3385_v24 = vsel %vm12004_vm8, %v3353_v54, %v3354_v37  ;;  %v3544_v28 = vmax.f32 %v3386_v17, %v3512_v13  ;;  %vm12006_vm6 = vmmov %vm12000_vm11 }
 0x2ba   : > { %v3641_v15 = vsel %vm12005_vm9, %v3609_v29, %v3610_v20  ;;  %v3738_v60 = vsel %vm12006_vm6, %v3704_v32, %v3705_v12  ;;  %v3417_v6 = vsel %vm11944_vm1, %v3385_v24, -3.4028235e+38  ;;  %v3800_v35 = vmax.f32 %v3642_v30, %v3768_v19  ;;  %v12008_v32 = vld [vmem:[#allocation54_spill] sm:$0xff]  ;;  %v12014_v24 = vld [vmem:[#allocation4_spill] sm:$0xff]  ;;  %vm12016_vm1 = vmmov %vm12002_vm3 }
 0x2bb   : > { %v3673_v50 = vsel %vm11962_vm13, %v3641_v15, -3.4028235e+38  ;;  %v3956_v9 = vmax.f32 %v9342_v63, %v3924_v42  ;;  %v3545_v23 = vmax.f32 %v3417_v6, %v3482_v34  ;;  %v3576_v40 = vmax.f32 %v9346_v45, %v3544_v28  ;;  %v12015_v28 = vld [vmem:[#allocation10_spill] sm:$0xff]  ;;  %vm12019_vm7 = vmmov %vm12006_vm6 }
 0x2bc   : > { %v3801_v41 = vmax.f32 %v3673_v50, %v3738_v60  ;;  %v3957_v61 = vmax.f32 %v9348_v33, %v3925_v55  ;;  %v12010_v44 = vmax.f32 %v12008_v32, %v12009_v21  ;;  %v3166_v1 = vmax.f32 %v12011_v5, %v11984_v22  ;;  %v9523_v50 = vpop.f32.mrf.mxu1  ;;  %vm12022_vm2 = vmmov %vm12004_vm8 }
 0x2bd   : > { %v3577_v42 = vmax.f32 %v9426_v16, %v3545_v23  ;;  %v9489_v59 = vmax.f32 %v3576_v40, %v3800_v35  ;;  %v4452_v51 = vpack.c.bf16 %v9426_v16, %v9346_v45  ;;  %v3163_v13 = vmax.f32 %v11995_v43, %v9265_v31  ;;  %v12017_v40 = vld [vmem:[#allocation83_spill] sm:$0xff]  ;;  %vm12023_vm10 = vmmov %vm12022_vm2 }
 0x2be   : > { %v9484_v52 = vmax.f32 %v12010_v44, %v12007_v0  ;;  %v12012_v55 = vmax.f32 %v11996_v47, %v8577_v56  ;;  %v3291_v54 = vmax.f32 %v12013_v4, %v9165_v18  ;;  %v3292_v29 = vmax.f32 %v12011_v5, %v9170_v57  ;;  %v12020_v44 = vld [vmem:[#allocation85_spill] sm:$0xff]  ;;  %vm12024_vm12 = vmmov %vm12016_vm1 }
 0x2bf   : > { %v3450_v19 = vrot.slane %v9432_v2, 7  ;;  %v9504_v17 = vmax.f32 %v3577_v42, %v3801_v41  ;;  %v4052_v45 = vmax.f32 %v9489_v59, %v9112_v49  ;;  %v3195_v16 = vmax.f32 %v9302_v14, %v3163_v13  ;;  %vm12028_vm11 = vmmov %vm12003_vm0 }
 0x2c0   : > { %v3196_v36 = vmax.f32 %v11984_v22, %v12012_v55  ;;  %v3706_v34 = vrot.slane %v9432_v2, 6  ;;  %v3198_v30 = vmax.f32 %v11996_v47, %v3166_v1  ;;  %v4118_v15 = vpack.c.bf16 %v12015_v28, %v12014_v24  ;;  %v12029_v28 = vld [vmem:[#allocation109_spill] sm:$0xff]  ;;  %vm12031_vm3 = vmmov %vm12006_vm6 }
 0x2c1   : > { %v3481_v57 = vsel %vm12016_vm1, %v3449_v39, %v3450_v19  ;;  %v4053_v60 = vmax.f32 %v9504_v17, %v9142_v27  ;;  %v9519_v6 = vmax.f32 %v3956_v9, %v4052_v45  ;;  %v4146_v49 = vpack.c.bf16 %v11971_v58, %v11935_v11  ;;  %vm12035_vm0 = vmmov %vm12016_vm1 }
 0x2c2   : > { %v9513_v18 = vmax.f32 %v3196_v36, %v3292_v29  ;;  %v9525_v35 = vmax.f32 %v3195_v16, %v3291_v54  ;;  %vm12018_vm13 = vnez %v12017_v40  ;;  %v3737_v39 = vsel %vm12019_vm7, %v3705_v12, %v3706_v34  ;;  %4756 = vmatmul.bf16.gmra.mxu0 %v4651_v7  ;;  %v9545_v7 = vpop.f32.mrf.mxu2  ;;  %v12025_v54 = vld [vmem:[#allocation106_spill] sm:$0xff]  ;;  %4424 = vmatmul.bf16.gmra.mxu2 %v4118_v15  ;;  %vm12036_vm8 = vmmov %vm12031_vm3 }
 0x2c3   : > { %v3514_v41 = vsel %vm12018_vm13, %v3481_v57, -3.4028235e+38  ;;  %v9533_v27 = vmax.f32 %v3957_v61, %v4053_v60  ;;  %vm12021_vm4 = vnez %v12020_v44  ;;  %v3926_v42 = vmax.f32 %v9489_v59, %v9342_v63  ;;  %4267 = vmatmul.bf16.gmra.mxu1 %v4146_v49  ;;  %4569 = vmatmul.bf16.gmra.mxu3 %v4452_v51  ;;  %vm12041_vm1 = vmmov %vm12022_vm2 }
 0x2c4   : > { %v3356_v23 = vrot.slane %v9513_v18, 1  ;;  %v3612_v0 = vrot.slane %v9513_v18, 2  ;;  %v3355_v9 = vrot.slane %v9525_v35, 1  ;;  %v3451_v11 = vrot.slane %v9525_v35, 7  ;;  %vm12042_vm13 = vmmov %vm12041_vm1 }
 0x2c5   : > { %v3611_v58 = vrot.slane %v9525_v35, 2  ;;  %v3707_v21 = vrot.slane %v9525_v35, 6  ;;  %v3770_v1 = vsel %vm12021_vm4, %v3737_v39, -3.4028235e+38  ;;  %v3927_v12 = vmax.f32 %v9504_v17, %v9348_v33  ;;  %v12032_v39 = vld [vmem:[#allocation19_spill] sm:$0xff]  ;;  %vm12043_vm7 = vmmov %vm12035_vm0 }
 0x2c6   : > { %v4652_v61 = vpack.c.bf16 %v9533_v27, %v9519_v6  ;;  %v3383_v13 = vsel %vm12022_vm2, %v3355_v9, %v3356_v23  ;;  %v3384_v55 = vsel %vm12023_vm10, %v3354_v37, %v3355_v9  ;;  %v3480_v36 = vsel %vm12024_vm12, %v3450_v19, %v3451_v11  ;;  %v12033_v27 = vld [vmem:[#allocation38_spill] sm:$0xff]  ;;  %vm12046_vm2 = vmmov %vm12027_vm5 }
 0x2c7   : > { %vm12026_vm15 = vnez %v12025_v54  ;;  %v3546_v45 = vmax.f32 %v3384_v55, %v3514_v41  ;;  %v3639_v16 = vsel %vm12027_vm5, %v3611_v58, %v3612_v0  ;;  %v3640_v24 = vsel %vm12028_vm11, %v3610_v20, %v3611_v58  ;;  %v12034_v58 = vld [vmem:[#allocation130_spill] sm:$0xff]  ;;  %vm12047_vm10 = vmmov %vm12046_vm2 }
 0x2c8   : > { %v3419_v29 = vsel %vm12026_vm15, %v3383_v13, -3.4028235e+38  ;;  %vm12030_vm14 = vnez %v12029_v28  ;;  %v3736_v57 = vsel %vm12031_vm3, %v3706_v34, %v3707_v21  ;;  %v3802_v60 = vmax.f32 %v3640_v24, %v3770_v1  ;;  %v12037_v24 = vld [vmem:[#allocation110_spill] sm:$0xff]  ;;  %vm12050_vm15 = vmmov %vm12031_vm3 }
 0x2c9   : > { %v3547_v37 = vmax.f32 %v3419_v29, %v3480_v36  ;;  %v3675_v19 = vsel %vm12030_vm14, %v3639_v16, -3.4028235e+38  ;;  %v3578_v6 = vmax.f32 %v9432_v2, %v3546_v45  ;;  %v3958_v41 = vmax.f32 %v9405_v3, %v3926_v42  ;;  %vm12059_vm5 = vmmov %vm12035_vm0 }
 0x2ca   : > { %v3803_v40 = vmax.f32 %v3675_v19, %v3736_v57  ;;  %v4147_v9 = vpack.c.bf16 %v12033_v27, %v12032_v39  ;;  %v4453_v15 = vpack.c.bf16 %v9525_v35, %v9432_v2  ;;  %v3165_v49 = vmax.f32 %v12013_v4, %v9302_v14  ;;  %vm12063_vm11 = vmmov %vm12041_vm1 }
 0x2cb   : > { %v3579_v20 = vmax.f32 %v9525_v35, %v3547_v37  ;;  %v3293_v34 = vmax.f32 %v12034_v58, %v9265_v31  ;;  %v9584_v44 = vmax.f32 %v3578_v6, %v3802_v60  ;;  %v3294_v1 = vmax.f32 %v9484_v52, %v8577_v56  ;;  %v9593_v35 = vpop.f32.mrf.mxu1  ;;  %vm12066_vm14 = vmmov %vm12046_vm2 }
 0x2cc   : > { %v3452_v42 = vrot.slane %v9513_v18, 7  ;;  %v3708_v13 = vrot.slane %v9513_v18, 6  ;;  %v3959_v2 = vmax.f32 %v9412_v62, %v3927_v12  ;;  %v3197_v36 = vmax.f32 %v11995_v43, %v3165_v49  ;;  %v12044_v49 = vld [vmem:[#allocation121_spill] sm:$0xff] }
 0x2cd   : > { %v9590_v55 = vmax.f32 %v3579_v20, %v3803_v40  ;;  %v4054_v31 = vmax.f32 %v9584_v44, %v9260_v38  ;;  %v9598_v54 = vmax.f32 %v3198_v30, %v3294_v1  ;;  %vm12038_vm9 = vnez %v12037_v24  ;;  %v9612_v30 = vpop.f32.mrf.mxu2  ;;  %v12051_v24 = vld [vmem:[#allocation27_spill] sm:$0xff] }
 0x2ce   : > { %v3479_v56 = vsel %vm12035_vm0, %v3451_v11, %v3452_v42  ;;  %v9604_v51 = vmax.f32 %v3197_v36, %v3293_v34  ;;  %v3735_v12 = vsel %vm12036_vm8, %v3707_v21, %v3708_v13  ;;  %v12039_v21 = vld [vmem:[#allocation2_spill] sm:$0xff]  ;;  %v3928_v6 = vmax.f32 %v9584_v44, %v9405_v3  ;;  %vm12076_vm8 = vmmov %vm12041_vm1 }
 0x2cf   : > { %v4055_v29 = vmax.f32 %v9590_v55, %v9271_v26  ;;  %v4086_v45 = vmax.f32 %v3958_v41, %v4054_v31  ;;  %v10978_v16 = vrot.slane %v9598_v54, 1  ;;  %v3516_v37 = vsel %vm12038_vm9, %v3479_v56, -3.4028235e+38  ;;  %v12048_v31 = vld [vmem:[#allocation123_spill] sm:$0xff] }
 0x2d0   : > { %v10976_v38 = vrot.slane %v9598_v54, 2  ;;  %v3357_v11 = vrot.slane %v9604_v51, 1  ;;  %v10977_v26 = vrot.slane %v9604_v51, 7  ;;  %v3613_v19 = vrot.slane %v9604_v51, 2 }
 0x2d1   : > { %v4087_v28 = vmax.f32 %v3959_v2, %v4055_v29  ;;  %v10975_v57 = vrot.slane %v9604_v51, 6  ;;  %vm12040_vm6 = vnez %v12039_v21  ;;  %v3929_v40 = vmax.f32 %v9590_v55, %v9412_v62 }
 0x2d2   : > { %v3772_v60 = vsel %vm12040_vm6, %v3735_v12, -3.4028235e+38  ;;  %v3381_v39 = vsel %vm12041_vm1, %v3357_v11, %v10978_v16  ;;  %v3382_v27 = vsel %vm12042_vm13, %v3356_v23, %v3357_v11  ;;  %v3478_v20 = vsel %vm12043_vm7, %v3452_v42, %v10977_v26  ;;  %4761 = vmatmul.bf16.gmra.mxu0 %v4652_v61  ;;  %v12053_v61 = vld [vmem:[#allocation52_spill] sm:$0xff]  ;;  %vm12081_vm6 = vmmov %vm12046_vm2 }
 0x2d3   : > { %v4653_v41 = vpack.c.bf16 %v4087_v28, %v4086_v45  ;;  %vm12045_vm4 = vnez %v12044_v49  ;;  %v3548_v1 = vmax.f32 %v3382_v27, %v3516_v37  ;;  %v3637_v2 = vsel %vm12046_vm2, %v3613_v19, %v10976_v38  ;;  %v12052_v37 = vld [vmem:[#allocation46_spill] sm:$0xff]  ;;  %v4235_v11 = vpop.f32.mrf.mxu1  ;;  %4272 = vmatmul.bf16.gmra.mxu1 %v4147_v9  ;;  %4574 = vmatmul.bf16.gmra.mxu3 %v4453_v15  ;;  %vm12087_vm1 = vmmov %vm12059_vm5 }
 0x2d4   : > { %v3421_v34 = vsel %vm12045_vm4, %v3381_v39, -3.4028235e+38  ;;  %v3638_v36 = vsel %vm12047_vm10, %v3612_v0, %v3613_v19  ;;  %vm12049_vm12 = vnez %v12048_v31  ;;  %v3734_v42 = vsel %vm12050_vm15, %v3708_v13, %v10975_v57  ;;  %v12054_v19 = vld [vmem:[#allocation70_spill] sm:$0xff]  ;;  %vm12090_vm13 = vmmov %vm12050_vm15 }
 0x2d5   : > { %v3549_v23 = vmax.f32 %v3421_v34, %v3478_v20  ;;  %v3677_v56 = vsel %vm12049_vm12, %v3637_v2, -3.4028235e+38  ;;  %v3804_v29 = vmax.f32 %v3638_v36, %v3772_v60  ;;  %v3580_v12 = vmax.f32 %v9513_v18, %v3548_v1  ;;  %v4375_v49 = vpop.f32.mrf.mxu2  ;;  %v12055_v36 = vld [vmem:[#allocation97_spill] sm:$0xff]  ;;  %vm12103_vm4 = vmmov %vm12076_vm8 }
 0x2d6   : > { %v3805_v45 = vmax.f32 %v3677_v56, %v3734_v42  ;;  %v4119_v28 = vpack.c.bf16 %v12052_v37, %v12051_v24  ;;  %v4148_v21 = vpack.c.bf16 %v12054_v19, %v12053_v61  ;;  %v3960_v27 = vmax.f32 %v9489_v59, %v3928_v6  ;;  %v12067_v24 = vld [vmem:[#allocation80_spill] sm:$0xff]  ;;  %v4535_v19 = vpop.f32.mrf.mxu3  ;;  %vm12106_vm2 = vmmov %vm12103_vm4 }
 0x2d7   : > { %v3581_v0 = vmax.f32 %v9604_v51, %v3549_v23  ;;  %v9658_v39 = vmax.f32 %v3580_v12, %v3804_v29  ;;  %v3961_v60 = vmax.f32 %v9504_v17, %v3929_v40  ;;  %v12056_v6 = vrot.slane %v12055_v36, 7  ;;  %v12057_v23 = vld [vmem:[#allocation93_spill] sm:$0xff]  ;;  %vm12109_vm12 = vmmov %vm12087_vm1 }
 0x2d8   : > { %4429 = vmatmul.bf16.gmra.mxu2 %v4119_v28  ;;  %v12058_v9 = vrot.slane %v12057_v23, 7  ;;  %v12062_v42 = vrot.slane %v12055_v36, 1  ;;  %v12065_v29 = vrot.slane %v12055_v36, 2  ;;  %vm12068_vm3 = vnez %v12067_v24  ;;  %v12069_v28 = vld [vmem:[#allocation87_spill] sm:$0xff]  ;;  %vm12111_vm15 = vmmov %vm12087_vm1 }
 0x2d9   : > { %v9661_v13 = vmax.f32 %v3581_v0, %v3805_v45  ;;  %v4056_v20 = vmax.f32 %v9658_v39, %v9342_v63  ;;  %v12060_v63 = vld [vmem:[#allocation105_spill] sm:$0xff] }
 0x2da   : > { %v2699_v31 = vsel %vm12059_vm5, %v12058_v9, %v12056_v6  ;;  %v12061_v56 = vrot.slane %v12060_v63, 1  ;;  %v12064_v15 = vrot.slane %v12060_v63, 2  ;;  %v12070_v0 = vld [vmem:[#allocation81_spill] sm:$0xff] }
 0x2db   : > { %v4057_v34 = vmax.f32 %v9661_v13, %v9348_v33  ;;  %v9668_v1 = vmax.f32 %v3960_v27, %v4056_v20  ;;  %v4238_v45 = vpop.f32.mrf.mxu1  ;;  %v2760_v37 = vsel %vm12068_vm3, %v2699_v31, -3.4028235e+38  ;;  %vm12071_vm0 = vnez %v12070_v0  ;;  %v12072_v20 = vld [vmem:[#allocation90_spill] sm:$0xff]  ;;  %v12074_v6 = vld [vmem:[#allocation89_spill] sm:$0xff]  ;;  %v12077_v31 = vld [vmem:[#allocation28_spill] sm:$0xff] }
 0x2dc   : > { %v2602_v33 = vsel %vm12063_vm11, %v12062_v42, %v12061_v56  ;;  %v2858_v12 = vsel %vm12066_vm14, %v12065_v29, %v12064_v15  ;;  %v3016_v61 = vsel %vm12071_vm0, %v12069_v28, -3.4028235e+38  ;;  %v12075_v9 = vrot.slane %v12074_v6, 1  ;;  %v12094_v63 = vld [vmem:[#allocation33_spill] sm:$0xff]  ;;  %vm12114_vm11 = vmmov %vm12081_vm6 }
 0x2dd   : > { %v9670_v2 = vmax.f32 %v3961_v60, %v4057_v34  ;;  %v2792_v27 = vmax.f32 %v2602_v33, %v2760_v37  ;;  %v3048_v60 = vmax.f32 %v2858_v12, %v3016_v61  ;;  %v12073_v34 = vrot.slane %v12072_v20, 1  ;;  %v4377_v15 = vpop.f32.mrf.mxu2  ;;  %v12082_v37 = vld [vmem:[#allocation58_spill] sm:$0xff]  ;;  %v12083_v61 = vld [vmem:[#allocation69_spill] sm:$0xff]  ;;  %vm12116_vm14 = vmmov %vm12081_vm6 }
 0x2de   : > { %vm12078_vm9 = vnez %v12077_v31  ;;  %v12079_v28 = vrot.slane %v12072_v20, 2  ;;  %v12080_v33 = vrot.slane %v12074_v6, 2  ;;  %v4120_v38 = vpack.c.bf16 %v12083_v61, %v12082_v37  ;;  %v12093_v37 = vld [vmem:[#allocation99_spill] sm:$0xff]  ;;  %v12096_v20 = vld [vmem:[#allocation108_spill] sm:$0xff] }
 0x2df   : > { %v2607_v56 = vsel %vm12076_vm8, %v12075_v9, %v12073_v34  ;;  %v2824_v42 = vmax.f32 %v12055_v36, %v2792_v27  ;;  %v12084_v34 = vld [vmem:[#allocation101_spill] sm:$0xff]  ;;  %v12085_v27 = vrot.slane %v12074_v6, 7  ;;  %vm12095_vm7 = vnez %v12094_v63 }
 0x2e0   : > { %v2659_v57 = vsel %vm12078_vm9, %v2607_v56, -3.4028235e+38  ;;  %v2863_v12 = vsel %vm12081_vm6, %v12080_v33, %v12079_v28  ;;  %v3176_v9 = vmax.f32 %v12084_v34, -3.4028235e+38  ;;  %v12088_v56 = vrot.slane %v12074_v6, 6  ;;  %v12091_v28 = vld [vmem:[#allocation78_spill] sm:$0xff]  ;;  %vm12119_vm6 = vmmov %vm12090_vm13 }
 0x2e1   : > { %v9704_v29 = vmax.f32 %v2824_v42, %v3048_v60  ;;  %v12089_v42 = vrot.slane %v12008_v32, 6  ;;  %v12092_v33 = vld [vmem:[#allocation37_spill] sm:$0xff]  ;;  %v2915_v36 = vsel %vm12095_vm7, %v2863_v12, -3.4028235e+38  ;;  %v3304_v23 = vmax.f32 %v12093_v37, -3.4028235e+38 }
 0x2e2   : > { %4766 = vmatmul.bf16.gmra.mxu0 %v4653_v41  ;;  %v12086_v41 = vrot.slane %v12008_v32, 7 }
 0x2e3   : > { %v2960_v26 = vsel %vm12090_vm13, %v12089_v42, %v12088_v56  ;;  %v3174_v61 = vmax.f32 %v9704_v29, %v12093_v37  ;;  %4277 = vmatmul.bf16.gmra.mxu1 %v4148_v21  ;;  %v12097_v56 = vld [vmem:[#allocation116_spill] sm:$0xff]  ;;  %v4240_v31 = vpop.f32.mrf.mxu1  ;;  %v4537_v21 = vpop.f32.mrf.mxu3 }
 0x2e4   : > { %v2704_v60 = vsel %vm12087_vm1, %v12086_v41, %v12085_v27  ;;  %v3208_v41 = vmax.f32 %v9704_v29, %v3176_v9  ;;  %v3175_v42 = vmax.f32 %v12097_v56, %v12096_v20  ;;  %v3043_v0 = vmax.f32 %v2915_v36, %v2960_v26  ;;  %vm12121_vm1 = vmmov %vm12119_vm6 }
 0x2e5   : > { %v2787_v40 = vmax.f32 %v2659_v57, %v2704_v60  ;;  %v3206_v27 = vmax.f32 %v12084_v34, %v3174_v61  ;;  %v3298_v57 = vmax.f32 %v12084_v34, %v11996_v47  ;;  %v4366_v9 = vadd.f32 %v9403_v25, %v9449_v46  ;;  %v9766_v25 = vpop.f32.mrf.mxu2 }
 0x2e6   : > { %v9745_v12 = vmax.f32 %v3208_v41, %v3304_v23  ;;  %v4368_v60 = vadd.f32 %v9476_v53, %v9523_v50  ;;  %v9753_v61 = vadd.f32 %v9545_v7, %v9593_v35  ;;  %v9758_v36 = vadd.f32 %v9612_v30, %v4235_v11  ;;  %v12099_v23 = vld [vmem:[#allocation71_spill] sm:$0xff]  ;;  %v12100_v41 = vld [vmem:[#allocation82_spill] sm:$0xff]  ;;  %v12101_v50 = vld [vmem:[#allocation13_spill] sm:$0xff] }
 0x2e7   : > { %v2819_v16 = vmax.f32 %v12074_v6, %v2787_v40  ;;  %v9760_v40 = vadd.f32 %v4375_v49, %v4238_v45  ;;  %v4121_v63 = vpack.c.bf16 %v12100_v41, %v12099_v23  ;;  %v9768_v46 = vadd.f32 %v4535_v19, %v4366_v9 }
 0x2e8   : > { %4434 = vmatmul.bf16.gmra.mxu2 %v4120_v38  ;;  %v3168_v38 = vmax.f32 %v9484_v52, %v11996_v47  ;;  %12098 = vst [vmem:[#allocation63_spill] sm:$0xff] %v9745_v12  ;;  %v9762_v47 = vadd.f32 %v4377_v15, %v4240_v31  ;;  %v9770_v53 = vadd.f32 %v4537_v21, %v4368_v60  ;;  %v10982_v35 = vrot.slane %v9745_v12, 1 }
 0x2e9   : > { %v9755_v26 = vmax.f32 %v2819_v16, %v3043_v0  ;;  %v9773_v7 = vmax.f32 %v12101_v50, %v3175_v42  ;;  %v3172_v16 = vmax.f32 %v12084_v34, %v9484_v52  ;;  %v10983_v11 = vrot.slane %v8910_v10, 1 }
 0x2ea   : > { %v3167_v45 = vmax.f32 %v12034_v58, %v11995_v43  ;;  %v3297_v0 = vmax.f32 %v12096_v20, %v11995_v43  ;;  %v3171_v19 = vmax.f32 %v12096_v20, %v12034_v58  ;;  %v3302_v15 = vmax.f32 %v9484_v52, -3.4028235e+38 }
 0x2eb   : > { %v3295_v31 = vmax.f32 %v9755_v26, %v9302_v14  ;;  %v3296_v34 = vmax.f32 %v12093_v37, %v11984_v22  ;;  %v3169_v42 = vmax.f32 %v9755_v26, %v12013_v4  ;;  %v3170_v21 = vmax.f32 %v12093_v37, %v12011_v5 }
 0x2ec   : > { %v3199_v9 = vmax.f32 %v12013_v4, %v3167_v45  ;;  %v3200_v43 = vmax.f32 %v12011_v5, %v3168_v38  ;;  %v3203_v60 = vmax.f32 %v9755_v26, %v3171_v19  ;;  %v3204_v23 = vmax.f32 %v12093_v37, %v3172_v16 }
 0x2ed   : > { %v3201_v41 = vmax.f32 %v12034_v58, %v3169_v42  ;;  %v3202_v14 = vmax.f32 %v9484_v52, %v3170_v21  ;;  %v3299_v22 = vmax.f32 %v12101_v50, %v12013_v4  ;;  %v3300_v49 = vmax.f32 %v9704_v29, %v12011_v5 }
 0x2ee   : > { %v12102_v30 = vpack.c.bf16 %v9670_v2, %v9668_v1  ;;  %v9810_v45 = vmax.f32 %v3199_v9, %v3295_v31  ;;  %v9812_v38 = vmax.f32 %v3200_v43, %v3296_v34  ;;  %v9815_v16 = vmax.f32 %v3206_v27, %v3302_v15  ;;  %v9834_v15 = vpop.f32.mrf.mxu2 }
 0x2ef   : > { %v9817_v19 = vmax.f32 %v3201_v41, %v3297_v0  ;;  %v9819_v52 = vmax.f32 %v3202_v14, %v3298_v57  ;;  %v9821_v4 = vmax.f32 %v3203_v60, %v3299_v22  ;;  %v9823_v42 = vmax.f32 %v3204_v23, %v3300_v49  ;;  %v12107_v60 = vld [vmem:[#allocation25_spill] sm:$0xff]  ;;  %v12112_v41 = vld [vmem:[#allocation124_spill] sm:$0xff] }
 0x2f0   : > { %v3359_v5 = vrot.slane %v9810_v45, 1  ;;  %v3360_v1 = vrot.slane %v9812_v38, 1  ;;  %v3455_v2 = vrot.slane %v9810_v45, 7  ;;  %v3615_v29 = vrot.slane %v9810_v45, 2 }
 0x2f1   : > { %v4454_v27 = vpack.c.bf16 %v9604_v51, %v9513_v18  ;;  %v3616_v57 = vrot.slane %v9812_v38, 2  ;;  %v3710_v0 = vrot.slane %v9598_v54, 6  ;;  %v3711_v31 = vrot.slane %v9810_v45, 6 }
 0x2f2   : > { %4771 = vmatmul.bf16.gmra.mxu0 %v12102_v30  ;;  %v3454_v30 = vrot.slane %v9598_v54, 7  ;;  %v3379_v49 = vsel %vm12103_vm4, %v3359_v5, %v3360_v1  ;;  %v12104_v34 = vpack.c.bf16 %v12092_v33, %v12091_v28  ;;  %v3361_v21 = vrot.slane %v9817_v19, 1  ;;  %vm12124_vm4 = vmmov %vm12106_vm2 }
 0x2f3   : > { %4579 = vmatmul.bf16.gmra.mxu3 %v4454_v27  ;;  %v12105_v9 = vrot.slane %v9598_v54, 1  ;;  %vm12108_vm10 = vnez %v12107_v60  ;;  %v12110_v28 = vrot.slane %v9604_v51, 7  ;;  %vm12113_vm5 = vnez %v12112_v41 }
 0x2f4   : > { %4282 = vmatmul.bf16.gmra.mxu1 %v12104_v34  ;;  %v3423_v23 = vsel %vm12108_vm10, %v3379_v49, -3.4028235e+38  ;;  %v3635_v27 = vsel %vm12114_vm11, %v3615_v29, %v3616_v57  ;;  %vm12126_vm10 = vmmov %vm12106_vm2 }
 0x2f5   : > { %v3380_v43 = vsel %vm12106_vm2, %v12105_v9, %v3359_v5  ;;  %v3477_v33 = vsel %vm12111_vm15, %v12110_v28, %v3454_v30  ;;  %v12115_v5 = vrot.slane %v9598_v54, 2  ;;  %v12117_v9 = vld [vmem:[#allocation26_spill] sm:$0xff]  ;;  %v12120_v28 = vrot.slane %v9604_v51, 6 }
 0x2f6   : > { %v3518_v14 = vsel %vm12113_vm5, %v3477_v33, -3.4028235e+38  ;;  %vm12118_vm8 = vnez %v12117_v9  ;;  %v12122_v33 = vld [vmem:[#allocation125_spill] sm:$0xff]  ;;  %v9889_v51 = vsel %vm12124_vm4, %v10982_v35, %v10983_v11  ;;  %v9894_v9 = vpop.f32.mrf.mxu3  ;;  %vm12129_vm5 = vmmov %vm12111_vm15 }
 0x2f7   : > { %v3636_v49 = vsel %vm12116_vm14, %v12115_v5, %v3615_v29  ;;  %v3550_v34 = vmax.f32 %v3380_v43, %v3518_v14  ;;  %v3679_v60 = vsel %vm12118_vm8, %v3635_v27, -3.4028235e+38  ;;  %vm12123_vm13 = vnez %v12122_v33  ;;  %vm12132_vm8 = vmmov %vm12116_vm14 }
 0x2f8   : > { %4439 = vmatmul.bf16.gmra.mxu2 %v4121_v63  ;;  %v3476_v63 = vsel %vm12109_vm12, %v3454_v30, %v3455_v2  ;;  %v3732_v30 = vsel %vm12119_vm6, %v3710_v0, %v3711_v31  ;;  %v3930_v43 = vmax.f32 %v9658_v39, %v9489_v59  ;;  %v3931_v5 = vmax.f32 %v9661_v13, %v9504_v17  ;;  %vm12135_vm6 = vmmov %vm12129_vm5 }
 0x2f9   : > { %v3551_v22 = vmax.f32 %v3423_v23, %v3476_v63  ;;  %v3733_v23 = vsel %vm12121_vm1, %v12120_v28, %v3710_v0  ;;  %v3807_v29 = vmax.f32 %v3679_v60, %v3732_v30  ;;  %v3582_v14 = vmax.f32 %v9598_v54, %v3550_v34  ;;  %v9896_v60 = vpop.f32.mrf.mxu1 }
 0x2fa   : > { %v3774_v41 = vsel %vm12123_vm13, %v3733_v23, -3.4028235e+38  ;;  %v12125_v34 = vmax.f32 %v12101_v50, %v9755_v26  ;;  %v3963_v23 = vmax.f32 %v9590_v55, %v3931_v5  ;;  %v3456_v33 = vrot.slane %v9812_v38, 7 }
 0x2fb   : > { %v3583_v63 = vmax.f32 %v9810_v45, %v3551_v22  ;;  %v3806_v27 = vmax.f32 %v3636_v49, %v3774_v41  ;;  %v3962_v22 = vmax.f32 %v9584_v44, %v3930_v43  ;;  %v10984_v49 = vrot.slane %v9819_v52, 1  ;;  %v9912_v41 = vld [vmem:[%s10551_s4] ss:$0 sm:$0xff] }
 0x2fc   : > { %v3205_v30 = vmax.f32 %v12096_v20, %v12125_v34  ;;  %v10987_v50 = vrot.slane %v9817_v19, 7  ;;  %v3617_v43 = vrot.slane %v9817_v19, 2  ;;  %v3475_v34 = vsel %vm12111_vm15, %v3455_v2, %v3456_v33  ;;  %vm12148_vm15 = vmmov %vm12126_vm10 }
 0x2fd   : > { %v9891_v0 = vmax.f32 %v3583_v63, %v3807_v29  ;;  %v9903_v28 = vmax.f32 %v3582_v14, %v3806_v27  ;;  %v3378_v63 = vsel %vm12106_vm2, %v3360_v1, %v3361_v21  ;;  %v3377_v20 = vsel %vm12126_vm10, %v3361_v21, %v10984_v49  ;;  %v4737_v1 = vpop.f32.mrf.mxu0  ;;  %v12127_v27 = vld [vmem:[#allocation41_spill] sm:$0xff]  ;;  %v12130_v49 = vld [vmem:[#allocation31_spill] sm:$0xff] }
 0x2fe   : > { %vm12128_vm12 = vnez %v12127_v27  ;;  %v4817_v35 = vadd.f32 %v4737_v1, %v9768_v46  ;;  %v3474_v21 = vsel %vm12129_vm5, %v3456_v33, %v10987_v50  ;;  %vm12131_vm11 = vnez %v12130_v49  ;;  %v12136_v1 = vld [vmem:[#allocation45_spill] sm:$0xff]  ;;  %vm12151_vm5 = vmmov %vm12126_vm10 }
 0x2ff   : > { %v4059_v29 = vmax.f32 %v9891_v0, %v9412_v62  ;;  %v4058_v14 = vmax.f32 %v9903_v28, %v9405_v3  ;;  %v3425_v5 = vsel %vm12128_vm12, %v3377_v20, -3.4028235e+38  ;;  %v10986_v62 = vrot.slane %v9819_v52, 2  ;;  %v9936_v3 = vpop.f32.mrf.mxu2  ;;  %vm12147_vm12 = vmmov %vm12126_vm10 }
 0x300   : > { %v3520_v18 = vsel %vm12131_vm11, %v3475_v34, -3.4028235e+38  ;;  %v3553_v37 = vmax.f32 %v3425_v5, %v3474_v21  ;;  %v9943_v46 = vadd.f32 %v9912_v41, %v4817_v35  ;;  %v3712_v33 = vrot.slane %v9812_v38, 6  ;;  %v12140_v21 = vld [vmem:[#allocation32_spill] sm:$0xff]  ;;  %vm12152_vm11 = vmmov %vm12151_vm5 }
 0x301   : > { %v4091_v11 = vmax.f32 %v3963_v23, %v4059_v29  ;;  %v4090_v27 = vmax.f32 %v3962_v22, %v4058_v14  ;;  %v3552_v20 = vmax.f32 %v3378_v63, %v3520_v18  ;;  %v3633_v2 = vsel %vm12116_vm14, %v3617_v43, %v10986_v62  ;;  %v12157_v62 = vld [vmem:[#allocation72_spill] sm:$0xff] }
 0x302   : > { %v3634_v23 = vsel %vm12132_vm8, %v3616_v57, %v3617_v43  ;;  %v12133_v49 = vrot.slane %v8910_v10, 7  ;;  %v12134_v29 = vrot.slane %v9745_v12, 7  ;;  %vm12137_vm1 = vnez %v12136_v1 }
 0x303   : > { %v4655_v22 = vpack.c.bf16 %v4091_v11, %v4090_v27  ;;  %v3584_v63 = vmax.f32 %v9812_v38, %v3552_v20  ;;  %v3681_v35 = vsel %vm12137_vm1, %v3633_v2, -3.4028235e+38  ;;  %v12138_v14 = vmax.f32 %v12097_v56, %v12034_v58  ;;  %v4542_v2 = vpop.f32.mrf.mxu3 }
 0x304   : > { %v9954_v18 = vsel %vm12135_vm6, %v12134_v29, %v12133_v49  ;;  %v4885_v43 = vsub.f32 0.0, %v9943_v46  ;;  %v3585_v5 = vmax.f32 %v9817_v19, %v3553_v37  ;;  %v10985_v34 = vrot.slane %v9817_v19, 6  ;;  %v9982_v49 = vpop.f32.mrf.mxu1 }
 0x305   : > { %v9962_v57 = vmax.f32 %v3205_v30, %v12138_v14  ;;  %vm12139_vm13 = vcmp.lt.s32.totalorder %v5856_v48, 2  ;;  %4776 = vmatmul.bf16.gmra.mxu0 %v4655_v22  ;;  %vm12141_vm4 = vnez %v12140_v21  ;;  %v3932_v58 = vmax.f32 %v9903_v28, %v9584_v44  ;;  %v4739_v1 = vpop.f32.mrf.mxu0 }
 0x306   : > { %v3731_v11 = vsel %vm12139_vm13, %v3711_v31, %v3712_v33  ;;  %v3933_v56 = vmax.f32 %v9891_v0, %v9590_v55  ;;  %v12142_v30 = vmax.f32 %v9755_v26, -3.4028235e+38  ;;  %v4917_v20 = vmul.f32 1.442695, %v4885_v43  ;;  %vm12143_vm2 = vmmov %vm12139_vm13 }
 0x307   : > { %v3776_v27 = vsel %vm12141_vm4, %v3731_v11, -3.4028235e+38  ;;  %v3730_v31 = vsel %vm12143_vm2, %v3712_v33, %v10985_v34  ;;  %v10989_v22 = vrot.slane %v9823_v42, 1  ;;  %v12144_v14 = vpack.c.bf16 %v9810_v45, %v9598_v54 }
 0x308   : > { %v9980_v37 = vmax.f32 %v9773_v7, %v12142_v30  ;;  %v3808_v29 = vmax.f32 %v3634_v23, %v3776_v27  ;;  %v3809_v26 = vmax.f32 %v3681_v35, %v3730_v31  ;;  %v3964_v7 = vmax.f32 %v9658_v39, %v3932_v58 }
 0x309   : > { %4584 = vmatmul.bf16.gmra.mxu3 %v12144_v14  ;;  %v3965_v43 = vmax.f32 %v9661_v13, %v3933_v56  ;;  %v3365_v11 = vrot.slane %v9962_v57, 1  ;;  %5550 = vpow2.f32 %v4917_v20  ;;  %v4818_v21 = vadd.f32 %v4739_v1, %v9770_v53  ;;  %v10021_v20 = vpop.f32.mrf.mxu2 }
 0x30a   : > { %v9996_v30 = vmax.f32 %v3584_v63, %v3808_v29  ;;  %v3366_v23 = vrot.slane %v9815_v16, 1  ;;  %v9999_v33 = vmax.f32 %v3585_v5, %v3809_v26  ;;  %v3367_v27 = vrot.slane %v9980_v37, 1  ;;  %12149 = vst [vmem:[#allocation48_spill] sm:$0xff] %v10021_v20  ;;  %v12153_v26 = vld [vmem:[#allocation61_spill] sm:$0xff] }
 0x30b   : > { %v3374_v54 = vsel %vm12126_vm10, %v10989_v22, %v3365_v11  ;;  %v12145_v45 = vrot.slane %v8786_v8, 1  ;;  %v12146_v35 = vrot.slane %v8910_v10, 1  ;;  %v4617_v63 = vadd.f32 %v9894_v9, %v9753_v61 }
 0x30c   : > { %v10015_v5 = vadd.f32 %v9912_v41, %v4818_v21  ;;  %v4060_v58 = vmax.f32 %v9996_v30, %v9489_v59  ;;  %v3373_v56 = vsel %vm12148_vm15, %v3365_v11, %v3366_v23  ;;  %v10025_v31 = vadd.f32 %v9766_v25, %v9896_v60  ;;  %v12155_v21 = vld [vmem:[#allocation84_spill] sm:$0xff] }
 0x30d   : > { %v3401_v53 = vsel %vm12147_vm12, %v12146_v35, %v12145_v45  ;;  %v4061_v29 = vmax.f32 %v9999_v33, %v9504_v17  ;;  %v12150_v61 = vrot.slane %v9745_v12, 1  ;;  %v3372_v59 = vsel %vm12152_vm11, %v3366_v23, %v3367_v27 }
 0x30e   : > { %v4886_v1 = vsub.f32 0.0, %v10015_v5  ;;  %v4092_v14 = vmax.f32 %v3964_v7, %v4060_v58  ;;  %vm12154_vm14 = vnez %v12153_v26  ;;  %vm12156_vm8 = vnez %v12155_v21  ;;  %v10061_v21 = vpop.f32.mrf.mxu1 }
 0x30f   : > { %v3371_v9 = vsel %vm12151_vm5, %v3367_v27, %v12150_v61  ;;  %v3429_v11 = vsel %vm12154_vm14, %v3373_v56, -3.4028235e+38  ;;  %v3433_v25 = vsel %vm12156_vm8, %v3401_v53, -3.4028235e+38  ;;  %v4093_v60 = vmax.f32 %v3965_v43, %v4061_v29  ;;  %v5551_v61 = vpop.eup %5550  ;;  %v4742_v56 = vpop.f32.mrf.mxu0 }
 0x310   : > { %v10988_v17 = vrot.slane %v9821_v4, 7  ;;  %v3460_v45 = vrot.slane %v9823_v42, 7  ;;  %v3461_v35 = vrot.slane %v9962_v57, 7  ;;  %v4919_v34 = vmul.f32 1.442695, %v4886_v1  ;;  %v10053_v1 = vpop.f32.mrf.mxu3 }
 0x311   : > { %vm12158_vm6 = vnez %v12157_v62  ;;  %v3462_v7 = vrot.slane %v9815_v16, 7  ;;  %v3463_v27 = vrot.slane %v9980_v37, 7  ;;  %v4981_v58 = vadd.f32 1.0, %v5551_v61  ;;  %v12165_v61 = vld [vmem:[#allocation34_spill] sm:$0xff] }
 0x312   : > { %v3431_v23 = vsel %vm12158_vm6, %v3371_v9, -3.4028235e+38  ;;  %v4656_v26 = vpack.c.bf16 %v4093_v60, %v4092_v14  ;;  %vm12159_vm1 = vcmp.lt.s32.totalorder %v5856_v48, 1  ;;  %5552 = vpow2.f32 %v4919_v34 }
 0x313   : > { %v3470_v43 = vsel %vm12159_vm1, %v3460_v45, %v3461_v35  ;;  %vm12160_vm13 = vmmov %vm12159_vm1  ;;  %v4819_v29 = vadd.f32 %v4742_v56, %v4617_v63  ;;  %v12161_v62 = vrot.slane %v9745_v12, 7  ;;  %5554 = vrcp.f32 %v4981_v58  ;;  %v12167_v56 = vld [vmem:[#allocation66_spill] sm:$0xff] }
 0x314   : > { %v3471_v53 = vsel %vm12160_vm13, %v10988_v17, %v3460_v45  ;;  %vm12162_vm4 = vmmov %vm12159_vm1  ;;  %vm12166_vm12 = vnez %v12165_v61  ;;  %vm12168_vm15 = vnez %v12167_v56  ;;  %v4618_v58 = vadd.f32 %v4542_v2, %v9758_v36 }
 0x315   : > { %v3467_v9 = vsel %vm12162_vm4, %v3463_v27, %v12161_v62  ;;  %vm12163_vm2 = vmmov %vm12159_vm1  ;;  %v3524_v34 = vsel %vm12166_vm12, %v3471_v53, -3.4028235e+38  ;;  %v10070_v45 = vadd.f32 %v9912_v41, %v4819_v29  ;;  %4781 = vmatmul.bf16.gmra.mxu0 %v4656_v26  ;;  %v3622_v29 = vrot.slane %v9815_v16, 2 }
 0x316   : > { %v3468_v14 = vsel %vm12163_vm2, %v3462_v7, %v3463_v27  ;;  %vm12164_vm10 = vmmov %vm12159_vm1  ;;  %v3528_v63 = vsel %vm12068_vm3, %v3467_v9, -3.4028235e+38  ;;  %v10074_v50 = vmax.f32 %v3374_v54, %v3524_v34  ;;  %v10076_v27 = vmax.f32 %v3429_v11, %v3470_v43  ;;  %v10092_v43 = vpop.f32.mrf.mxu2 }
 0x317   : > { %v3469_v60 = vsel %vm12164_vm10, %v3461_v35, %v3462_v7  ;;  %v10081_v35 = vmax.f32 %v3431_v23, %v3468_v14  ;;  %v10084_v7 = vmax.f32 %v3433_v25, %v9954_v18  ;;  %v4887_v24 = vsub.f32 0.0, %v10070_v45  ;;  %12169 = vst [vmem:[#allocation94_spill] sm:$0xff] %v10092_v43  ;;  %v12182_v18 = vld [vmem:[#allocation86_spill] sm:$0xff] }
 0x318   : > { %v3526_v62 = vsel %vm12168_vm15, %v3469_v60, -3.4028235e+38  ;;  %v10990_v11 = vrot.slane %v9823_v42, 2  ;;  %v10095_v36 = vmax.f32 %v9889_v51, %v3528_v63  ;;  %v5553_v25 = vpop.eup %5552  ;;  %v3623_v9 = vrot.slane %v9980_v37, 2  ;;  %v4744_v63 = vpop.f32.mrf.mxu0 }
 0x319   : > { %v10079_v17 = vmax.f32 %v3372_v59, %v3526_v62  ;;  %v3621_v59 = vrot.slane %v9962_v57, 2  ;;  %v4921_v23 = vmul.f32 1.442695, %v4887_v24  ;;  %v3624_v14 = vrot.slane %v9745_v12, 2  ;;  %v5555_v26 = vpop.eup %5554 }
 0x31a   : > { %v4982_v51 = vadd.f32 1.0, %v5553_v25  ;;  %v3593_v60 = vmax.f32 %v8910_v10, %v10084_v7  ;;  %v3625_v61 = vrot.slane %v8910_v10, 2  ;;  %vm12170_vm3 = vcmp.lt.s32.totalorder %v5856_v48, 6 }
 0x31b   : > { %v3630_v34 = vsel %vm12170_vm3, %v10990_v11, %v3621_v59  ;;  %v5045_v56 = vmul.f32 %v5555_v26, %v9943_v46  ;;  %5556 = vpow2.f32 %v4921_v23  ;;  %vm12171_vm5 = vmmov %vm12170_vm3  ;;  %v12174_v25 = vrot.slane %v8786_v8, 2  ;;  %v12177_v26 = vld [vmem:[#allocation62_spill] sm:$0xff]  ;;  %v10142_v8 = vpop.f32.mrf.mxu1 }
 0x31c   : > { %v3627_v62 = vsel %vm12171_vm5, %v3623_v9, %v3624_v14  ;;  %vm12172_vm11 = vmmov %vm12170_vm3  ;;  %5558 = vrcp.f32 %v4982_v51  ;;  %v10992_v11 = vrot.slane %v9821_v4, 6  ;;  %v3592_v46 = vmax.f32 %v9745_v12, %v10095_v36  ;;  %v12179_v51 = vld [vmem:[#allocation73_spill] sm:$0xff]  ;;  %12181 = vst [vmem:[#allocation16_spill] sm:$0xff] %v10142_v8 }
 0x31d   : > { %v3628_v24 = vsel %vm12172_vm11, %v3622_v29, %v3623_v9  ;;  %vm12173_vm14 = vmmov %vm12170_vm3  ;;  %5077 = vst [vmem:[%s10110_s7] sm:$0xff] %v5045_v56  ;;  %vm12178_vm1 = vnez %v12177_v26  ;;  %vm12180_vm13 = vnez %v12179_v51  ;;  %v3717_v56 = vrot.slane %v9962_v57, 6 }
 0x31e   : > { %v3629_v7 = vsel %vm12173_vm14, %v3621_v59, %v3622_v29  ;;  %vm12175_vm8 = vmmov %vm12170_vm3  ;;  %v3687_v59 = vsel %vm12180_vm13, %v3627_v62, -3.4028235e+38  ;;  %v10140_v29 = vpop.f32.mrf.mxu3  ;;  %v3718_v2 = vrot.slane %v9815_v16, 6  ;;  %v3719_v36 = vrot.slane %v9980_v37, 6  ;;  %v10173_v43 = vpop.f32.mrf.mxu2 }
 0x31f   : > { %v3657_v22 = vsel %vm12175_vm8, %v3625_v61, %v12174_v25  ;;  %vm12176_vm6 = vmmov %vm12170_vm3  ;;  %v3685_v9 = vsel %vm12178_vm1, %v3629_v7, -3.4028235e+38  ;;  %v3716_v25 = vrot.slane %v9823_v42, 6  ;;  %vm12183_vm4 = vnez %v12182_v18 }
 0x320   : > { %v3626_v23 = vsel %vm12176_vm6, %v3624_v14, %v3625_v61  ;;  %v3689_v14 = vsel %vm12183_vm4, %v3657_v22, -3.4028235e+38  ;;  %v3720_v61 = vrot.slane %v9745_v12, 6  ;;  %v4150_v62 = vpack.c.bf16 %v12074_v6, %v12008_v32  ;;  %v4747_v8 = vpop.f32.mrf.mxu0 }
 0x321   : > { %v4820_v7 = vadd.f32 %v4744_v63, %v4618_v58  ;;  %vm12184_vm2 = vcmp.lt.s32.totalorder %v5856_v48, 2  ;;  %v5557_v18 = vpop.eup %5556  ;;  %v12188_v53 = vrot.slane %v8910_v10, 6  ;;  %v12191_v58 = vld [vmem:[#allocation35_spill] sm:$0xff]  ;;  %vm12205_vm6 = vcmp.lt.s32.totalorder %v5856_v48, 1 }
 0x322   : > { %v3724_v26 = vsel %vm12184_vm2, %v3718_v2, %v3719_v36  ;;  %vm12185_vm10 = vmmov %vm12184_vm2  ;;  %vm12192_vm11 = vnez %v12191_v58  ;;  %v12193_v63 = vld [vmem:[#allocation67_spill] sm:$0xff]  ;;  %4287 = vmatmul.bf16.gmra.mxu1 %v4150_v62  ;;  %v5559_v12 = vpop.eup %5558  ;;  %v12196_v62 = vmax.f32 %v9823_v42, %v10074_v50  ;;  %vm12212_vm4 = vcmp.lt.s32.totalorder %v5856_v48, 6 }
 0x323   : > { %v3725_v51 = vsel %vm12185_vm10, %v3717_v56, %v3718_v2  ;;  %vm12186_vm12 = vmmov %vm12184_vm2  ;;  %vm12194_vm14 = vnez %v12193_v63  ;;  %v3815_v58 = vmax.f32 %v3687_v59, %v3724_v26 }
 0x324   : > { %v3726_v54 = vsel %vm12186_vm12, %v3716_v25, %v3717_v56  ;;  %vm12187_vm15 = vmmov %vm12184_vm2  ;;  %v3782_v56 = vsel %vm12194_vm14, %v3725_v51, -3.4028235e+38 }
 0x325   : > { %v3727_v22 = vsel %vm12187_vm15, %v10992_v11, %v3716_v25  ;;  %vm12189_vm3 = vmmov %vm12184_vm2  ;;  %v4983_v25 = vadd.f32 1.0, %v5557_v18  ;;  %v12197_v18 = vmax.f32 %v9962_v57, %v10076_v27 }
 0x326   : > { %v3722_v32 = vsel %vm12189_vm3, %v3720_v61, %v12188_v53  ;;  %vm12190_vm5 = vmmov %vm12184_vm2  ;;  %v3780_v2 = vsel %vm12192_vm11, %v3727_v22, -3.4028235e+38  ;;  %v3813_v53 = vmax.f32 %v3685_v9, %v3726_v54  ;;  %v4619_v54 = vadd.f32 %v10053_v1, %v9760_v40  ;;  %v4550_v27 = vpop.f32.mrf.mxu3 }
 0x327   : > { %v3723_v6 = vsel %vm12190_vm5, %v3719_v36, %v3720_v61  ;;  %v3812_v20 = vmax.f32 %v3630_v34, %v3780_v2  ;;  %v5046_v36 = vmul.f32 %v5559_v12, %v10015_v5  ;;  %v3814_v61 = vmax.f32 %v3628_v24, %v3782_v56  ;;  %vm12207_vm1 = vmmov %vm12205_vm6 }
 0x328   : > { %v3784_v10 = vsel %vm12071_vm0, %v3723_v6, -3.4028235e+38  ;;  %5560 = vrcp.f32 %v4983_v25  ;;  %v3817_v63 = vmax.f32 %v3689_v14, %v3722_v32  ;;  %v10186_v11 = vmax.f32 %v12197_v18, %v3813_v53  ;;  %vm12214_vm2 = vmmov %vm12212_vm4 }
 0x329   : > { %v3816_v22 = vmax.f32 %v3626_v23, %v3784_v10  ;;  %v10181_v51 = vmax.f32 %v12196_v62, %v3812_v20  ;;  %5078 = vst [vmem:[%s10110_s7 + $0x8] sm:$0xff] %v5046_v36  ;;  %v12198_v12 = vmax.f32 %v9815_v16, %v10079_v17  ;;  %v12199_v5 = vmax.f32 %v9980_v37, %v10081_v35  ;;  %v10210_v17 = vpop.f32.mrf.mxu1 }
 0x32a   : > { %v10202_v20 = vadd.f32 %v9912_v41, %v4820_v7  ;;  %v10206_v24 = vmax.f32 %v3593_v60, %v3817_v63  ;;  %v4073_v1 = vmax.f32 %v10186_v11, -3.4028235e+38  ;;  %v4821_v59 = vadd.f32 %v4747_v8, %v4619_v54  ;;  %v4749_v63 = vpop.f32.mrf.mxu0 }
 0x32b   : > { %v10194_v10 = vmax.f32 %v12198_v12, %v3814_v61  ;;  %v10199_v50 = vmax.f32 %v12199_v5, %v3815_v58  ;;  %v10204_v34 = vmax.f32 %v3592_v46, %v3816_v22  ;;  %v4072_v40 = vmax.f32 %v10181_v51, -3.4028235e+38  ;;  %v10242_v12 = vpop.f32.mrf.mxu2 }
 0x32c   : > { %v4888_v9 = vsub.f32 0.0, %v10202_v20  ;;  %v4456_v14 = vpack.c.bf16 %v9817_v19, %v9812_v38  ;;  %v3363_v46 = vrot.slane %v9821_v4, 1  ;;  %v3458_v60 = vrot.slane %v9819_v52, 7 }
 0x32d   : > { %v3944_v23 = vmax.f32 %v10194_v10, -3.4028235e+38  ;;  %v3945_v35 = vmax.f32 %v10199_v50, -3.4028235e+38  ;;  %v3619_v7 = vrot.slane %v9821_v4, 2  ;;  %v10223_v2 = vadd.f32 %v9912_v41, %v4821_v59 }
 0x32e   : > { %v4923_v6 = vmul.f32 1.442695, %v4888_v9  ;;  %v5561_v56 = vpop.eup %5560  ;;  %4589 = vmatmul.bf16.gmra.mxu3 %v4456_v14  ;;  %v12200_v8 = vrot.slane %v9823_v42, 1  ;;  %vm12201_vm0 = vcmp.lt.s32.totalorder %v5856_v48, 7  ;;  %v12202_v25 = vrot.slane %v9819_v52, 1  ;;  %v12209_v9 = vld [vmem:[#allocation43_spill] sm:$0xff] }
 0x32f   : > { %v3976_v26 = vmax.f32 %v10204_v34, %v3944_v23  ;;  %v3977_v32 = vmax.f32 %v10206_v24, %v3945_v35  ;;  %vm12203_vm8 = vmmov %vm12201_vm0  ;;  %v12204_v36 = vrot.slane %v9821_v4, 7  ;;  %v12206_v58 = vrot.slane %v9817_v19, 7 }
 0x330   : > { %v3375_v38 = vsel %vm12201_vm0, %v3363_v46, %v12200_v8  ;;  %v3376_v53 = vsel %vm12203_vm8, %v12202_v25, %v3363_v46  ;;  %v5047_v62 = vmul.f32 %v5561_v56, %v10070_v45  ;;  %5562 = vpow2.f32 %v4923_v6 }
 0x331   : > { %v3472_v61 = vsel %vm12205_vm6, %v3458_v60, %v12204_v36  ;;  %v3473_v22 = vsel %vm12207_vm1, %v12206_v58, %v3458_v60  ;;  %v4104_v18 = vmax.f32 %v3976_v26, %v4072_v40  ;;  %v4105_v54 = vmax.f32 %v3977_v32, %v4073_v1  ;;  %v4552_v32 = vpop.f32.mrf.mxu3 }
 0x332   : > { %v4889_v5 = vsub.f32 0.0, %v10223_v2  ;;  %v3427_v35 = vsel %vm12078_vm9, %v3375_v38, -3.4028235e+38  ;;  %vm12210_vm13 = vnez %v12209_v9  ;;  %v12211_v14 = vrot.slane %v9823_v42, 2  ;;  %5079 = vst [vmem:[%s10110_s7 + $0x10] sm:$0xff] %v5047_v62  ;;  %vm12217_vm9 = vmmov %vm12189_vm3 }
 0x333   : > { %v3522_v59 = vsel %vm12210_vm13, %v3473_v22, -3.4028235e+38  ;;  %v4662_v45 = vpack.c.bf16 %v4105_v54, %v4104_v18  ;;  %v3555_v1 = vmax.f32 %v3427_v35, %v3472_v61  ;;  %v12213_v60 = vrot.slane %v9819_v52, 2 }
 0x334   : > { %v3631_v46 = vsel %vm12212_vm4, %v3619_v7, %v12211_v14  ;;  %v3554_v40 = vmax.f32 %v3376_v53, %v3522_v59  ;;  %v4925_v6 = vmul.f32 1.442695, %v4889_v5  ;;  %v3714_v38 = vrot.slane %v9819_v52, 6  ;;  %v12220_v5 = vld [vmem:[#allocation47_spill] sm:$0xff] }
 0x335   : > { %v3632_v26 = vsel %vm12214_vm2, %v12213_v60, %v3619_v7  ;;  %v3683_v8 = vsel %vm12095_vm7, %v3631_v46, -3.4028235e+38  ;;  %v3934_v25 = vmax.f32 %v9996_v30, %v9658_v39  ;;  %4811 = vmatmul.bf16.vlgmr.msra.gmra.mxu2 %v4662_v45  ;;  %v4620_v53 = vadd.f32 %v10140_v29, %v9762_v47  ;;  %vm12219_vm7 = vmmov %vm12189_vm3  ;;  %v10278_v29 = vpop.f32.mrf.mxu1  ;;  %v12222_v45 = vld [vmem:[#allocation90_spill] sm:$0xff] }
 0x336   : > { %v3586_v36 = vmax.f32 %v9819_v52, %v3554_v40  ;;  %v3587_v61 = vmax.f32 %v9821_v4, %v3555_v1  ;;  %v3935_v7 = vmax.f32 %v9999_v33, %v9661_v13  ;;  %5564 = vpow2.f32 %v4925_v6  ;;  %v5563_v54 = vpop.eup %5562  ;;  %v4752_v1 = vpop.f32.mrf.mxu0 }
 0x337   : > { %v12216_v58 = vrot.slane %v9821_v4, 6  ;;  %v12218_v62 = vrot.slane %v9817_v19, 6  ;;  %v3966_v47 = vmax.f32 %v9903_v28, %v3934_v25  ;;  %vm12221_vm10 = vnez %v12220_v5  ;;  %v12223_v19 = vld [vmem:[#allocation91_spill] sm:$0xff] }
 0x338   : > { %v3967_v9 = vmax.f32 %v9891_v0, %v3935_v7  ;;  %v4621_v59 = vadd.f32 %v4550_v27, %v10025_v31  ;;  %v4984_v14 = vadd.f32 1.0, %v5563_v54  ;;  %v4151_v40 = vpack.c.bf16 %v12223_v19, %v12222_v45 }
 0x339   : > { %v3728_v22 = vsel %vm12217_vm9, %v3714_v38, %v12216_v58  ;;  %v3729_v18 = vsel %vm12219_vm7, %v12218_v62, %v3714_v38  ;;  %v4822_v48 = vadd.f32 %v4749_v63, %v4620_v53  ;;  %v4457_v31 = vpack.c.bf16 %v9821_v4, %v9819_v52  ;;  %v4555_v25 = vpop.f32.mrf.mxu3 }
 0x33a   : > { %v3778_v23 = vsel %vm12221_vm10, %v3729_v18, -3.4028235e+38  ;;  %v3811_v35 = vmax.f32 %v3683_v8, %v3728_v22  ;;  %v4823_v6 = vadd.f32 %v4752_v1, %v4621_v59  ;;  %5566 = vrcp.f32 %v4984_v14  ;;  %4292 = vmatmul.bf16.gmra.mxu1 %v4151_v40 }
 0x33b   : > { %v3810_v46 = vmax.f32 %v3632_v26, %v3778_v23  ;;  %v10291_v8 = vadd.f32 %v9912_v41, %v4822_v48  ;;  %v4383_v27 = vadd.f32 %v9834_v15, %v9982_v49  ;;  %v4459_v45 = vpack.c.bf16 %v9980_v37, %v9815_v16 }
 0x33c   : > { %v10286_v60 = vmax.f32 %v3587_v61, %v3811_v35  ;;  %v10300_v26 = vadd.f32 %v9912_v41, %v4823_v6  ;;  %v5565_v53 = vpop.eup %5564  ;;  %v3939_v48 = vmax.f32 %v10186_v11, %v9999_v33  ;;  %v4066_v1 = vmax.f32 %v10194_v10, %v9903_v28 }
 0x33d   : > { %v10288_v56 = vmax.f32 %v3586_v36, %v3810_v46  ;;  %v10304_v36 = vpop.f32.mrf.mxu2  ;;  %v4890_v52 = vsub.f32 0.0, %v10291_v8  ;;  %v4985_v15 = vadd.f32 1.0, %v5565_v53  ;;  %v4622_v54 = vadd.f32 %v4552_v32, %v4383_v27  ;;  %v10322_v59 = vpop.f32.mrf.mxu1 }
 0x33e   : > { %v4063_v63 = vmax.f32 %v10286_v60, %v9590_v55  ;;  %v3937_v38 = vmax.f32 %v10286_v60, %v9891_v0  ;;  %v4065_v55 = vmax.f32 %v10186_v11, %v9661_v13  ;;  %v4891_v7 = vsub.f32 0.0, %v10300_v26  ;;  %4594 = vmatmul.bf16.gmra.mxu3 %v4457_v31 }
 0x33f   : > { %v4062_v61 = vmax.f32 %v10288_v56, %v9584_v44  ;;  %v3936_v4 = vmax.f32 %v10288_v56, %v9903_v28  ;;  %v4927_v62 = vmul.f32 1.442695, %v4890_v52  ;;  %v4064_v44 = vmax.f32 %v10181_v51, %v9658_v39 }
 0x340   : > { %v4095_v49 = vmax.f32 %v3967_v9, %v4063_v63  ;;  %v3969_v58 = vmax.f32 %v9999_v33, %v3937_v38  ;;  %5568 = vrcp.f32 %v4985_v15  ;;  %v4929_v5 = vmul.f32 1.442695, %v4891_v7  ;;  %v5567_v13 = vpop.eup %5566 }
 0x341   : > { %v4094_v22 = vmax.f32 %v3966_v47, %v4062_v61  ;;  %v3968_v18 = vmax.f32 %v9996_v30, %v3936_v4  ;;  %5570 = vpow2.f32 %v4927_v62  ;;  %v4754_v47 = vpop.f32.mrf.mxu0  ;;  %v5048_v14 = vmul.f32 %v5567_v13, %v10202_v20  ;;  %v4557_v40 = vpop.f32.mrf.mxu3 }
 0x342   : > { %v10318_v23 = vmax.f32 %v3969_v58, %v4065_v55  ;;  %5572 = vpow2.f32 %v4929_v5  ;;  %v4824_v46 = vadd.f32 %v4754_v47, %v4622_v54  ;;  %v4458_v39 = vpack.c.bf16 %v9962_v57, %v9823_v42  ;;  %v12225_v55 = vld [vmem:[#allocation93_spill] sm:$0xff] }
 0x343   : > { %v4657_v35 = vpack.c.bf16 %v4095_v49, %v4094_v22  ;;  %v10320_v9 = vmax.f32 %v3968_v18, %v4064_v44  ;;  %5080 = vst [vmem:[%s10110_s7 + $0x18] sm:$0xff] %v5048_v14  ;;  %v3938_v20 = vmax.f32 %v10181_v51, %v9996_v30  ;;  %v4386_v6 = vadd.f32 %v9936_v3, %v10061_v21  ;;  %v12224_v21 = vld [vmem:[#allocation92_spill] sm:$0xff] }
 0x344   : > { %v10333_v19 = vadd.f32 %v9912_v41, %v4824_v46  ;;  %v4067_v31 = vmax.f32 %v10199_v50, %v9891_v0  ;;  %v3971_v53 = vmax.f32 %v10286_v60, %v3939_v48  ;;  %v3943_v61 = vmax.f32 %v10206_v24, %v10186_v11 }
 0x345   : > { %4786 = vmatmul.bf16.gmra.mxu0 %v4657_v35  ;;  %v4658_v32 = vpack.c.bf16 %v10318_v23, %v10320_v9  ;;  %v3970_v38 = vmax.f32 %v10288_v56, %v3938_v20  ;;  %v10350_v4 = vpop.f32.mrf.mxu2  ;;  %v4623_v3 = vadd.f32 %v4555_v25, %v4386_v6  ;;  %v4152_v0 = vpack.c.bf16 %v12225_v55, %v12224_v21  ;;  %v10370_v35 = vpop.f32.mrf.mxu1  ;;  %v12226_v6 = vld [vmem:[#allocation16_spill] sm:$0xff]  ;;  %v12230_v23 = vld [vmem:[#allocation105_spill] sm:$0xff] }
 0x346   : > { %v5569_v27 = vpop.eup %5568  ;;  %v4892_v63 = vsub.f32 0.0, %v10333_v19  ;;  %v10357_v22 = vmax.f32 %v3971_v53, %v4067_v31  ;;  %v3940_v44 = vmax.f32 %v10194_v10, %v10288_v56  ;;  %v4068_v25 = vmax.f32 %v10204_v34, %v9996_v30  ;;  %v12227_v31 = vld [vmem:[#allocation48_spill] sm:$0xff] }
 0x347   : > { %v5571_v52 = vpop.eup %5570  ;;  %v5049_v28 = vmul.f32 %v5569_v27, %v10223_v2  ;;  %v10355_v58 = vmax.f32 %v3970_v38, %v4066_v1  ;;  %v3941_v2 = vmax.f32 %v10199_v50, %v10286_v60  ;;  %v4069_v13 = vmax.f32 %v10206_v24, %v9999_v33 }
 0x348   : > { %v5573_v15 = vpop.eup %5572  ;;  %v4986_v49 = vadd.f32 1.0, %v5571_v52  ;;  %v4931_v7 = vmul.f32 1.442695, %v4892_v63  ;;  %v3972_v47 = vmax.f32 %v10181_v51, %v3940_v44  ;;  %v3942_v46 = vmax.f32 %v10204_v34, %v10181_v51  ;;  %v12229_v44 = vld [vmem:[#allocation97_spill] sm:$0xff] }
 0x349   : > { %5081 = vst [vmem:[%s10110_s7 + $0x20] sm:$0xff] %v5049_v28  ;;  %v4987_v62 = vadd.f32 1.0, %v5573_v15  ;;  %v4757_v18 = vpop.f32.mrf.mxu0  ;;  %v4659_v5 = vpack.c.bf16 %v10357_v22, %v10355_v58  ;;  %v3973_v14 = vmax.f32 %v10186_v11, %v3941_v2  ;;  %v4560_v20 = vpop.f32.mrf.mxu3  ;;  %v3975_v48 = vmax.f32 %v10199_v50, %v3943_v61 }
 0x34a   : > { %5574 = vrcp.f32 %v4986_v49  ;;  %v4825_v54 = vadd.f32 %v4757_v18, %v4623_v3  ;;  %4297 = vmatmul.bf16.gmra.mxu1 %v4152_v0  ;;  %v4070_v1 = vmax.f32 %v10288_v56, -3.4028235e+38  ;;  %v10379_v33 = vmax.f32 %v3972_v47, %v4068_v25 }
 0x34b   : > { %5576 = vrcp.f32 %v4987_v62  ;;  %v10381_v24 = vmax.f32 %v3973_v14, %v4069_v13  ;;  %v4388_v27 = vadd.f32 %v12227_v31, %v12226_v6  ;;  %v3974_v11 = vmax.f32 %v10194_v10, %v3942_v46 }
 0x34c   : > { %5578 = vpow2.f32 %v4931_v7  ;;  %v4861_v30 = vadd.f32 %v9912_v41, %v4825_v54  ;;  %v4071_v51 = vmax.f32 %v10286_v60, -3.4028235e+38  ;;  %v4153_v9 = vpack.c.bf16 %v12230_v23, %v12229_v44 }
 0x34d   : > { %v4660_v34 = vpack.c.bf16 %v10381_v24, %v10379_v33  ;;  %v4624_v50 = vadd.f32 %v4557_v40, %v4388_v27  ;;  %v10389_v56 = vmax.f32 %v3974_v11, %v4070_v1  ;;  %v10393_v28 = vpop.f32.mrf.mxu2  ;;  %v10408_v57 = vpop.f32.mrf.mxu1  ;;  %v4393_v14 = vadd.f32 %v10173_v43, %v10278_v29 }
 0x34e   : > { %v4893_v63 = vsub.f32 0.0, %v4861_v30  ;;  %v10391_v61 = vmax.f32 %v3975_v48, %v4071_v51  ;;  %4599 = vmatmul.bf16.gmra.mxu3 %v4458_v39  ;;  %v4396_v16 = vadd.f32 %v10242_v12, %v10322_v59  ;;  %v4398_v12 = vadd.f32 %v10304_v36, %v10370_v35 }
 0x34f   : > { %v4401_v44 = vadd.f32 %v10350_v4, %v10408_v57 }
 0x350   : > { %v5575_v38 = vpop.eup %5574  ;;  %v4933_v53 = vmul.f32 1.442695, %v4893_v63  ;;  %v4661_v55 = vpack.c.bf16 %v10391_v61, %v10389_v56 }
 0x351   : > { %v5577_v52 = vpop.eup %5576  ;;  %v5050_v3 = vmul.f32 %v5575_v38, %v10291_v8  ;;  %v4759_v10 = vpop.f32.mrf.mxu0 }
 0x352   : > { %v5579_v60 = vpop.eup %5578  ;;  %v5051_v21 = vmul.f32 %v5577_v52, %v10300_v26  ;;  %5580 = vpow2.f32 %v4933_v53  ;;  %v4826_v40 = vadd.f32 %v4759_v10, %v4624_v50  ;;  %v4562_v42 = vpop.f32.mrf.mxu3  ;;  %v12228_v26 = vld [vmem:[#allocation94_spill] sm:$0xff] }
 0x353   : > { %5082 = vst [vmem:[%s10110_s7 + $0x28] sm:$0xff] %v5050_v3  ;;  %v4988_v0 = vadd.f32 1.0, %v5579_v60  ;;  %v4391_v39 = vadd.f32 %v12228_v26, %v10210_v17  ;;  %v4626_v1 = vadd.f32 %v4562_v42, %v4393_v14 }
 0x354   : > { %5083 = vst [vmem:[%s10110_s7 + $0x30] sm:$0xff] %v5051_v21  ;;  %v4862_v8 = vadd.f32 %v9912_v41, %v4826_v40  ;;  %v12231_v21 = vld [vmem:[#allocation63_spill] sm:$0xff]  ;;  %v12232_v40 = vld [vmem:[#allocation42_spill] sm:$0xff] }
 0x355   : > { %4791 = vmatmul.bf16.gmra.mxu0 %v4658_v32  ;;  %5582 = vrcp.f32 %v4988_v0  ;;  %v4625_v7 = vadd.f32 %v4560_v20, %v4391_v39  ;;  %v10414_v54 = vpop.f32.mrf.mxu2  ;;  %v10421_v20 = vpop.f32.mrf.mxu1  ;;  %v4460_v0 = vpack.c.bf16 %v12232_v40, %v12231_v21 }
 0x356   : > { %v4894_v15 = vsub.f32 0.0, %v4862_v8  ;;  %v4403_v4 = vadd.f32 %v10393_v28, %v10421_v20 }
 0x358   : > { %v5581_v49 = vpop.eup %5580  ;;  %v4935_v62 = vmul.f32 1.442695, %v4894_v15 }
 0x359   : > { %v4989_v18 = vadd.f32 1.0, %v5581_v49  ;;  %v4762_v32 = vpop.f32.mrf.mxu0 }
 0x35a   : > { %5584 = vpow2.f32 %v4935_v62  ;;  %v4827_v2 = vadd.f32 %v4762_v32, %v4625_v7  ;;  %4302 = vmatmul.bf16.gmra.mxu1 %v4153_v9  ;;  %v4565_v47 = vpop.f32.mrf.mxu3 }
 0x35b   : > { %v5583_v25 = vpop.eup %5582  ;;  %5586 = vrcp.f32 %v4989_v18 }
 0x35c   : > { %v5052_v13 = vmul.f32 %v5583_v25, %v10333_v19  ;;  %v4863_v17 = vadd.f32 %v9912_v41, %v4827_v2 }
 0x35d   : > { %v10431_v51 = vpop.f32.mrf.mxu2  ;;  %v10435_v52 = vpop.f32.mrf.mxu1 }
 0x35e   : > { %5084 = vst [vmem:[%s10110_s7 + $0x38] sm:$0xff] %v5052_v13  ;;  %v4895_v46 = vsub.f32 0.0, %v4863_v17  ;;  %4604 = vmatmul.bf16.gmra.mxu3 %v4459_v45 }
 0x360   : > { %v5585_v48 = vpop.eup %5584  ;;  %v4937_v6 = vmul.f32 1.442695, %v4895_v46 }
 0x361   : > { %v5587_v31 = vpop.eup %5586  ;;  %v4990_v27 = vadd.f32 1.0, %v5585_v48  ;;  %v4764_v19 = vpop.f32.mrf.mxu0 }
 0x362   : > { %v5053_v63 = vmul.f32 %v5587_v31, %v4861_v30  ;;  %5588 = vpow2.f32 %v4937_v6  ;;  %v4828_v11 = vadd.f32 %v4764_v19, %v4626_v1  ;;  %v4567_v29 = vpop.f32.mrf.mxu3  ;;  %v4627_v30 = vadd.f32 %v4565_v47, %v4396_v16 }
 0x363   : > { %5590 = vrcp.f32 %v4990_v27  ;;  %v4628_v26 = vadd.f32 %v4567_v29, %v4398_v12 }
 0x364   : > { %5085 = vst [vmem:[%s10110_s7 + $0x40] sm:$0xff] %v5053_v63  ;;  %v4864_v43 = vadd.f32 %v9912_v41, %v4828_v11 }
 0x365   : > { %4796 = vmatmul.bf16.gmra.mxu0 %v4659_v5  ;;  %v10441_v60 = vpop.f32.mrf.mxu2  ;;  %v4270_v36 = vpop.f32.mrf.mxu1 }
 0x366   : > { %v4896_v37 = vsub.f32 0.0, %v4864_v43 }
 0x368   : > { %v5589_v45 = vpop.eup %5588  ;;  %v4939_v38 = vmul.f32 1.442695, %v4896_v37 }
 0x369   : > { %v5591_v50 = vpop.eup %5590  ;;  %v4991_v53 = vadd.f32 1.0, %v5589_v45  ;;  %v4767_v58 = vpop.f32.mrf.mxu0 }
 0x36a   : > { %v5054_v22 = vmul.f32 %v5591_v50, %v4862_v8  ;;  %5592 = vpow2.f32 %v4939_v38  ;;  %v4829_v5 = vadd.f32 %v4767_v58, %v4627_v30  ;;  %v4570_v10 = vpop.f32.mrf.mxu3  ;;  %v4406_v30 = vadd.f32 %v10414_v54, %v10435_v52 }
 0x36b   : > { %5594 = vrcp.f32 %v4991_v53  ;;  %v4629_v32 = vadd.f32 %v4570_v10, %v4401_v44  ;;  %v4408_v10 = vadd.f32 %v10431_v51, %v4270_v36 }
 0x36c   : > { %5086 = vst [vmem:[%s10110_s7 + $0x48] sm:$0xff] %v5054_v22  ;;  %v4865_v3 = vadd.f32 %v9912_v41, %v4829_v5 }
 0x36d   : > { %v10452_v13 = vpop.f32.mrf.mxu2  ;;  %v4273_v14 = vpop.f32.mrf.mxu1 }
 0x36e   : > { %v4897_v59 = vsub.f32 0.0, %v4865_v3  ;;  %4609 = vmatmul.bf16.gmra.mxu3 %v4460_v0  ;;  %v4411_v51 = vadd.f32 %v10441_v60, %v4273_v14 }
 0x370   : > { %v5593_v42 = vpop.eup %5592  ;;  %v4941_v8 = vmul.f32 1.442695, %v4897_v59 }
 0x371   : > { %v5595_v39 = vpop.eup %5594  ;;  %v4992_v15 = vadd.f32 1.0, %v5593_v42  ;;  %v4769_v49 = vpop.f32.mrf.mxu0 }
 0x372   : > { %v5055_v7 = vmul.f32 %v5595_v39, %v4863_v17  ;;  %5596 = vpow2.f32 %v4941_v8  ;;  %v4830_v62 = vadd.f32 %v4769_v49, %v4628_v26  ;;  %v4572_v18 = vpop.f32.mrf.mxu3 }
 0x373   : > { %5598 = vrcp.f32 %v4992_v15  ;;  %v4630_v1 = vadd.f32 %v4572_v18, %v4403_v4 }
 0x374   : > { %5087 = vst [vmem:[%s10110_s7 + $0x50] sm:$0xff] %v5055_v7  ;;  %v4866_v35 = vadd.f32 %v9912_v41, %v4830_v62 }
 0x375   : > { %4801 = vmatmul.bf16.gmra.mxu0 %v4660_v34  ;;  %v4275_v29 = vpop.f32.mrf.mxu1 }
 0x376   : > { %v4898_v23 = vsub.f32 0.0, %v4866_v35 }
 0x378   : > { %v5597_v9 = vpop.eup %5596  ;;  %v4943_v2 = vmul.f32 1.442695, %v4898_v23 }
 0x379   : > { %v5599_v25 = vpop.eup %5598  ;;  %v4993_v17 = vadd.f32 1.0, %v5597_v9  ;;  %v4772_v33 = vpop.f32.mrf.mxu0 }
 0x37a   : > { %v5056_v24 = vmul.f32 %v5599_v25, %v4864_v43  ;;  %5600 = vpow2.f32 %v4943_v2  ;;  %v4831_v34 = vadd.f32 %v4772_v33, %v4629_v32  ;;  %v4575_v46 = vpop.f32.mrf.mxu3  ;;  %v10458_v43 = vpop.f32.mrf.mxu2  ;;  %v4413_v25 = vadd.f32 %v10452_v13, %v4275_v29 }
 0x37b   : > { %5602 = vrcp.f32 %v4993_v17  ;;  %v4631_v56 = vadd.f32 %v4575_v46, %v4406_v30 }
 0x37c   : > { %5088 = vst [vmem:[%s10110_s7 + $0x58] sm:$0xff] %v5056_v24  ;;  %v4867_v47 = vadd.f32 %v9912_v41, %v4831_v34 }
 0x37d   : > { %v10472_v12 = vpop.f32.mrf.mxu1 }
 0x37e   : > { %v4899_v57 = vsub.f32 0.0, %v4867_v47 }
 0x380   : > { %v5601_v48 = vpop.eup %5600  ;;  %v4945_v6 = vmul.f32 1.442695, %v4899_v57 }
 0x381   : > { %v5603_v31 = vpop.eup %5602  ;;  %v4994_v27 = vadd.f32 1.0, %v5601_v48  ;;  %v4774_v19 = vpop.f32.mrf.mxu0 }
 0x382   : > { %v5057_v63 = vmul.f32 %v5603_v31, %v4865_v3  ;;  %5604 = vpow2.f32 %v4945_v6  ;;  %v4832_v11 = vadd.f32 %v4774_v19, %v4630_v1  ;;  %v4577_v50 = vpop.f32.mrf.mxu3 }
 0x383   : > { %5606 = vrcp.f32 %v4994_v27  ;;  %v4632_v21 = vadd.f32 %v4577_v50, %v4408_v10 }
 0x384   : > { %5089 = vst [vmem:[%s10110_s7 + $0x60] sm:$0xff] %v5057_v63  ;;  %v4868_v28 = vadd.f32 %v9912_v41, %v4832_v11 }
 0x385   : > { %4806 = vmatmul.bf16.gmra.mxu0 %v4661_v55  ;;  %v10468_v55 = vpop.f32.mrf.mxu2  ;;  %v4280_v36 = vpop.f32.mrf.mxu1 }
 0x386   : > { %v4900_v20 = vsub.f32 0.0, %v4868_v28 }
 0x388   : > { %v5605_v16 = vpop.eup %5604  ;;  %v4947_v37 = vmul.f32 1.442695, %v4900_v20 }
 0x389   : > { %v5607_v45 = vpop.eup %5606  ;;  %v4995_v38 = vadd.f32 1.0, %v5605_v16  ;;  %v4777_v61 = vpop.f32.mrf.mxu0 }
 0x38a   : > { %v5058_v53 = vmul.f32 %v5607_v45, %v4866_v35  ;;  %5608 = vpow2.f32 %v4947_v37  ;;  %v4833_v58 = vadd.f32 %v4777_v61, %v4631_v56  ;;  %v4580_v0 = vpop.f32.mrf.mxu3  ;;  %v4416_v61 = vadd.f32 %v10458_v43, %v10472_v12 }
 0x38b   : > { %5610 = vrcp.f32 %v4995_v38  ;;  %v4633_v35 = vadd.f32 %v4580_v0, %v4411_v51 }
 0x38c   : > { %5090 = vst [vmem:[%s10110_s7 + $0x68] sm:$0xff] %v5058_v53  ;;  %v4869_v22 = vadd.f32 %v9912_v41, %v4833_v58 }
 0x38d   : > { %v10475_v8 = vpop.f32.mrf.mxu2  ;;  %v4283_v46 = vpop.f32.mrf.mxu1 }
 0x38e   : > { %v4901_v52 = vsub.f32 0.0, %v4869_v22  ;;  %v4421_v51 = vadd.f32 %v10475_v8, %v4283_v46 }
 0x390   : > { %v5609_v5 = vpop.eup %5608  ;;  %v4949_v40 = vmul.f32 1.442695, %v4901_v52 }
 0x391   : > { %v5611_v3 = vpop.eup %5610  ;;  %v4996_v54 = vadd.f32 1.0, %v5609_v5  ;;  %v4779_v42 = vpop.f32.mrf.mxu0 }
 0x392   : > { %v5059_v59 = vmul.f32 %v5611_v3, %v4867_v47  ;;  %v4834_v26 = vadd.f32 %v4779_v42, %v4632_v21  ;;  %v4582_v9 = vpop.f32.mrf.mxu3  ;;  %v4418_v21 = vadd.f32 %v10468_v55, %v4280_v36 }
 0x393   : > { %5612 = vrcp.f32 %v4996_v54  ;;  %v4634_v24 = vadd.f32 %v4582_v9, %v4413_v25 }
 0x394   : > { %5091 = vst [vmem:[%s10110_s7 + $0x70] sm:$0xff] %v5059_v59  ;;  %5614 = vpow2.f32 %v4949_v40  ;;  %v4870_v39 = vadd.f32 %v9912_v41, %v4834_v26  ;;  %v10483_v41 = vld [vmem:[%s10551_s4] ss:$0 sm:$0xff] }
 0x395   : > { %v10486_v2 = vpop.f32.mrf.mxu2  ;;  %v4285_v20 = vpop.f32.mrf.mxu1 }
 0x396   : > { %v4902_v49 = vsub.f32 0.0, %v4870_v39 }
 0x398   : > { %v4951_v18 = vmul.f32 1.442695, %v4902_v49 }
 0x399   : > { %v5613_v15 = vpop.eup %5612  ;;  %v4782_v23 = vpop.f32.mrf.mxu0 }
 0x39a   : > { %v5060_v7 = vmul.f32 %v5613_v15, %v4868_v28  ;;  %v5615_v62 = vpop.eup %5614  ;;  %5616 = vpow2.f32 %v4951_v18  ;;  %v4835_v32 = vadd.f32 %v4782_v23, %v4633_v35  ;;  %v4585_v1 = vpop.f32.mrf.mxu3 }
 0x39b   : > { %v4997_v44 = vadd.f32 1.0, %v5615_v62  ;;  %v4635_v5 = vadd.f32 %v4585_v1, %v4416_v61 }
 0x39c   : > { %5092 = vst [vmem:[%s10110_s7 + $0x78] sm:$0xff] %v5060_v7  ;;  %v4871_v60 = vadd.f32 %v10483_v41, %v4835_v32 }
 0x39d   : > { %5618 = vrcp.f32 %v4997_v44  ;;  %v10491_v13 = vpop.f32.mrf.mxu2 }
 0x39e   : > { %v4903_v17 = vsub.f32 0.0, %v4871_v60 }
 0x39f   : > { %v4288_v50 = vpop.f32.mrf.mxu1 }
 0x3a0   : > { %v5617_v33 = vpop.eup %5616  ;;  %v4953_v34 = vmul.f32 1.442695, %v4903_v17 }
 0x3a1   : > { %v4998_v14 = vadd.f32 1.0, %v5617_v33  ;;  %v4784_v4 = vpop.f32.mrf.mxu0 }
 0x3a2   : > { %5620 = vpow2.f32 %v4953_v34  ;;  %v4836_v48 = vadd.f32 %v4784_v4, %v4634_v24  ;;  %v4587_v29 = vpop.f32.mrf.mxu3 }
 0x3a3   : > { %v5619_v47 = vpop.eup %5618  ;;  %5622 = vrcp.f32 %v4998_v14  ;;  %v4636_v0 = vadd.f32 %v4587_v29, %v4418_v21 }
 0x3a4   : > { %v5061_v57 = vmul.f32 %v5619_v47, %v4869_v22  ;;  %v4872_v6 = vadd.f32 %v10483_v41, %v4836_v48 }
 0x3a5   : > { %v10494_v30 = vpop.f32.mrf.mxu2 }
 0x3a6   : > { %5093 = vst [vmem:[%s10110_s7 + $0x80] sm:$0xff] %v5061_v57  ;;  %v4904_v31 = vsub.f32 0.0, %v4872_v6 }
 0x3a7   : > { %v4290_v54 = vpop.f32.mrf.mxu1 }
 0x3a8   : > { %v5621_v27 = vpop.eup %5620  ;;  %v4955_v19 = vmul.f32 1.442695, %v4904_v31 }
 0x3a9   : > { %v5623_v63 = vpop.eup %5622  ;;  %v4999_v11 = vadd.f32 1.0, %v5621_v27 }
 0x3aa   : > { %v5062_v28 = vmul.f32 %v5623_v63, %v4870_v39  ;;  %5624 = vpow2.f32 %v4955_v19 }
 0x3ab   : > { %5626 = vrcp.f32 %v4999_v11 }
 0x3ac   : > { %5094 = vst [vmem:[%s10110_s7 + $0x88] sm:$0xff] %v5062_v28 }
 0x3ad   : > { %v10499_v22 = vpop.f32.mrf.mxu2 }
 0x3b0   : > { %v5625_v16 = vpop.eup %5624 }
 0x3b1   : > { %v5627_v37 = vpop.eup %5626  ;;  %v5000_v45 = vadd.f32 1.0, %v5625_v16  ;;  %v4590_v53 = vpop.f32.mrf.mxu3 }
 0x3b2   : > { %v5063_v38 = vmul.f32 %v5627_v37, %v4871_v60  ;;  %v4637_v35 = vadd.f32 %v4590_v53, %v4421_v51  ;;  %v4423_v60 = vadd.f32 %v10486_v2, %v4285_v20  ;;  %v4426_v2 = vadd.f32 %v10491_v13, %v4288_v50 }
 0x3b3   : > { %5628 = vrcp.f32 %v5000_v45 }
 0x3b4   : > { %5095 = vst [vmem:[%s10110_s7 + $0x90] sm:$0xff] %v5063_v38  ;;  %v4428_v38 = vadd.f32 %v10494_v30, %v4290_v54 }
 0x3b5   : > { %v10504_v39 = vpop.f32.mrf.mxu2 }
 0x3b7   : > { %v10508_v49 = vpop.f32.mrf.mxu1 }
 0x3b8   : > { %v4431_v30 = vadd.f32 %v10499_v22, %v10508_v49 }
 0x3b9   : > { %v5629_v56 = vpop.eup %5628  ;;  %v4592_v59 = vpop.f32.mrf.mxu3 }
 0x3ba   : > { %v5064_v58 = vmul.f32 %v5629_v56, %v4872_v6  ;;  %v4638_v17 = vadd.f32 %v4592_v59, %v4423_v60 }
 0x3bc   : > { %5096 = vst [vmem:[%s10110_s7 + $0x98] sm:$0xff] %v5064_v58 }
 0x3bd   : > { %v10510_v23 = vpop.f32.mrf.mxu2 }
 0x3bf   : > { %v4295_v33 = vpop.f32.mrf.mxu1 }
 0x3c1   : > { %v4595_v15 = vpop.f32.mrf.mxu3 }
 0x3c2   : > { %v4787_v3 = vpop.f32.mrf.mxu0  ;;  %v4639_v27 = vadd.f32 %v4595_v15, %v4426_v2 }
 0x3c3   : > { %v4837_v10 = vadd.f32 %v4787_v3, %v4635_v5 }
 0x3c5   : > { %v4873_v52 = vadd.f32 %v10483_v41, %v4837_v10  ;;  %v10516_v1 = vpop.f32.mrf.mxu2 }
 0x3c7   : > { %v4905_v40 = vsub.f32 0.0, %v4873_v52  ;;  %v4298_v29 = vpop.f32.mrf.mxu1 }
 0x3c9   : > { %v4957_v42 = vmul.f32 1.442695, %v4905_v40  ;;  %v4597_v32 = vpop.f32.mrf.mxu3 }
 0x3ca   : > { %v4789_v26 = vpop.f32.mrf.mxu0  ;;  %v4640_v56 = vadd.f32 %v4597_v32, %v4428_v38 }
 0x3cb   : > { %5630 = vpow2.f32 %v4957_v42  ;;  %v4838_v43 = vadd.f32 %v4789_v26, %v4636_v0 }
 0x3cd   : > { %v4874_v12 = vadd.f32 %v10483_v41, %v4838_v43  ;;  %v4440_v53 = vpop.f32.mrf.mxu2 }
 0x3cf   : > { %v4906_v7 = vsub.f32 0.0, %v4874_v12  ;;  %v4300_v59 = vpop.f32.mrf.mxu1 }
 0x3d1   : > { %v5631_v62 = vpop.eup %5630  ;;  %v4959_v18 = vmul.f32 1.442695, %v4906_v7  ;;  %v4600_v48 = vpop.f32.mrf.mxu3 }
 0x3d2   : > { %v5001_v55 = vadd.f32 1.0, %v5631_v62  ;;  %v4792_v36 = vpop.f32.mrf.mxu0  ;;  %v4641_v42 = vadd.f32 %v4600_v48, %v4431_v30 }
 0x3d3   : > { %5632 = vpow2.f32 %v4959_v18  ;;  %v4839_v44 = vadd.f32 %v4792_v36, %v4637_v35 }
 0x3d4   : > { %5634 = vrcp.f32 %v5001_v55  ;;  %v4433_v55 = vadd.f32 %v10504_v39, %v4295_v33  ;;  %v4436_v39 = vadd.f32 %v10510_v23, %v4298_v29 }
 0x3d5   : > { %v4875_v9 = vadd.f32 %v10483_v41, %v4839_v44  ;;  %v4442_v51 = vpop.f32.mrf.mxu2 }
 0x3d7   : > { %v4907_v8 = vsub.f32 0.0, %v4875_v9  ;;  %v4303_v22 = vpop.f32.mrf.mxu1 }
 0x3d9   : > { %v5633_v25 = vpop.eup %5632  ;;  %v4961_v24 = vmul.f32 1.442695, %v4907_v8  ;;  %v4602_v45 = vpop.f32.mrf.mxu3 }
 0x3da   : > { %v5635_v34 = vpop.eup %5634  ;;  %v5002_v47 = vadd.f32 1.0, %v5633_v25  ;;  %v4794_v14 = vpop.f32.mrf.mxu0  ;;  %v4642_v44 = vadd.f32 %v4602_v45, %v4433_v55 }
 0x3db   : > { %v5065_v4 = vmul.f32 %v5635_v34, %v4873_v52  ;;  %5636 = vpow2.f32 %v4961_v24  ;;  %v4840_v57 = vadd.f32 %v4794_v14, %v4638_v17  ;;  %v4441_v24 = vadd.f32 %v4440_v53, %v4303_v22 }
 0x3dc   : > { %5638 = vrcp.f32 %v5002_v47 }
 0x3dd   : > { %5097 = vst [vmem:[%s10110_s7 + $0xa0] sm:$0xff] %v5065_v4  ;;  %v4876_v46 = vadd.f32 %v10483_v41, %v4840_v57  ;;  %v4812_v34 = vpop.f32.mrf.mxu2 }
 0x3df   : > { %v4908_v6 = vsub.f32 0.0, %v4876_v46  ;;  %v4305_v48 = vpop.f32.mrf.mxu1 }
 0x3e1   : > { %v5637_v31 = vpop.eup %5636  ;;  %v4963_v19 = vmul.f32 1.442695, %v4908_v6  ;;  %v4605_v40 = vpop.f32.mrf.mxu3 }
 0x3e2   : > { %v5639_v63 = vpop.eup %5638  ;;  %v5003_v11 = vadd.f32 1.0, %v5637_v31  ;;  %v4797_v28 = vpop.f32.mrf.mxu0  ;;  %v4643_v2 = vadd.f32 %v4605_v40, %v4436_v39 }
 0x3e3   : > { %v5066_v20 = vmul.f32 %v5639_v63, %v4874_v12  ;;  %5640 = vpow2.f32 %v4963_v19  ;;  %v4841_v16 = vadd.f32 %v4797_v28, %v4639_v27 }
 0x3e4   : > { %5642 = vrcp.f32 %v5003_v11 }
 0x3e5   : > { %5098 = vst [vmem:[%s10110_s7 + $0xa8] sm:$0xff] %v5066_v20  ;;  %v4877_v37 = vadd.f32 %v10483_v41, %v4841_v16  ;;  %v4443_v20 = vadd.f32 %v4442_v51, %v4305_v48  ;;  %v4814_v38 = vpop.f32.mrf.mxu2 }
 0x3e7   : > { %v4909_v13 = vsub.f32 0.0, %v4877_v37 }
 0x3e9   : > { %v5641_v50 = vpop.eup %5640  ;;  %v4965_v61 = vmul.f32 1.442695, %v4909_v13  ;;  %v4607_v18 = vpop.f32.mrf.mxu3  ;;  %v4438_v13 = vadd.f32 %v10516_v1, %v4300_v59 }
 0x3ea   : > { %v5643_v58 = vpop.eup %5642  ;;  %v5004_v5 = vadd.f32 1.0, %v5641_v50  ;;  %v4799_v3 = vpop.f32.mrf.mxu0 }
 0x3eb   : > { %v5067_v10 = vmul.f32 %v5643_v58, %v4875_v9  ;;  %5644 = vpow2.f32 %v4965_v61  ;;  %v4842_v52 = vadd.f32 %v4799_v3, %v4640_v56  ;;  %v4644_v61 = vadd.f32 %v4607_v18, %v4438_v13 }
 0x3ec   : > { %5646 = vrcp.f32 %v5004_v5 }
 0x3ed   : > { %5099 = vst [vmem:[%s10110_s7 + $0xb0] sm:$0xff] %v5067_v10  ;;  %v4878_v21 = vadd.f32 %v10483_v41, %v4842_v52 }
 0x3ef   : > { %v4910_v54 = vsub.f32 0.0, %v4878_v21 }
 0x3f1   : > { %v5645_v0 = vpop.eup %5644  ;;  %v4967_v26 = vmul.f32 1.442695, %v4910_v54  ;;  %v4610_v14 = vpop.f32.mrf.mxu3 }
 0x3f2   : > { %v5647_v43 = vpop.eup %5646  ;;  %v5005_v12 = vadd.f32 1.0, %v5645_v0  ;;  %v4802_v15 = vpop.f32.mrf.mxu0  ;;  %v4645_v4 = vadd.f32 %v4610_v14, %v4441_v24 }
 0x3f3   : > { %v5068_v7 = vmul.f32 %v5647_v43, %v4876_v46  ;;  %5648 = vpow2.f32 %v4967_v26  ;;  %v4843_v62 = vadd.f32 %v4802_v15, %v4641_v42 }
 0x3f4   : > { %5650 = vrcp.f32 %v5005_v12  ;;  %v4847_v57 = vadd.f32 %v4812_v34, %v4645_v4 }
 0x3f5   : > { %5100 = vst [vmem:[%s10110_s7 + $0xb8] sm:$0xff] %v5068_v7  ;;  %v4879_v35 = vadd.f32 %v10483_v41, %v4843_v62 }
 0x3f6   : > { %v4883_v63 = vadd.f32 %v10483_v41, %v4847_v57 }
 0x3f7   : > { %v4911_v49 = vsub.f32 0.0, %v4879_v35 }
 0x3f8   : > { %v4915_v16 = vsub.f32 0.0, %v4883_v63 }
 0x3f9   : > { %v5649_v36 = vpop.eup %5648  ;;  %v4969_v9 = vmul.f32 1.442695, %v4911_v49  ;;  %v4612_v29 = vpop.f32.mrf.mxu3 }
 0x3fa   : > { %v5651_v32 = vpop.eup %5650  ;;  %v5006_v60 = vadd.f32 1.0, %v5649_v36  ;;  %v4804_v8 = vpop.f32.mrf.mxu0  ;;  %v4646_v45 = vadd.f32 %v4612_v29, %v4443_v20 }
 0x3fb   : > { %v5069_v25 = vmul.f32 %v5651_v32, %v4877_v37  ;;  %5652 = vpow2.f32 %v4969_v9  ;;  %v4844_v17 = vadd.f32 %v4804_v8, %v4642_v44  ;;  %v4977_v37 = vmul.f32 1.442695, %v4915_v16 }
 0x3fc   : > { %5654 = vrcp.f32 %v5006_v60  ;;  %v4848_v53 = vadd.f32 %v4814_v38, %v4646_v45 }
 0x3fd   : > { %5101 = vst [vmem:[%s10110_s7 + $0xc0] sm:$0xff] %v5069_v25  ;;  %v4880_v47 = vadd.f32 %v10483_v41, %v4844_v17 }
 0x3fe   : > { %v4884_v52 = vadd.f32 %v10483_v41, %v4848_v53 }
 0x3ff   : > { %v4912_v33 = vsub.f32 0.0, %v4880_v47 }
 0x400   : > { %v4916_v30 = vsub.f32 0.0, %v4884_v52 }
 0x401   : > { %v5653_v46 = vpop.eup %5652  ;;  %v4971_v6 = vmul.f32 1.442695, %v4912_v33 }
 0x402   : > { %v5655_v31 = vpop.eup %5654  ;;  %v5007_v27 = vadd.f32 1.0, %v5653_v46  ;;  %v4807_v19 = vpop.f32.mrf.mxu0  ;;  %v4979_v54 = vmul.f32 1.442695, %v4916_v30 }
 0x403   : > { %v5070_v11 = vmul.f32 %v5655_v31, %v4878_v21  ;;  %5656 = vpow2.f32 %v4971_v6  ;;  %v4845_v28 = vadd.f32 %v4807_v19, %v4643_v2 }
 0x404   : > { %5658 = vrcp.f32 %v5007_v27 }
 0x405   : > { %5102 = vst [vmem:[%s10110_s7 + $0xc8] sm:$0xff] %v5070_v11  ;;  %v4881_v23 = vadd.f32 %v10483_v41, %v4845_v28  ;;  %5660 = vpow2.f32 %v4977_v37 }
 0x407   : > { %v4913_v50 = vsub.f32 0.0, %v4881_v23 }
 0x409   : > { %v5657_v56 = vpop.eup %5656  ;;  %v4973_v58 = vmul.f32 1.442695, %v4913_v50 }
 0x40a   : > { %v5659_v5 = vpop.eup %5658  ;;  %v5008_v3 = vadd.f32 1.0, %v5657_v56  ;;  %v4809_v10 = vpop.f32.mrf.mxu0 }
 0x40b   : > { %v5071_v21 = vmul.f32 %v5659_v5, %v4879_v35  ;;  %5662 = vpow2.f32 %v4973_v58  ;;  %v4846_v40 = vadd.f32 %v4809_v10, %v4644_v61  ;;  %v5661_v59 = vpop.eup %5660 }
 0x40c   : > { %5664 = vrcp.f32 %v5008_v3  ;;  %v5011_v0 = vadd.f32 1.0, %v5661_v59 }
 0x40d   : > { %5103 = vst [vmem:[%s10110_s7 + $0xd0] sm:$0xff] %v5071_v21  ;;  %v4882_v1 = vadd.f32 %v10483_v41, %v4846_v40  ;;  %5666 = vpow2.f32 %v4979_v54 }
 0x40e   : > { %5668 = vrcp.f32 %v5011_v0 }
 0x40f   : > { %v4914_v42 = vsub.f32 0.0, %v4882_v1 }
 0x411   : > { %v5663_v26 = vpop.eup %5662  ;;  %v4975_v43 = vmul.f32 1.442695, %v4914_v42 }
 0x412   : > { %v5665_v12 = vpop.eup %5664  ;;  %v5009_v15 = vadd.f32 1.0, %v5663_v26 }
 0x413   : > { %v5072_v51 = vmul.f32 %v5665_v12, %v4880_v47  ;;  %5670 = vpow2.f32 %v4975_v43  ;;  %v5667_v7 = vpop.eup %5666 }
 0x414   : > { %5672 = vrcp.f32 %v5009_v15  ;;  %v5669_v62 = vpop.eup %5668  ;;  %v5012_v41 = vadd.f32 1.0, %v5667_v7 }
 0x415   : > { %5104 = vst [vmem:[%s10110_s7 + $0xd8] sm:$0xff] %v5072_v51  ;;  %v5075_v35 = vmul.f32 %v5669_v62, %v4883_v63 }
 0x416   : > { %5674 = vrcp.f32 %v5012_v41 }
 0x417   : > { %5107 = vst [vmem:[%s10110_s7 + $0xf0] sm:$0xff] %v5075_v35 }
 0x419   : > { %v5671_v18 = vpop.eup %5670 }
 0x41a   : > { %v5673_v55 = vpop.eup %5672  ;;  %v5010_v22 = vadd.f32 1.0, %v5671_v18 }
 0x41b   : > { %v5073_v49 = vmul.f32 %v5673_v55, %v4881_v23 }
 0x41c   : > { %5676 = vrcp.f32 %v5010_v22  ;;  %v5675_v36 = vpop.eup %5674 }
 0x41d   : > { %5105 = vst [vmem:[%s10110_s7 + $0xe0] sm:$0xff] %v5073_v49  ;;  %v5076_v44 = vmul.f32 %v5675_v36, %v4884_v52 }
 0x41f   : > { %5108 = vst [vmem:[%s10110_s7 + $0xf8] sm:$0xff] %v5076_v44 }
 0x422   : > { %v5677_v9 = vpop.eup %5676 }
 0x423   : > { %v5074_v32 = vmul.f32 %v5677_v9, %v4882_v1 }
 0x425   : > { %5106 = vst [vmem:[%s10110_s7 + $0xe8] sm:$0xff] %v5074_v32 }
 0x426 PF: > { %s15_s18 = sadd.s32 1, %s5686_s18  }
 0x427   : > { %p12_p4 = scmp.ge.s32.totalorder %s15_s18, 4  }
 0x429   :  { %14 = sbr.rel (!%p12_p4) target bundleno = 1 (0x1), region = 73 }

</bundles_post_ra>
